<compile_context>
chip_gen: v6e
topology: v6e:2x2x1
jax: 0.10.0
libtpu: 0.0.40
codegen_flags: <defaults>
</compile_context>

<pallas_src>
import functools
import math

import jax
import jax.numpy as jnp
from jax.experimental import pallas as pl
from jax.experimental.pallas import tpu as pltpu


_EXTRA_ROWS = 8   # flat-row slack so the (di=2, dj=2) tap slice stays in bounds


# ----------------------------------------------------------------------------
# Fused Fire kernel
# ----------------------------------------------------------------------------
def _fire_kernel(x_ref, ws_ref, bs_ref, we_ref, be_ref, o_ref, *,
                 th, wp, sq, h, w, e1_split):
    """One (batch, row-block) step of the fused Fire forward.

    Flattened spatial layout: padded pixel (row r, col c) lives at flat index
    r * wp + c (wp a power of two), so the 3x3 tap (di, dj) of the squeeze map
    is the contiguous flat slice starting at di * wp + dj.

    x_ref : (total_flat, Cin)   bf16  zero-padded input, spatially flattened
    ws_ref: (Cin, sq)           bf16  squeeze 1x1 weight
    bs_ref: (1, sq)             f32   squeeze bias
    we_ref: (9*sq, e1+e3)       bf16  fused expand weight (1x1 in centre tap)
    be_ref: (1, e1+e3)          f32   fused expand bias  [b_1x1 | b_3x3]
    o_ref : (th*wp, e1+e3)      bf16  Fire output rows for this block
    """
    i = pl.program_id(1)
    m_out = th * wp                       # flat output rows per block
    m_win = (th + 2) * wp + _EXTRA_ROWS   # squeeze window incl. 3x3 halo rows
    start = pl.multiple_of(i * m_out, m_out)

    # ---- squeeze: 1x1 conv + bias + ReLU, kept entirely in VMEM -------------
    xs = x_ref[pl.ds(start, m_win)]                           # (m_win, Cin) bf16
    s = jnp.dot(xs, ws_ref[...], preferred_element_type=jnp.float32)

    # In-kernel padding mask (wp is a power of two -> shift/AND, no division).
    # The 3x3 expand zero-pads the *squeeze output*: every window position on
    # the padding border (incl. tile-rounding rows and the _EXTRA_ROWS tail)
    # must contribute zeros.  Mask, bias add and ReLU fold into one VPU pass.
    shift = wp.bit_length() - 1
    gidx = start + jax.lax.broadcasted_iota(jnp.int32, (m_win, 1), 0)
    row = gidx >> shift
    col = gidx & (wp - 1)
    valid = (row >= 1) & (row <= h) & (col >= 1) & (col <= w)
    s = jnp.where(valid, jnp.maximum(s + bs_ref[...], 0.0), 0.0)  # (m_win, sq) f32

    # ---- tap-stacked expand: one K = 9*sq MXU contraction --------------------
    taps = [s[di * wp + dj:di * wp + dj + m_out]
            for di in range(3) for dj in range(3)]
    stacked = jnp.concatenate(taps, axis=-1).astype(jnp.bfloat16)  # (m_out, 9*sq)

    we = we_ref[...]
    be = be_ref[...]
    if e1_split > 0:
        # e1 and e3 are both lane-aligned: skip the zero-padded 1x1 columns of
        # the fused weight and write the two column slices of o_ref directly.
        e1 = e1_split
        o1 = jnp.dot(stacked[:, 4 * sq:5 * sq], we[4 * sq:5 * sq, :e1],
                     preferred_element_type=jnp.float32)
        o_ref[:, :e1] = jnp.maximum(o1 + be[:, :e1], 0.0).astype(o_ref.dtype)
        o3 = jnp.dot(stacked, we[:, e1:], preferred_element_type=jnp.float32)
        o_ref[:, e1:] = jnp.maximum(o3 + be[:, e1:], 0.0).astype(o_ref.dtype)
    else:
        acc = jnp.dot(stacked, we, preferred_element_type=jnp.float32)
        o_ref[...] = jnp.maximum(acc + be, 0.0).astype(o_ref.dtype)


# ----------------------------------------------------------------------------
# Wrapper
# ----------------------------------------------------------------------------
def _next_pow2(x):
    return 1 << max(3, (x - 1).bit_length())


def _pick_row_tile(h, wp, n_batch, target_m=4096):
    """Output rows per grid step.

    Real SqueezeNet Fire maps (<= 55x55) get a single row block per batch
    (splitting only adds halo recompute + per-step overhead on 1-TC chips).
    At batch==1 a 2-way row split is kept so both v7x TensorCores get work;
    target_m bounds VMEM for oversized inputs.
    """
    th = max(1, min(h, target_m // max(wp, 1)))
    if n_batch == 1 and h > 1:
        th = min(th, -(-h // 2))
    return th


def _vmem_limit_bytes(total_flat, cin, th, wp, sq, nout):
    """Generous budget for pipelined buffers + in-kernel temps (v7x: 64 MiB)."""
    m_out = th * wp
    m_win = (th + 2) * wp + _EXTRA_ROWS
    lane = 128
    est = 2 * total_flat * cin * 2                              # x, bf16, 2 bufs
    est += 2 * m_out * nout * 2                                 # out, bf16, 2 bufs
    est += (cin * sq + 9 * sq * nout) * 2 + (sq + nout) * 4 * 8  # weights/biases
    est += m_win * max(sq, lane) * 4                            # squeeze act (f32)
    est += m_out * 9 * sq * (4 + 2)                             # tap stack f32+bf16
    est += m_out * max(nout, lane) * 4                          # f32 expand result
    return int(min(max(est + est // 2 + (8 << 20), 32 << 20), 64 << 20))


def fire_forward(params, x_nchw, expand1x1_planes):
    """Fire(x): NCHW f32 in -> NCHW bf16 out (== torch.cat([e1x1, e3x3], 1))."""
    # TODO(synk): when chaining Fire blocks, keep activations in this padded
    # NHWC-flat layout between blocks and only convert NCHW<->NHWC at the
    # network boundary; the relayouts below dominate when blocks are chained.
    ws, bs, we, be = params["ws"], params["bs"], params["we"], params["be"]
    n, cin, h, w = x_nchw.shape
    sq = ws.shape[1]
    nout = we.shape[1]
    e1 = expand1x1_planes
    e3 = nout - e1
    e1_split = e1 if (e1 > 0 and e1 % 128 == 0 and e3 % 128 == 0) else 0

    wp = _next_pow2(w + 2)                # padded row stride (power of two)
    th = _pick_row_tile(h, wp, n)
    gh = -(-h // th)
    hp = gh * th
    total_flat = (hp + 2) * wp + _EXTRA_ROWS

    # NCHW -> NHWC (channels on the TPU lane dim); zero-pad one halo row/col
    # for the 3x3 expand (padding=1) plus alignment rows/cols; flatten spatial
    # dims with row stride wp; cast MXU inputs to bf16.
    x = jnp.transpose(x_nchw, (0, 2, 3, 1)).astype(jnp.float32)
    x = jnp.pad(x, ((0, 0), (1, hp - h + 1), (1, wp - w - 1), (0, 0)))
    x = x.reshape(n, (hp + 2) * wp, cin)
    x = jnp.pad(x, ((0, 0), (0, _EXTRA_ROWS), (0, 0))).astype(jnp.bfloat16)

    kernel = functools.partial(_fire_kernel, th=th, wp=wp, sq=sq, h=h, w=w,
                               e1_split=e1_split)
    out = pl.pallas_call(
        kernel,
        out_shape=jax.ShapeDtypeStruct((n, hp * wp, nout), jnp.bfloat16),
        grid_spec=pltpu.PrefetchScalarGridSpec(
            num_scalar_prefetch=0,
            grid=(n, gh),
            in_specs=[
                # TODO(synk): for maps far larger than SqueezeNet's, switch x to
                # a windowed per-row-block spec so VMEM scales with the tile.
                pl.BlockSpec((None, total_flat, cin), lambda b, i: (b, 0, 0)),
                pl.BlockSpec((cin, sq), lambda b, i: (0, 0)),
                pl.BlockSpec((1, sq), lambda b, i: (0, 0)),
                pl.BlockSpec((9 * sq, nout), lambda b, i: (0, 0)),
                pl.BlockSpec((1, nout), lambda b, i: (0, 0)),
            ],
            out_specs=pl.BlockSpec((None, th * wp, nout),
                                   lambda b, i: (b, i, 0)),
        ),
        compiler_params=pltpu.CompilerParams(
            dimension_semantics=("parallel", "parallel"),
            vmem_limit_bytes=_vmem_limit_bytes(total_flat, cin, th, wp, sq, nout)),
    )(x, ws.astype(jnp.bfloat16), bs, we.astype(jnp.bfloat16), be)

    out = out.reshape(n, hp, wp, nout)[:, :h, :w, :]   # drop tile/stride padding
    return jnp.transpose(out, (0, 3, 1, 2))            # NHWC -> NCHW


# ----------------------------------------------------------------------------
# Parameters (nn.Conv2d-style uniform init, expand weights pre-fused)
# ----------------------------------------------------------------------------
def init_fire_params(key, in_planes, squeeze_planes, expand1x1_planes,
                     expand3x3_planes):
    ks, k1, k3, kbs, kb1, kb3 = jax.random.split(key, 6)

    def _u(k, shape, fan_in):
        b = 1.0 / math.sqrt(fan_in)
        return jax.random.uniform(k, shape, jnp.float32, -b, b)

    sq, e1, e3 = squeeze_planes, expand1x1_planes, expand3x3_planes
    ws = _u(ks, (in_planes, sq), in_planes)        # 1x1 squeeze, (cin, cout)
    bs = _u(kbs, (1, sq), in_planes)
    w1 = _u(k1, (sq, e1), sq)                      # 1x1 expand
    b1 = _u(kb1, (1, e1), sq)
    w3 = _u(k3, (9 * sq, e3), 9 * sq)              # 3x3 expand, (kh,kw,cin) rows
    b3 = _u(kb3, (1, e3), 9 * sq)

    # Fused expand weight: expand3x3 fills the right e3 columns for all 9 taps;
    # expand1x1 occupies only the centre-tap (di=dj=1 -> tap 4) rows of the
    # left e1 columns.  The kernel either uses it as one lane-dense matmul or
    # (for lane-aligned e1/e3) slices out the two sub-matmuls.
    we = jnp.zeros((9 * sq, e1 + e3), jnp.float32)
    we = we.at[:, e1:].set(w3)
    we = we.at[4 * sq:5 * sq, :e1].set(w1)
    be = jnp.concatenate([b1, b3], axis=1)
    return {"ws": ws, "bs": bs, "we": we, "be": be}


# ----------------------------------------------------------------------------
# Pure-JAX f32 reference (for validation of the fused kernel)
# ----------------------------------------------------------------------------
def fire_reference(params, x_nchw, expand1x1_planes):
    ws, bs, we, be = params["ws"], params["bs"], params["we"], params["be"]
    sq = ws.shape[1]
    e1 = expand1x1_planes
    hi = jax.lax.Precision.HIGHEST
    x = jnp.transpose(x_nchw, (0, 2, 3, 1)).astype(jnp.float32)
    s = jnp.maximum(jnp.einsum("nhwc,cs->nhws", x, ws, precision=hi)
                    + bs.reshape(1, 1, 1, -1), 0.0)
    w1 = we[4 * sq:5 * sq, :e1]
    w3 = we[:, e1:].reshape(3, 3, sq, -1)
    o1 = jnp.einsum("nhwc,cd->nhwd", s, w1, precision=hi) \
        + be[:, :e1].reshape(1, 1, 1, -1)
    o3 = jax.lax.conv_general_dilated(
        s, w3, window_strides=(1, 1), padding=((1, 1), (1, 1)),
        dimension_numbers=("NHWC", "HWIO", "NHWC"), precision=hi)
    o3 = o3 + be[:, e1:].reshape(1, 1, 1, -1)
    out = jnp.concatenate([jnp.maximum(o1, 0.0), jnp.maximum(o3, 0.0)], axis=-1)
    return jnp.transpose(out, (0, 3, 1, 2))


# ----------------------------------------------------------------------------
# Tests
# ----------------------------------------------------------------------------
def _run_case(name, key, in_planes, sq, e1, e3, batch, height, width, tol):
    pkey, xkey = jax.random.split(key)
    params = init_fire_params(pkey, in_planes, sq, e1, e3)
    x = jax.random.normal(xkey, (batch, in_planes, height, width), jnp.float32)

    fwd = jax.jit(fire_forward, static_argnums=2)
    out = jax.block_until_ready(fwd(params, x, e1))
    assert out.shape == (batch, e1 + e3, height, width), (name, out.shape)
    out = out.astype(jnp.float32)
    assert bool(jnp.all(jnp.isfinite(out))), name

    # Loose tolerance: kernel feeds the MXU in bf16 and stores bf16 output;
    # the reference is f32 / HIGHEST precision.
    ref = fire_reference(params, x, e1)
    err = float(jnp.max(jnp.abs(out - ref)))
    assert err < tol, f"{name}: max abs error {err}"


if __name__ == "__main__":
    key = jax.random.PRNGKey(0)
    k1, k2 = jax.random.split(key)

    # First Fire config of SqueezeNet v1.0 (in=96, squeeze=16, expand=64+64)
    # at a small spatial size; exercises the fused lane-dense-concat path.
    _run_case("fire_fused", k1, in_planes=96, sq=16, e1=64, e3=64,
              batch=2, height=16, width=16, tol=1e-1)

    # Lane-aligned expand (e1 = e3 = 128) at batch 1; exercises the split
    # expand path and the batch-1 two-row-block (megacore) tiling.
    _run_case("fire_split", k2, in_planes=32, sq=16, e1=128, e3=128,
              batch=1, height=8, width=8, tol=1e-1)

    print("KERNEL_OK")
</pallas_src>

<mosaic_0001>
module attributes {stable_mosaic.version = 11 : i64} {
  func.func @_fire_kernel(%arg0: i32, %arg1: i32, %arg2: memref<1x584x96xbf16, #tpu.memory_space<vmem>>, %arg3: memref<96x16xbf16, #tpu.memory_space<vmem>>, %arg4: memref<1x16xf32, #tpu.memory_space<vmem>>, %arg5: memref<144x128xbf16, #tpu.memory_space<vmem>>, %arg6: memref<1x128xf32, #tpu.memory_space<vmem>>, %arg7: memref<1x512x128xbf16, #tpu.memory_space<vmem>>) attributes {dimension_semantics = [#tpu.dimension_semantics<parallel>, #tpu.dimension_semantics<parallel>], iteration_bounds = array<i64: 2, 1>, scalar_prefetch = 0 : i64, scratch_operands = 0 : i64, tpu.core_type = #tpu.core_type<tc>, window_params = [{transform_indices = @transform_0, window_bounds = array<i64: 1, 584, 96>}, {pipeline_mode = #tpu.pipeline_mode<synchronous>, transform_indices = @transform_1, window_bounds = array<i64: 96, 16>}, {pipeline_mode = #tpu.pipeline_mode<synchronous>, transform_indices = @transform_2, window_bounds = array<i64: 1, 16>}, {pipeline_mode = #tpu.pipeline_mode<synchronous>, transform_indices = @transform_3, window_bounds = array<i64: 144, 128>}, {pipeline_mode = #tpu.pipeline_mode<synchronous>, transform_indices = @transform_4, window_bounds = array<i64: 1, 128>}, {transform_indices = @transform_5, window_bounds = array<i64: 1, 512, 128>}]} {
    %c512_i32 = arith.constant 512 : i32
    %0 = arith.muli %arg1, %c512_i32 : i32
    %1 = tpu.assume_multiple %0, 512 : i32
    %c0 = arith.constant 0 : index
    %2 = arith.index_cast %1 : i32 to index
    %c0_0 = arith.constant 0 : index
    %3 = vector.load %arg2[%c0, %2, %c0_0] : memref<1x584x96xbf16, #tpu.memory_space<vmem>>, vector<1x584x96xbf16>
    %4 = vector.shape_cast %3 : vector<1x584x96xbf16> to vector<584x96xbf16>
    %c0_1 = arith.constant 0 : index
    %c0_2 = arith.constant 0 : index
    %5 = vector.load %arg3[%c0_1, %c0_2] : memref<96x16xbf16, #tpu.memory_space<vmem>>, vector<96x16xbf16>
    %cst = arith.constant dense<0.000000e+00> : vector<584x16xf32>
    %6 = tpu.matmul %4, %5, %cst {dimension_numbers = #tpu.dot_dimension_numbers<[1], [0], [0], [1], [0, 0, 1, 1], [], []>} : vector<584x96xbf16>, vector<96x16xbf16>, vector<584x16xf32> -> vector<584x16xf32>
    %7 = tpu.iota {dimensions = array<i32: 0>} : vector<584x1xi32>
    %8 = vector.broadcast %1 : i32 to vector<584x1xi32>
    %9 = arith.addi %8, %7 : vector<584x1xi32>
    %c5_i32 = arith.constant 5 : i32
    %10 = vector.broadcast %c5_i32 : i32 to vector<584x1xi32>
    %11 = arith.shrsi %9, %10 : vector<584x1xi32>
    %c31_i32 = arith.constant 31 : i32
    %12 = vector.broadcast %c31_i32 : i32 to vector<584x1xi32>
    %13 = arith.andi %9, %12 : vector<584x1xi32>
    %c1_i32 = arith.constant 1 : i32
    %14 = vector.broadcast %c1_i32 : i32 to vector<584x1xi32>
    %15 = arith.cmpi sge, %11, %14 : vector<584x1xi32>
    %c16_i32 = arith.constant 16 : i32
    %16 = vector.broadcast %c16_i32 : i32 to vector<584x1xi32>
    %17 = arith.cmpi sle, %11, %16 : vector<584x1xi32>
    %18 = arith.andi %15, %17 : vector<584x1xi1>
    %c1_i32_3 = arith.constant 1 : i32
    %19 = vector.broadcast %c1_i32_3 : i32 to vector<584x1xi32>
    %20 = arith.cmpi sge, %13, %19 : vector<584x1xi32>
    %21 = arith.andi %18, %20 : vector<584x1xi1>
    %c16_i32_4 = arith.constant 16 : i32
    %22 = vector.broadcast %c16_i32_4 : i32 to vector<584x1xi32>
    %23 = arith.cmpi sle, %13, %22 : vector<584x1xi32>
    %24 = arith.andi %21, %23 : vector<584x1xi1>
    %c0_5 = arith.constant 0 : index
    %c0_6 = arith.constant 0 : index
    %25 = vector.load %arg4[%c0_5, %c0_6] : memref<1x16xf32, #tpu.memory_space<vmem>>, vector<1x16xf32>
    %26 = vector.broadcast %25 : vector<1x16xf32> to vector<584x16xf32>
    %27 = arith.addf %6, %26 : vector<584x16xf32>
    %cst_7 = arith.constant 0.000000e+00 : f32
    %28 = vector.broadcast %cst_7 : f32 to vector<584x16xf32>
    %29 = arith.maximumf %27, %28 : vector<584x16xf32>
    %cst_8 = arith.constant 0.000000e+00 : f32
    %30 = vector.shape_cast %24 : vector<584x1xi1> to vector<584x1xi1>
    %31 = vector.broadcast %30 : vector<584x1xi1> to vector<584x16xi1>
    %32 = vector.broadcast %cst_8 : f32 to vector<584x16xf32>
    %33 = arith.select %31, %29, %32 : vector<584x16xi1>, vector<584x16xf32>
    %34 = vector.extract_strided_slice %33 {offsets = [0, 0], sizes = [512, 16], strides = [1, 1]} : vector<584x16xf32> to vector<512x16xf32>
    %35 = vector.extract_strided_slice %33 {offsets = [1, 0], sizes = [512, 16], strides = [1, 1]} : vector<584x16xf32> to vector<512x16xf32>
    %36 = vector.extract_strided_slice %33 {offsets = [2, 0], sizes = [512, 16], strides = [1, 1]} : vector<584x16xf32> to vector<512x16xf32>
    %37 = vector.extract_strided_slice %33 {offsets = [32, 0], sizes = [512, 16], strides = [1, 1]} : vector<584x16xf32> to vector<512x16xf32>
    %38 = vector.extract_strided_slice %33 {offsets = [33, 0], sizes = [512, 16], strides = [1, 1]} : vector<584x16xf32> to vector<512x16xf32>
    %39 = vector.extract_strided_slice %33 {offsets = [34, 0], sizes = [512, 16], strides = [1, 1]} : vector<584x16xf32> to vector<512x16xf32>
    %40 = vector.extract_strided_slice %33 {offsets = [64, 0], sizes = [512, 16], strides = [1, 1]} : vector<584x16xf32> to vector<512x16xf32>
    %41 = vector.extract_strided_slice %33 {offsets = [65, 0], sizes = [512, 16], strides = [1, 1]} : vector<584x16xf32> to vector<512x16xf32>
    %42 = vector.extract_strided_slice %33 {offsets = [66, 0], sizes = [512, 16], strides = [1, 1]} : vector<584x16xf32> to vector<512x16xf32>
    %43 = tpu.concatenate %34, %35, %36, %37, %38, %39, %40, %41, %42 in 1 : vector<512x16xf32>, vector<512x16xf32>, vector<512x16xf32>, vector<512x16xf32>, vector<512x16xf32>, vector<512x16xf32>, vector<512x16xf32>, vector<512x16xf32>, vector<512x16xf32> -> vector<512x144xf32>
    %44 = arith.truncf %43 : vector<512x144xf32> to vector<512x144xbf16>
    %c0_9 = arith.constant 0 : index
    %c0_10 = arith.constant 0 : index
    %45 = vector.load %arg5[%c0_9, %c0_10] : memref<144x128xbf16, #tpu.memory_space<vmem>>, vector<144x128xbf16>
    %c0_11 = arith.constant 0 : index
    %c0_12 = arith.constant 0 : index
    %46 = vector.load %arg6[%c0_11, %c0_12] : memref<1x128xf32, #tpu.memory_space<vmem>>, vector<1x128xf32>
    %cst_13 = arith.constant dense<0.000000e+00> : vector<512x128xf32>
    %47 = tpu.matmul %44, %45, %cst_13 {dimension_numbers = #tpu.dot_dimension_numbers<[1], [0], [0], [1], [0, 0, 1, 1], [], []>} : vector<512x144xbf16>, vector<144x128xbf16>, vector<512x128xf32> -> vector<512x128xf32>
    %48 = vector.broadcast %46 : vector<1x128xf32> to vector<512x128xf32>
    %49 = arith.addf %47, %48 : vector<512x128xf32>
    %cst_14 = arith.constant 0.000000e+00 : f32
    %50 = vector.broadcast %cst_14 : f32 to vector<512x128xf32>
    %51 = arith.maximumf %49, %50 : vector<512x128xf32>
    %52 = arith.truncf %51 : vector<512x128xf32> to vector<512x128xbf16>
    %c0_15 = arith.constant 0 : index
    %c0_16 = arith.constant 0 : index
    %c0_17 = arith.constant 0 : index
    %53 = vector.load %arg7[%c0_15, %c0_16, %c0_17] : memref<1x512x128xbf16, #tpu.memory_space<vmem>>, vector<1x512x128xbf16>
    %54 = vector.shape_cast %53 : vector<1x512x128xbf16> to vector<512x128xbf16>
    %55 = vector.shape_cast %52 : vector<512x128xbf16> to vector<1x512x128xbf16>
    tpu.vector_store %arg7[%c0_15, %c0_16, %c0_17], %55 {strides = array<i32>} : memref<1x512x128xbf16, #tpu.memory_space<vmem>>, vector<1x512x128xbf16>,
    return
  }
  func.func @transform_0(%arg0: i32, %arg1: i32) -> (i32, i32, i32) {
    %c0_i32 = arith.constant 0 : i32
    %c0_i32_0 = arith.constant 0 : i32
    %c0_i32_1 = arith.constant 0 : i32
    return %arg0, %c0_i32, %c0_i32_0 : i32, i32, i32
  }
  func.func @transform_1(%arg0: i32, %arg1: i32) -> (i32, i32) {
    %c0_i32 = arith.constant 0 : i32
    %c0_i32_0 = arith.constant 0 : i32
    %c0_i32_1 = arith.constant 0 : i32
    return %c0_i32, %c0_i32_0 : i32, i32
  }
  func.func @transform_2(%arg0: i32, %arg1: i32) -> (i32, i32) {
    %c0_i32 = arith.constant 0 : i32
    %c0_i32_0 = arith.constant 0 : i32
    %c0_i32_1 = arith.constant 0 : i32
    return %c0_i32, %c0_i32_0 : i32, i32
  }
  func.func @transform_3(%arg0: i32, %arg1: i32) -> (i32, i32) {
    %c0_i32 = arith.constant 0 : i32
    %c0_i32_0 = arith.constant 0 : i32
    %c0_i32_1 = arith.constant 0 : i32
    return %c0_i32, %c0_i32_0 : i32, i32
  }
  func.func @transform_4(%arg0: i32, %arg1: i32) -> (i32, i32) {
    %c0_i32 = arith.constant 0 : i32
    %c0_i32_0 = arith.constant 0 : i32
    %c0_i32_1 = arith.constant 0 : i32
    return %c0_i32, %c0_i32_0 : i32, i32
  }
  func.func @transform_5(%arg0: i32, %arg1: i32) -> (i32, i32, i32) {
    %c0_i32 = arith.constant 0 : i32
    %c0_i32_0 = arith.constant 0 : i32
    return %arg0, %arg1, %c0_i32 : i32, i32, i32
  }
}

</mosaic_0001>

<bundles_post_ra>
// kernel: fire_forward.1
= control target key start
LH: loop header
LB: loop body
LE: loop exit
PB: predicated region body
PF: predicated region fallthrough
CT: control target
= control target key end

     0   :  { %s7256_s18 = smov 0   ;;  %s7258_s19 = smov 0   ;;  %s11711_s0 = inlined_call_operand.vmem [shape: bf16[2,584,96], index: 0, kind: input, shape index: {}]   ;;  %s11712_s1 = inlined_call_operand.vmem [shape: bf16[96,16], index: 1, kind: input, shape index: {}]   ;;  %s11713_s2 = inlined_call_operand.vmem [shape: f32[1,16], index: 2, kind: input, shape index: {}]   ;;  %s11714_s3 = inlined_call_operand.vmem [shape: bf16[144,128], index: 3, kind: input, shape index: {}]   ;;  %s11715_s4 = inlined_call_operand.vmem [shape: f32[1,128], index: 4, kind: input, shape index: {}]   ;;  %s11716_s5 = inlined_call_operand.vmem [shape: bf16[2,512,128], index: 5, kind: output, shape index: {}]  }
   0x1   :  { %s7260_s20 = smov 0  }
   0x2 LB: > { %s27_s21 = sadd.s32 1, %s7210_s19  ;;  %p5328_p0 = scmp.ge.s32.totalorder %s7214_s20, 1  ;;  %s7214_s20 = sphi %s7260_s20, %s15_s20   ;;  %s7210_s19 = sphi %s7258_s19, %s12931_s19   ;;  %s7206_s18 = sphi %s7256_s18, %s12930_s18  }
   0x3   : > { %p29_p1 = scmp.ge.s32.totalorder %s27_s21, 2  ;;  %p201_p2 = scmp.lt.s32.totalorder %s7214_s20, 3 }
   0x5   : > { %s12933_s21 = smov (%p29_p1, %s27_s21), 0  ;;  %p202_p3 = pnand %p5328_p0, %p201_p2 }
   0x7   : > { %205 = sbr.rel (%p202_p3) target bundleno = 1047 (0x417), region = 40 }
   0xc   : > { %v7135_v0 = vld [vmem:[%s11712_s1 + $0x28] sm:$0xff]   ;;  %v11719_v1 = vmov 0.0   ;;  %v7136_v2 = vld [vmem:[%s11712_s1 + $0x20] sm:$0xff]   ;;  %vm7217_vm0 = vmmov 0   ;;  %p233_p4 = scmp.lt.s32.totalorder %s7206_s18, 1  ;;  %v7137_v3 = vld [vmem:[%s11712_s1 + $0x18] sm:$0xff]   ;;  %v339_v31 = vlaneseq }
   0xd   : > { %5820 = vmatprep.subr.bf16.mxu0 %v11719_v1  ;;  %5832 = vmatprep.mubr.msk.bf16.mxu0 %vm7217_vm0, %v11719_v1  ;;  %v7138_v4 = vld [vmem:[%s11712_s1 + $0x10] sm:$0xff]   ;;  %v7139_v5 = vld [vmem:[%s11712_s1 + $0x8] sm:$0xff]   ;;  %v7140_v6 = vld [vmem:[%s11712_s1] sm:$0xff]   ;;  %vm11759_vm1 = vcmask 785408   ;;  %s7218_s17 = smov 16   ;;  %s7220_s24 = smov 32  }
   0xe   : > { %5821 = vmatpush3.bf16.msra.mxu0 %v7135_v0  ;;  %s12935_s18 = smov (!%p233_p4, %s7206_s18), 1  ;;  %v7402_v32 = vshrl.u32 %v339_v31, 7  ;;  %v7413_v38 = vld [vmem:[%s11713_s2] ss:$0 sm:$0xff]  ;;  %v7170_v46 = vld [vmem:[%s11714_s3 + $0x30] sm:$0xff]   ;;  %s7221_s29 = smov 48  }
   0xf   : > { %5822 = vmatprep.subr.bf16.mxu0 %v11719_v1  ;;  %s5980_s28 = smul.u32 292, %s12935_s18  ;;  %s7222_s10 = smov 64  }
  0x10   : > { %11864 = vst [vmem:[#allocation2_spill] sm:$0xff] %v7402_v32  ;;  %v341_v33 = vadd.s32 8, %v7402_v32  ;;  %v342_v34 = vadd.s32 16, %v7402_v32  ;;  %v487_v36 = vshra.s32 %v7402_v32, 5  ;;  %v560_v41 = vand.u32 31, %v7402_v32  ;;  %s7223_s11 = smov 80  }
  0x11   : > { %s7294_s6 = scalar_lea.vmem %s11711_s0, %s5980_s28  ;;  %v344_v52 = vadd.s32 32, %v7402_v32  ;;  %v345_v63 = vadd.s32 40, %v7402_v32  ;;  %s7224_s23 = smov 96  }
  0x12   : > { %5823 = vmatpush3.bf16.msra.mxu0 %v7136_v2  ;;  %v7141_v7 = vld [vmem:[%s7294_s6] sm:$0xff]   ;;  %v7142_v8 = vld [vmem:[%s7294_s6 + $0x8] sm:$0xff]   ;;  %v7143_v9 = vld [vmem:[%s7294_s6 + $0x10] sm:$0xff]   ;;  %v488_v37 = vshra.s32 %v341_v33, 5  ;;  %v489_v40 = vshra.s32 %v342_v34, 5  ;;  %vm7419_vm2 = vcmp.ge.s32.totalorder %v487_v36, 1 }
  0x13   : > { %5824 = vmatprep.subr.bf16.mxu0 %v11719_v1  ;;  %v7144_v10 = vld [vmem:[%s7294_s6 + $0x18] sm:$0xff]   ;;  %v7145_v11 = vld [vmem:[%s7294_s6 + $0x20] sm:$0xff]   ;;  %v7146_v12 = vld [vmem:[%s7294_s6 + $0x28] sm:$0xff]   ;;  %vm7423_vm3 = vcmp.le.s32.totalorder %v487_v36, 16  ;;  %v562_v48 = vand.u32 31, %v342_v34  ;;  %vm852_vm9 = vcmp.ge.s32.totalorder %v560_v41, 1 }
  0x14   : > { %v7147_v13 = vld [vmem:[%s7294_s6 + $0x30] sm:$0xff]   ;;  %v7148_v14 = vld [vmem:[%s7294_s6 + $0x38] sm:$0xff]   ;;  %v7149_v15 = vld [vmem:[%s7294_s6 + $0x40] sm:$0xff]   ;;  %vm7428_vm4 = vcmp.ge.s32.totalorder %v488_v37, 1  ;;  %vm7432_vm5 = vcmp.le.s32.totalorder %v488_v37, 16  ;;  %vm7436_vm6 = vcmp.ge.s32.totalorder %v489_v40, 1 }
  0x15   : > { %v7150_v16 = vld [vmem:[%s7294_s6 + $0x48] sm:$0xff]   ;;  %v7151_v17 = vld [vmem:[%s7294_s6 + $0x50] sm:$0xff]   ;;  %v7152_v18 = vld [vmem:[%s7294_s6 + $0x58] sm:$0xff]   ;;  %vm7440_vm7 = vcmp.le.s32.totalorder %v489_v40, 16  ;;  %vm1000_vm12 = vcmp.le.s32.totalorder %v562_v48, 16  ;;  %v491_v59 = vshra.s32 %v344_v52, 5 }
  0x16   : > { %5825 = vmatpush3.bf16.msra.mxu0 %v7137_v3  ;;  %v7153_v19 = vld [vmem:[%s7294_s6 + $0x60] sm:$0xff]   ;;  %v7154_v20 = vld [vmem:[%s7294_s6 + $0x68] sm:$0xff]   ;;  %v7155_v21 = vld [vmem:[%s7294_s6 + $0x70] sm:$0xff]   ;;  %v564_v3 = vand.u32 31, %v344_v52  ;;  %v7522_v34 = vadd.s32 64, %v7402_v32  ;;  %v7534_v40 = vrot.slane %v11719_v1, 1 }
  0x17   : > { %5826 = vmatprep.subr.bf16.mxu0 %v11719_v1  ;;  %v7156_v22 = vld [vmem:[%s7294_s6 + $0x78] sm:$0xff]   ;;  %v7157_v23 = vld [vmem:[%s7294_s6 + $0x80] sm:$0xff]   ;;  %v7158_v24 = vld [vmem:[%s7294_s6 + $0x88] sm:$0xff]   ;;  %vm7469_vm15 = vcmp.ge.s32.totalorder %v491_v59, 1  ;;  %v7219_v41 = vmov 0   ;;  %s7225_s25 = smov 112  }
  0x18   : > { %v7159_v25 = vld [vmem:[%s7294_s6 + $0x90] sm:$0xff]   ;;  %v7160_v26 = vld [vmem:[%s7294_s6 + $0x98] sm:$0xff]   ;;  %v7161_v27 = vld [vmem:[%s7294_s6 + $0xa0] sm:$0xff]   ;;  %4568 = vmatprep.subr.bf16.mxu1 %v7219_v41  ;;  %v495_v52 = vshra.s32 %v7522_v34, 5  ;;  %s5521_s12 = sshll.u32 %s12935_s18, 8 }
  0x19   : > { %v7162_v28 = vld [vmem:[%s7294_s6 + $0xa8] sm:$0xff]   ;;  %v7163_v29 = vld [vmem:[%s7294_s6 + $0xb0] sm:$0xff]   ;;  %v7164_v30 = vld [vmem:[%s7294_s6 + $0xb8] sm:$0xff]   ;;  %s10777_s14 = scalar_lea.vmem %s11716_s5, %s5521_s12 }
  0x1a   : > { %5827 = vmatpush3.bf16.msra.mxu0 %v7138_v4  ;;  %v7165_v35 = vld [vmem:[%s7294_s6 + $0xc0] sm:$0xff]   ;;  %v7166_v53 = vld [vmem:[%s7294_s6 + $0xc8] sm:$0xff]   ;;  %vm779_vm8 = vmand %vm7419_vm2, %vm7423_vm3  ;;  %vm7473_vm2 = vcmp.le.s32.totalorder %v491_v59, 16  ;;  %vm2167_vm3 = vcmask 1046528  }
  0x1b   : > { %5828 = vmatprep.subr.bf16.mxu0 %v11719_v1  ;;  %vm780_vm10 = vmand %vm7428_vm4, %vm7432_vm5  ;;  %vm856_vm5 = vcmp.ge.s32.totalorder %v564_v3, 1  ;;  %v7168_v42 = vld [vmem:[%s7294_s6 + $0xd8] sm:$0xff]  }
  0x1c   : > { %vm781_vm11 = vmand %vm7436_vm6, %vm7440_vm7  ;;  %vm11781_vm6 = vcmask 1045504  }
  0x1d   : > { %vm925_vm13 = vmand %vm779_vm8, %vm852_vm9 }
  0x1e   : > { %5829 = vmatpush3.bf16.msra.mxu0 %v7139_v5  ;;  %vm1073_vm14 = vmand %vm781_vm11, %vm1000_vm12 }
  0x1f   : > { %5830 = vmatprep.subr.bf16.mxu0 %v11719_v1  ;;  %vm783_vm4 = vmand %vm7469_vm15, %vm7473_vm2  ;;  %vm7600_vm2 = vcmp.ge.s32.totalorder %v495_v52, 1 }
  0x20   : > { %vm7507_vm7 = vmand %vm783_vm4, %vm856_vm5  ;;  %vm7604_vm4 = vcmp.le.s32.totalorder %v495_v52, 16 }
  0x21   : > { %vm787_vm5 = vmand %vm7600_vm2, %vm7604_vm4 }
  0x22   : > { %5831 = vmatpush3.bf16.msra.mxu0 %v7140_v6  ;;  %v350_v6 = vadd.s32 80, %v7402_v32 }
  0x24   : > { %v570_v37 = vand.u32 31, %v350_v6 }
  0x25   : > { %5833 = vmatmul.mubr.msk.bf16.vlgmr.msra.gmra.mxu0 %vm11759_vm1, %v7141_v7 }
  0x26   : > { %5836 = vmatprep.mubr.msk.bf16.mxu0 %vm7217_vm0, %v11719_v1 }
  0x2d   : > { %5837 = vmatmul.mubr.msk.bf16.gmra.mxu0 %vm11759_vm1, %v7142_v8  ;;  %v346_v8 = vadd.s32 48, %v7402_v32 }
  0x2e   : > { %5840 = vmatprep.mubr.msk.bf16.mxu0 %vm7217_vm0, %v11719_v1 }
  0x2f   : > { %v566_v33 = vand.u32 31, %v346_v8 }
  0x35   : > { %5841 = vmatmul.mubr.msk.bf16.gmra.mxu0 %vm11759_vm1, %v7143_v9  ;;  %v7167_v9 = vld [vmem:[%s7294_s6 + $0xd0] sm:$0xff]  }
  0x36   : > { %5844 = vmatprep.mubr.msk.bf16.mxu0 %vm7217_vm0, %v11719_v1 }
  0x3d   : > { %5845 = vmatmul.mubr.msk.bf16.gmra.mxu0 %vm11759_vm1, %v7144_v10 }
  0x3e   : > { %5848 = vmatprep.mubr.msk.bf16.mxu0 %vm7217_vm0, %v11719_v1 }
  0x45   : > { %5849 = vmatmul.mubr.msk.bf16.gmra.mxu0 %vm11759_vm1, %v7145_v11 }
  0x46   : > { %5852 = vmatprep.mubr.msk.bf16.mxu0 %vm7217_vm0, %v11719_v1 }
  0x4d   : > { %5853 = vmatmul.mubr.msk.bf16.gmra.mxu0 %vm11759_vm1, %v7146_v12 }
  0x4e   : > { %5856 = vmatprep.mubr.msk.bf16.mxu0 %vm7217_vm0, %v11719_v1 }
  0x55   : > { %5857 = vmatmul.mubr.msk.bf16.gmra.mxu0 %vm11759_vm1, %v7147_v13 }
  0x56   : > { %5860 = vmatprep.mubr.msk.bf16.mxu0 %vm7217_vm0, %v11719_v1 }
  0x5d   : > { %5861 = vmatmul.mubr.msk.bf16.gmra.mxu0 %vm11759_vm1, %v7148_v14 }
  0x5e   : > { %5864 = vmatprep.mubr.msk.bf16.mxu0 %vm7217_vm0, %v11719_v1 }
  0x65   : > { %5865 = vmatmul.mubr.msk.bf16.gmra.mxu0 %vm11759_vm1, %v7149_v15  ;;  %v492_v15 = vshra.s32 %v345_v63, 5  ;;  %v7171_v63 = vld [vmem:[%s11714_s3 + $0x28] sm:$0xff]  }
  0x66   : > { %5868 = vmatprep.mubr.msk.bf16.mxu0 %vm7217_vm0, %v11719_v1 }
  0x67   : > { %vm7511_vm8 = vcmp.ge.s32.totalorder %v492_v15, 1  ;;  %vm7515_vm9 = vcmp.le.s32.totalorder %v492_v15, 16  ;;  %v7172_v15 = vld [vmem:[%s11714_s3 + $0x20] sm:$0xff]  }
  0x68   : > { %vm784_vm12 = vmand %vm7511_vm8, %vm7515_vm9 }
  0x6d   : > { %5869 = vmatmul.mubr.msk.bf16.gmra.mxu0 %vm11759_vm1, %v7150_v16 }
  0x6e   : > { %5872 = vmatprep.mubr.msk.bf16.mxu0 %vm7217_vm0, %v11719_v1 }
  0x75   : > { %5873 = vmatmul.mubr.msk.bf16.gmra.mxu0 %vm11759_vm1, %v7151_v17 }
  0x76   : > { %5876 = vmatprep.mubr.msk.bf16.mxu0 %vm7217_vm0, %v11719_v1 }
  0x7d   : > { %5877 = vmatmul.mubr.msk.bf16.gmra.mxu0 %vm11759_vm1, %v7152_v18 }
  0x7e   : > { %5880 = vmatprep.mubr.msk.bf16.mxu0 %vm7217_vm0, %v11719_v1 }
  0x85   : > { %5881 = vmatmul.mubr.msk.bf16.gmra.mxu0 %vm11759_vm1, %v7153_v19 }
  0x86   : > { %5884 = vmatprep.mubr.msk.bf16.mxu0 %vm7217_vm0, %v11719_v1 }
  0x8d   : > { %5885 = vmatmul.mubr.msk.bf16.gmra.mxu0 %vm11759_vm1, %v7154_v20  ;;  %v493_v20 = vshra.s32 %v346_v8, 5 }
  0x8e   : > { %5888 = vmatprep.mubr.msk.bf16.mxu0 %vm7217_vm0, %v11719_v1 }
  0x8f   : > { %vm7529_vm11 = vcmp.le.s32.totalorder %v493_v20, 16 }
  0x95   : > { %5889 = vmatmul.mubr.msk.bf16.gmra.mxu0 %vm11759_vm1, %v7155_v21 }
  0x96   : > { %5892 = vmatprep.mubr.msk.bf16.mxu0 %vm7217_vm0, %v11719_v1 }
  0x9d   : > { %5893 = vmatmul.mubr.msk.bf16.gmra.mxu0 %vm11759_vm1, %v7156_v22 }
  0x9e   : > { %5896 = vmatprep.mubr.msk.bf16.mxu0 %vm7217_vm0, %v11719_v1 }
  0xa5   : > { %5897 = vmatmul.mubr.msk.bf16.gmra.mxu0 %vm11759_vm1, %v7157_v23  ;;  %v7494_v23 = vrot.slane %v11719_v1, 2 }
  0xa6   : > { %5900 = vmatprep.mubr.msk.bf16.mxu0 %vm7217_vm0, %v11719_v1 }
  0xa7   : > { %11881 = vst [vmem:[#allocation3_spill] sm:$0xff] %v7494_v23 }
  0xad   : > { %5901 = vmatmul.mubr.msk.bf16.gmra.mxu0 %vm11759_vm1, %v7158_v24  ;;  %v7169_v24 = vld [vmem:[%s11714_s3 + $0x38] sm:$0xff]  }
  0xae   : > { %5904 = vmatprep.mubr.msk.bf16.mxu0 %vm7217_vm0, %v11719_v1  ;;  %4569 = vmatpush1.bf16.msra.mxu1 %v7169_v24 }
  0xaf   : > { %4570 = vmatprep.subr.bf16.mxu1 %v7219_v41 }
  0xb2   : > { %4571 = vmatpush1.bf16.msra.mxu1 %v7170_v46  ;;  %v7174_v46 = vld [vmem:[%s7294_s6 + $0xe0] sm:$0xff]  }
  0xb3   : > { %4572 = vmatprep.subr.bf16.mxu1 %v7219_v41 }
  0xb5   : > { %5905 = vmatmul.mubr.msk.bf16.gmra.mxu0 %vm11759_vm1, %v7159_v25 }
  0xb6   : > { %5908 = vmatprep.mubr.msk.bf16.mxu0 %vm7217_vm0, %v11719_v1  ;;  %4573 = vmatpush1.bf16.msra.mxu1 %v7171_v63  ;;  %v7176_v63 = vld [vmem:[%s11714_s3 + $0x8] sm:$0xff]  }
  0xb7   : > { %4574 = vmatprep.subr.bf16.mxu1 %v7219_v41 }
  0xba   : > { %4575 = vmatpush1.bf16.msra.mxu1 %v7172_v15 }
  0xbb   : > { %4576 = vmatprep.subr.bf16.mxu1 %v7219_v41 }
  0xbd   : > { %5909 = vmatmul.mubr.msk.bf16.gmra.mxu0 %vm11759_vm1, %v7160_v26 }
  0xbe   : > { %5912 = vmatprep.mubr.msk.bf16.mxu0 %vm7217_vm0, %v11719_v1 }
  0xc5   : > { %5913 = vmatmul.mubr.msk.bf16.gmra.mxu0 %vm11759_vm1, %v7161_v27 }
  0xc6   : > { %5916 = vmatprep.mubr.msk.bf16.mxu0 %vm7217_vm0, %v11719_v1 }
  0xcd   : > { %5917 = vmatmul.mubr.msk.bf16.gmra.mxu0 %vm11759_vm1, %v7162_v28 }
  0xce   : > { %5920 = vmatprep.mubr.msk.bf16.mxu0 %vm7217_vm0, %v11719_v1 }
  0xd5   : > { %5921 = vmatmul.mubr.msk.bf16.gmra.mxu0 %vm11759_vm1, %v7163_v29 }
  0xd6   : > { %5924 = vmatprep.mubr.msk.bf16.mxu0 %vm7217_vm0, %v11719_v1 }
  0xdd   : > { %5925 = vmatmul.mubr.msk.bf16.gmra.mxu0 %vm11759_vm1, %v7164_v30 }
  0xde   : > { %5928 = vmatprep.mubr.msk.bf16.mxu0 %vm7217_vm0, %v11719_v1 }
  0xe5   : > { %v1516_v39 = vpop.f32.mrf.mxu0  ;;  %5929 = vmatmul.mubr.msk.bf16.gmra.mxu0 %vm11759_vm1, %v7165_v35 }
  0xe6   : > { %5932 = vmatprep.mubr.msk.bf16.mxu0 %vm7217_vm0, %v11719_v1  ;;  %v1517_v45 = vadd.f32 %v7413_v38, %v1516_v39 }
  0xe7   : > { %v5834_v44 = vpop.f32.mrf.mxu0 }
  0xe8   : > { %v1810_v56 = vmax.f32 %v1517_v45, 0.0 }
  0xe9   : > { %v1519_v49 = vpop.f32.mrf.mxu0 }
  0xea   : > { %v1520_v54 = vadd.f32 %v7413_v38, %v1519_v49  ;;  %v7466_v0 = vsel %vm925_vm13, %v1810_v56, 0.0 }
  0xeb   : > { %v5835_v55 = vpop.f32.mrf.mxu0  ;;  %v2168_v11 = vrot.slane %v7466_v0, 1  ;;  %v2490_v25 = vrot.slane %v7466_v0, 2 }
  0xec   : > { %v1811_v57 = vmax.f32 %v1520_v54, 0.0 }
  0xed   : > { %v1524_v58 = vpop.f32.mrf.mxu0  ;;  %5933 = vmatmul.mubr.msk.bf16.gmra.mxu0 %vm11759_vm1, %v7166_v53 }
  0xee   : > { %v7460_v60 = vsel %vm780_vm10, %v1811_v57, 0.0  ;;  %v1525_v61 = vadd.f32 %v7413_v38, %v1524_v58  ;;  %5936 = vmatprep.mubr.msk.bf16.mxu0 %vm7217_vm0, %v11719_v1  ;;  %vm7525_vm10 = vcmp.ge.s32.totalorder %v493_v20, 1 }
  0xef   : > { %v5838_v62 = vpop.f32.mrf.mxu0  ;;  %v2169_v4 = vrot.slane %v7460_v60, 1  ;;  %v2491_v16 = vrot.slane %v7460_v60, 2  ;;  %vm785_vm13 = vmand %vm7525_vm10, %vm7529_vm11 }
  0xf0   : > { %v1812_v2 = vmax.f32 %v1525_v61, 0.0 }
  0xf1   : > { %v1527_v5 = vpop.f32.mrf.mxu0  ;;  %v2170_v18 = vsel %vm2167_vm3, %v2168_v11, %v2169_v4  ;;  %v2492_v36 = vsel %vm11781_vm6, %v2490_v25, %v2491_v16 }
  0xf2   : > { %v7479_v10 = vsel %vm1073_vm14, %v1812_v2, 0.0  ;;  %vm7558_vm14 = vcmp.le.s32.totalorder %v566_v33, 16  ;;  %v349_v5 = vadd.s32 72, %v7402_v32 }
  0xf3   : > { %v2171_v12 = vrot.slane %v7479_v10, 1  ;;  %v2493_v13 = vrot.slane %v7479_v10, 2  ;;  %v5839_v14 = vpop.f32.mrf.mxu0  ;;  %vm1077_vm15 = vmand %vm785_vm13, %vm7558_vm14 }
  0xf4   : > { %v496_v20 = vshra.s32 %v349_v5, 5 }
  0xf5   : > { %v1532_v17 = vpop.f32.mrf.mxu0  ;;  %v2172_v19 = vsel %vm2167_vm3, %v2169_v4, %v2171_v12  ;;  %5937 = vmatmul.mubr.msk.bf16.gmra.mxu0 %vm11759_vm1, %v7167_v9  ;;  %v2494_v30 = vsel %vm11781_vm6, %v2491_v16, %v2493_v13  ;;  %v2496_v54 = vsel %vm11781_vm6, %v2493_v13, %v7494_v23  ;;  %v2174_v56 = vsel %vm2167_vm3, %v2171_v12, %v7534_v40 }
  0xf6   : > { %v1533_v21 = vadd.f32 %v7413_v38, %v1532_v17  ;;  %v6015_v22 = vpack.i.bf16 %v2172_v19, %v2170_v18  ;;  %5940 = vmatprep.mubr.msk.bf16.mxu0 %vm7217_vm0, %v11719_v1  ;;  %v6020_v45 = vpack.i.bf16 %v2494_v30, %v2492_v36  ;;  %v568_v4 = vand.u32 31, %v7522_v34 }
  0xf7   : > { %v5842_v27 = vpop.f32.mrf.mxu0  ;;  %vm7643_vm9 = vcmp.ge.s32.totalorder %v496_v20, 1  ;;  %vm7647_vm10 = vcmp.le.s32.totalorder %v496_v20, 16  ;;  %v354_v12 = vadd.s32 112, %v7402_v32 }
  0xf8   : > { %v1814_v31 = vmax.f32 %v1533_v21, 0.0  ;;  %6016 = vrot.lane.b32.xlu0 %v6015_v22, %s7218_s17  ;;  %v497_v21 = vshra.s32 %v350_v6, 5  ;;  %vm788_vm13 = vmand %vm7643_vm9, %vm7647_vm10  ;;  %vm11774_vm9 = vcmask 130048  }
  0xf9   : > { %v1535_v35 = vpop.f32.mrf.mxu0 }
  0xfa   : > { %v7540_v43 = vsel %vm7507_vm7, %v1814_v31, 0.0  ;;  %v1536_v44 = vadd.f32 %v7413_v38, %v1535_v35  ;;  %vm860_vm7 = vcmp.ge.s32.totalorder %v568_v4, 1  ;;  %v7173_v31 = vld [vmem:[%s11714_s3 + $0x18] sm:$0xff]   ;;  %vm7652_vm11 = vcmp.ge.s32.totalorder %v497_v21, 1 }
  0xfb   : > { %v2175_v47 = vrot.slane %v7540_v43, 1  ;;  %v5843_v48 = vpop.f32.mrf.mxu0  ;;  %v2497_v49 = vrot.slane %v7540_v43, 2  ;;  %vm933_vm8 = vmand %vm787_vm5, %vm860_vm7  ;;  %4577 = vmatpush1.bf16.msra.mxu1 %v7173_v31 }
  0xfc   : > { %v1815_v50 = vmax.f32 %v1536_v44, 0.0  ;;  %6021 = vrot.lane.b32.xlu0 %v6020_v45, %s7220_s24  ;;  %v352_v45 = vadd.s32 96, %v7402_v32  ;;  %4578 = vmatprep.subr.bf16.mxu1 %v7219_v41  ;;  %v356_v44 = vadd.s32 128, %v7402_v32 }
  0xfd   : > { %v1540_v53 = vpop.f32.mrf.mxu0  ;;  %v2498_v55 = vsel %vm11781_vm6, %v7494_v23, %v2497_v49  ;;  %v2176_v57 = vsel %vm2167_vm3, %v7534_v40, %v2175_v47  ;;  %5941 = vmatmul.mubr.msk.bf16.gmra.mxu0 %vm11759_vm1, %v7168_v42  ;;  %v574_v42 = vand.u32 31, %v354_v12 }
  0xfe   : > { %v7577_v58 = vsel %vm784_vm12, %v1815_v50, 0.0  ;;  %v1541_v59 = vadd.f32 %v7413_v38, %v1540_v53  ;;  %v6030_v61 = vpack.i.bf16 %v2498_v55, %v2496_v54  ;;  %v6025_v62 = vpack.i.bf16 %v2176_v57, %v2174_v56  ;;  %5944 = vmatprep.mubr.msk.bf16.mxu0 %vm7217_vm0, %v11719_v1 }
  0xff   : > { %v5846_v2 = vpop.f32.mrf.mxu0  ;;  %v2177_v7 = vrot.slane %v7577_v58, 1  ;;  %v2499_v8 = vrot.slane %v7577_v58, 2  ;;  %v6035_v14 = vpack.i.bf16 %v7577_v58, %v7540_v43  ;;  %vm7656_vm12 = vcmp.le.s32.totalorder %v497_v21, 16 }
 0x100   : > { %v1816_v3 = vmax.f32 %v1541_v59, 0.0  ;;  %6031 = vrot.lane.b32.xlu1 %v6030_v61, %s7220_s24  ;;  %6026 = vrot.lane.b32.xlu0 %v6025_v62, %s7218_s17  ;;  %vm789_vm14 = vmand %vm7652_vm11, %vm7656_vm12  ;;  %v499_v57 = vshra.s32 %v352_v45, 5  ;;  %v572_v6 = vand.u32 31, %v352_v45 }
 0x101   : > { %v1543_v9 = vpop.f32.mrf.mxu0  ;;  %v2500_v24 = vsel %vm11781_vm6, %v2497_v49, %v2499_v8  ;;  %v2178_v26 = vsel %vm2167_vm3, %v2175_v47, %v2177_v7  ;;  %v7175_v49 = vld [vmem:[%s11714_s3 + $0x10] sm:$0xff]  }
 0x102   : > { %v7608_v13 = vsel %vm1077_vm15, %v1816_v3, 0.0  ;;  %vm1008_vm15 = vcmp.le.s32.totalorder %v570_v37, 16  ;;  %4579 = vmatpush1.bf16.msra.mxu1 %v7175_v49  ;;  %v353_v3 = vadd.s32 104, %v7402_v32  ;;  %vm7707_vm4 = vcmp.ge.s32.totalorder %v499_v57, 1 }
 0x103   : > { %11898 = vst [vmem:[#allocation4_spill] sm:$0xff] %v7608_v13  ;;  %v2179_v16 = vrot.slane %v7608_v13, 1  ;;  %v2501_v17 = vrot.slane %v7608_v13, 2  ;;  %v5847_v18 = vpop.f32.mrf.mxu0  ;;  %v6040_v19 = vpack.i.bf16 %v11719_v1, %v7608_v13  ;;  %vm1081_vm2 = vmand %vm789_vm14, %vm1008_vm15  ;;  %4580 = vmatprep.subr.bf16.mxu1 %v7219_v41  ;;  %vm7711_vm5 = vcmp.le.s32.totalorder %v499_v57, 16 }
 0x104   : > { %6036 = vrot.lane.b32.xlu0 %v6035_v14, %s7221_s29  ;;  %v7177_v18 = vld [vmem:[%s7294_s6 + $0xe8] sm:$0xff]   ;;  %vm791_vm7 = vmand %vm7707_vm4, %vm7711_vm5  ;;  %vm1012_vm4 = vcmp.le.s32.totalorder %v574_v42, 16 }
 0x105   : > { %6041 = vrot.lane.b32.xlu1 %v6040_v19, %s7221_s29  ;;  %v1548_v22 = vpop.f32.mrf.mxu0  ;;  %v2502_v25 = vsel %vm11781_vm6, %v2499_v8, %v2501_v17  ;;  %v2180_v27 = vsel %vm2167_vm3, %v2177_v7, %v2179_v16  ;;  %5945 = vmatmul.mubr.msk.bf16.gmra.mxu0 %vm11759_vm1, %v7174_v46  ;;  %v2182_v55 = vsel %vm2167_vm3, %v2179_v16, %v7534_v40  ;;  %v7178_v19 = vld [vmem:[%s11714_s3] sm:$0xff]   ;;  %v576_v8 = vand.u32 31, %v356_v44 }
 0x106   : > { %v1549_v28 = vadd.f32 %v7413_v38, %v1548_v22  ;;  %v6050_v29 = vpack.i.bf16 %v2502_v25, %v2500_v24  ;;  %v6045_v30 = vpack.i.bf16 %v2180_v27, %v2178_v26  ;;  %5948 = vmatprep.mubr.msk.bf16.mxu0 %vm7217_vm0, %v11719_v1  ;;  %v2504_v16 = vsel %vm11781_vm6, %v2501_v17, %v7494_v23 }
 0x107   : > { %v5850_v33 = vpop.f32.mrf.mxu0  ;;  %4581 = vmatpush1.bf16.msra.mxu1 %v7176_v63  ;;  %v500_v24 = vshra.s32 %v353_v3, 5  ;;  %v501_v27 = vshra.s32 %v354_v12, 5  ;;  %v360_v46 = vadd.s32 160, %v7402_v32 }
 0x108   : > { %v1818_v34 = vmax.f32 %v1549_v28, 0.0  ;;  %6051 = vrot.lane.b32.xlu0 %v6050_v29, %s7220_s24  ;;  %4582 = vmatprep.subr.bf16.mxu1 %v7219_v41 }
 0x109   : > { %6046 = vrot.lane.b32.xlu1 %v6045_v30, %s7218_s17  ;;  %v1551_v39 = vpop.f32.mrf.mxu0  ;;  %vm7752_vm11 = vcmp.ge.s32.totalorder %v500_v24, 1  ;;  %vm7756_vm12 = vcmp.le.s32.totalorder %v500_v24, 16  ;;  %vm7774_vm14 = vcmp.le.s32.totalorder %v501_v27, 16 }
 0x10a   : > { %v7662_v47 = vsel %vm933_vm8, %v1818_v34, 0.0  ;;  %v1552_v48 = vadd.f32 %v7413_v38, %v1551_v39  ;;  %vm864_vm8 = vcmp.ge.s32.totalorder %v572_v6, 1  ;;  %vm792_vm15 = vmand %vm7752_vm11, %vm7756_vm12  ;;  %v357_v6 = vadd.s32 136, %v7402_v32 }
 0x10b   : > { %11907 = vst [vmem:[#allocation5_spill] sm:$0xff] %v7662_v47  ;;  %v2183_v50 = vrot.slane %v7662_v47, 1  ;;  %v5851_v51 = vpop.f32.mrf.mxu0  ;;  %v2505_v52 = vrot.slane %v7662_v47, 2  ;;  %4583 = vmatpush1.bf16.msra.mxu1 %v7178_v19  ;;  %vm7748_vm10 = vmand %vm791_vm7, %vm864_vm8  ;;  %vm868_vm11 = vcmp.ge.s32.totalorder %v576_v8, 1 }
 0x10c   : > { %v1819_v53 = vmax.f32 %v1552_v48, 0.0  ;;  %6056 = vrot.lane.b32.xlu0 %v6045_v30, %s7222_s10  ;;  %v7179_v30 = vld [vmem:[%s11714_s3 + $0x40] sm:$0xff]   ;;  %4598 = vmatprep.subr.bf16.mxu1 %v7219_v41  ;;  %v504_v24 = vshra.s32 %v357_v6, 5 }
 0x10d   : > { %6061 = vrot.lane.b32.xlu1 %v6050_v29, %s7223_s11  ;;  %v1556_v54 = vpop.f32.mrf.mxu0  ;;  %v2184_v56 = vsel %vm2167_vm3, %v7534_v40, %v2183_v50  ;;  %v2506_v5 = vsel %vm11781_vm6, %v7494_v23, %v2505_v52  ;;  %5949 = vmatmul.mubr.msk.bf16.gmra.mxu0 %vm11759_vm1, %v7177_v18 }
 0x10e   : > { %v7695_v59 = vsel %vm788_vm13, %v1819_v53, 0.0  ;;  %v1557_v61 = vadd.f32 %v7413_v38, %v1556_v54  ;;  %v6075_v62 = vpack.i.bf16 %v2184_v56, %v2182_v55  ;;  %v6070_v21 = vpack.i.bf16 %v2506_v5, %v2504_v16  ;;  %5952 = vmatprep.mubr.msk.bf16.mxu0 %vm7217_vm0, %v11719_v1 }
 0x10f   : > { %11908 = vst [vmem:[#allocation6_spill] sm:$0xff] %v7695_v59  ;;  %v5854_v2 = vpop.f32.mrf.mxu0  ;;  %v2507_v11 = vrot.slane %v7695_v59, 2  ;;  %v6085_v15 = vpack.i.bf16 %v7695_v59, %v7662_v47  ;;  %v2185_v45 = vrot.slane %v7695_v59, 1  ;;  %vm7770_vm13 = vcmp.ge.s32.totalorder %v501_v27, 1  ;;  %4599 = vmatpush2.bf16.msra.mxu1 %v7179_v30  ;;  %v7180_v30 = vld [vmem:[%s7294_s6 + $0xf0] sm:$0xff]  }
 0x110   : > { %v1820_v4 = vmax.f32 %v1557_v61, 0.0  ;;  %6076 = vrot.lane.b32.xlu0 %v6075_v62, %s7222_s10  ;;  %v503_v56 = vshra.s32 %v356_v44, 5  ;;  %v358_v16 = vadd.s32 144, %v7402_v32 }
 0x111   : > { %6066 = vrot.lane.b32.xlu1 %v6075_v62, %s7218_s17  ;;  %v1559_v7 = vpop.f32.mrf.mxu0  ;;  %v7739_v25 = vsel %vm11781_vm6, %v2505_v52, %v2507_v11  ;;  %v2186_v61 = vsel %vm2167_vm3, %v2183_v50, %v2185_v45 }
 0x112   : > { %v7717_v14 = vsel %vm1081_vm2, %v1820_v4, 0.0  ;;  %vm793_vm2 = vmand %vm7770_vm13, %vm7774_vm14  ;;  %vm7812_vm7 = vcmp.ge.s32.totalorder %v503_v56, 1  ;;  %vm7818_vm8 = vcmp.le.s32.totalorder %v503_v56, 16  ;;  %vm7849_vm13 = vcmp.ge.s32.totalorder %v504_v24, 1 }
 0x113   : > { %11913 = vst [vmem:[#allocation7_spill] sm:$0xff] %v7717_v14  ;;  %v5855_v20 = vpop.f32.mrf.mxu0  ;;  %v2509_v22 = vrot.slane %v7717_v14, 2  ;;  %v2187_v31 = vrot.slane %v7717_v14, 1  ;;  %v6100_v39 = vpack.i.bf16 %v11719_v1, %v7717_v14  ;;  %vm1085_vm5 = vmand %vm793_vm2, %vm1012_vm4  ;;  %vm7855_vm14 = vcmp.le.s32.totalorder %v504_v24, 16 }
 0x114   : > { %6086 = vrot.lane.b32.xlu0 %v6085_v15, %s7221_s29  ;;  %vm796_vm4 = vmand %vm7849_vm13, %vm7855_vm14  ;;  %v362_v24 = vadd.s32 176, %v7402_v32 }
 0x115   : > { %6071 = vrot.lane.b32.xlu1 %v6070_v21, %s7220_s24  ;;  %v1564_v17 = vpop.f32.mrf.mxu0  ;;  %v2510_v26 = vsel %vm11781_vm6, %v2507_v11, %v2509_v22  ;;  %v2188_v54 = vsel %vm2167_vm3, %v2185_v45, %v2187_v31  ;;  %v7800_v62 = vsel %vm11781_vm6, %v2509_v22, %v7494_v23  ;;  %5953 = vmatmul.mubr.msk.bf16.gmra.mxu0 %vm11759_vm1, %v7180_v30 }
 0x116   : > { %v1565_v28 = vadd.f32 %v7413_v38, %v1564_v17  ;;  %v4330_v29 = vpack.c.bf16 %v2510_v26, %v7739_v25  ;;  %11925 = vst [vmem:[#allocation9_spill] sm:$0xff] %v7800_v62  ;;  %v6105_v3 = vpack.i.bf16 %v2188_v54, %v2186_v61  ;;  %v6110_v20 = vpack.i.bf16 %v2510_v26, %v7739_v25 }
 0x117   : > { %v5858_v34 = vpop.f32.mrf.mxu0  ;;  %v2190_v17 = vsel %vm2167_vm3, %v2187_v31, %v7534_v40  ;;  %v505_v26 = vshra.s32 %v358_v16, 5  ;;  %5956 = vmatprep.mubr.msk.bf16.mxu0 %vm7217_vm0, %v11719_v1 }
 0x118   : > { %v1822_v37 = vmax.f32 %v1565_v28, 0.0  ;;  %6091 = vrot.lane.b32.xlu0 %v6085_v15, %s7224_s23  ;;  %5423 = vmatprep.mubr.msk.bf16.mxu1 %vm11774_vm9, %v4330_v29  ;;  %v580_v15 = vand.u32 31, %v360_v46 }
 0x119   : > { %6081 = vrot.lane.b32.xlu1 %v6070_v21, %s7223_s11  ;;  %v1567_v41 = vpop.f32.mrf.mxu0  ;;  %vm7868_vm2 = vcmp.le.s32.totalorder %v505_v26, 16 }
 0x11a   : > { %v7780_v49 = vsel %vm7748_vm10, %v1822_v37, 0.0  ;;  %v1568_v51 = vadd.f32 %v7413_v38, %v1567_v41  ;;  %vm795_vm10 = vmand %vm7812_vm7, %vm7818_vm8  ;;  %vm872_vm13 = vcmp.ge.s32.totalorder %v580_v15, 1  ;;  %v509_v37 = vshra.s32 %v362_v24, 5 }
 0x11b   : > { %11924 = vst [vmem:[#allocation8_spill] sm:$0xff] %v7780_v49  ;;  %v2513_v52 = vrot.slane %v7780_v49, 2  ;;  %v5859_v53 = vpop.f32.mrf.mxu0  ;;  %v2191_v7 = vrot.slane %v7780_v49, 1  ;;  %vm941_vm12 = vmand %vm795_vm10, %vm868_vm11 }
 0x11c   : > { %v1823_v55 = vmax.f32 %v1568_v51, 0.0  ;;  %6101 = vrot.lane.b32.xlu0 %v6100_v39, %s7224_s23 }
 0x11d   : > { %6096 = vrot.lane.b32.xlu1 %v6100_v39, %s7221_s29  ;;  %v1572_v57 = vpop.f32.mrf.mxu0  ;;  %v7807_v4 = vsel %vm11781_vm6, %v7494_v23, %v2513_v52  ;;  %v2192_v27 = vsel %vm2167_vm3, %v7534_v40, %v2191_v7  ;;  %v578_v39 = vand.u32 31, %v358_v16  ;;  %v361_v16 = vadd.s32 168, %v7402_v32 }
 0x11e   : > { %v7802_v63 = vsel %vm792_vm15, %v1823_v55, 0.0  ;;  %v1573_v2 = vadd.f32 %v7413_v38, %v1572_v57  ;;  %v6130_v33 = vpack.i.bf16 %v2192_v27, %v2190_v17  ;;  %vm7864_vm15 = vcmp.ge.s32.totalorder %v505_v26, 1 }
 0x11f   : > { %11926 = vst [vmem:[#allocation10_spill] sm:$0xff] %v7802_v63  ;;  %v5862_v5 = vpop.f32.mrf.mxu0  ;;  %v2515_v11 = vrot.slane %v7802_v63, 2  ;;  %vm1016_vm7 = vcmp.le.s32.totalorder %v578_v39, 16  ;;  %v507_v57 = vshra.s32 %v360_v46, 5  ;;  %v6155_v61 = vpack.i.bf16 %v7802_v63, %v7780_v49 }
 0x120   : > { %v1824_v50 = vmax.f32 %v1573_v2, 0.0  ;;  %6106 = vrot.lane.b32.xlu0 %v6105_v3, %s7218_s17  ;;  %v7181_v5 = vld [vmem:[%s7294_s6 + $0xf8] sm:$0xff]  }
 0x121   : > { %6116 = vrot.lane.b32.xlu1 %v6105_v3, %s7225_s25  ;;  %v1575_v12 = vpop.f32.mrf.mxu0  ;;  %v7842_v28 = vsel %vm11781_vm6, %v2513_v52, %v2515_v11  ;;  %v6135_v52 = vpack.i.bf16 %v7807_v4, %v7800_v62  ;;  %5957 = vmatmul.mubr.msk.bf16.gmra.mxu0 %vm11759_vm1, %v7181_v5  ;;  %vm7912_vm10 = vcmp.ge.s32.totalorder %v507_v57, 1  ;;  %vm7916_vm11 = vcmp.le.s32.totalorder %v507_v57, 16 }
 0x122   : > { %v7825_v19 = vsel %vm1085_vm5, %v1824_v50, 0.0  ;;  %11932 = vst [vmem:[#allocation12_spill] sm:$0xff] %v7842_v28  ;;  %vm797_vm5 = vmand %vm7864_vm15, %vm7868_vm2  ;;  %5960 = vmatprep.mubr.msk.bf16.mxu0 %vm7217_vm0, %v11719_v1 }
 0x123   : > { %11931 = vst [vmem:[#allocation11_spill] sm:$0xff] %v7825_v19  ;;  %v2517_v21 = vrot.slane %v7825_v19, 2  ;;  %v5863_v22 = vpop.f32.mrf.mxu0  ;;  %vm7895_vm8 = vmand %vm797_vm5, %vm1016_vm7  ;;  %v2195_v26 = vrot.slane %v7825_v19, 1  ;;  %vm7967_vm5 = vcmp.le.s32.totalorder %v509_v37, 16 }
 0x124   : > { %6111 = vrot.lane.b32.xlu0 %v6110_v20, %s7220_s24 }
 0x125   : > { %6126 = vrot.lane.b32.xlu1 %v6110_v20, %s7223_s11  ;;  %v1580_v25 = vpop.f32.mrf.mxu0  ;;  %v7845_v29 = vsel %vm11781_vm6, %v2515_v11, %v2517_v21  ;;  %v7901_v8 = vsel %vm11781_vm6, %v2517_v21, %v7494_v23 }
 0x126   : > { %11933 = vst [vmem:[#allocation13_spill] sm:$0xff] %v7845_v29  ;;  %v1581_v31 = vadd.f32 %v7413_v38, %v1580_v25  ;;  %11946 = vst [vmem:[#allocation16_spill] sm:$0xff] %v7901_v8  ;;  %v2193_v25 = vrot.slane %v7802_v63, 1  ;;  %v6180_v21 = vpack.i.bf16 %v7845_v29, %v7842_v28 }
 0x127   : > { %v5866_v34 = vpop.f32.mrf.mxu0 }
 0x128   : > { %6121 = vrot.lane.b32.xlu0 %v6105_v3, %s7222_s10  ;;  %v1826_v36 = vmax.f32 %v1581_v31, 0.0  ;;  %v508_v34 = vshra.s32 %v361_v16, 5  ;;  %v2194_v45 = vsel %vm2167_vm3, %v2191_v7, %v2193_v25  ;;  %v2196_v41 = vsel %vm2167_vm3, %v2193_v25, %v2195_v26 }
 0x129   : > { %6131 = vrot.lane.b32.xlu1 %v6130_v33, %s7218_s17  ;;  %v1583_v44 = vpop.f32.mrf.mxu0 }
 0x12a   : > { %v7873_v48 = vsel %vm941_vm12, %v1826_v36, 0.0  ;;  %v1584_v51 = vadd.f32 %v7413_v38, %v1583_v44  ;;  %vm799_vm12 = vmand %vm7912_vm10, %vm7916_vm11  ;;  %vm7954_vm15 = vcmp.ge.s32.totalorder %v508_v34, 1  ;;  %vm7958_vm2 = vcmp.le.s32.totalorder %v508_v34, 16 }
 0x12b   : > { %11942 = vst [vmem:[#allocation14_spill] sm:$0xff] %v7873_v48  ;;  %v2521_v53 = vrot.slane %v7873_v48, 2  ;;  %v5867_v54 = vpop.f32.mrf.mxu0  ;;  %vm945_vm14 = vmand %vm799_vm12, %vm872_vm13 }
 0x12c   : > { %6146 = vrot.lane.b32.xlu0 %v6130_v33, %s7222_s10  ;;  %v1827_v55 = vmax.f32 %v1584_v51, 0.0  ;;  %vm800_vm7 = vmand %vm7954_vm15, %vm7958_vm2 }
 0x12d   : > { %6136 = vrot.lane.b32.xlu1 %v6135_v52, %s7220_s24  ;;  %v1588_v56 = vpop.f32.mrf.mxu0  ;;  %v7905_v9 = vsel %vm11781_vm6, %v7494_v23, %v2521_v53 }
 0x12e   : > { %v7891_v2 = vsel %vm796_vm4, %v1827_v55, 0.0  ;;  %v1589_v3 = vadd.f32 %v7413_v38, %v1588_v56  ;;  %11947 = vst [vmem:[#allocation17_spill] sm:$0xff] %v7905_v9  ;;  %v582_v55 = vand.u32 31, %v362_v24  ;;  %vm7963_vm4 = vcmp.ge.s32.totalorder %v509_v37, 1 }
 0x12f   : > { %11943 = vst [vmem:[#allocation15_spill] sm:$0xff] %v7891_v2  ;;  %v5870_v50 = vpop.f32.mrf.mxu0  ;;  %v2523_v11 = vrot.slane %v7891_v2, 2 }
 0x130   : > { %6156 = vrot.lane.b32.xlu0 %v6155_v61, %s7221_s29  ;;  %v1828_v12 = vmax.f32 %v1589_v3, 0.0  ;;  %v6175_v3 = vpack.i.bf16 %v2196_v41, %v2194_v45  ;;  %vm1020_vm10 = vcmp.le.s32.totalorder %v582_v55, 16 }
 0x131   : > { %6141 = vrot.lane.b32.xlu1 %v6130_v33, %s7225_s25  ;;  %v1591_v20 = vpop.f32.mrf.mxu0  ;;  %v6170_v33 = vpack.i.bf16 %v11719_v1, %v7825_v19  ;;  %v7940_v35 = vsel %vm11781_vm6, %v2521_v53, %v2523_v11  ;;  %v7182_v53 = vld [vmem:[%s7294_s6 + $0x100] sm:$0xff]  }
 0x132   : > { %v7925_v17 = vsel %vm7895_vm8, %v1828_v12, 0.0  ;;  %11953 = vst [vmem:[#allocation19_spill] sm:$0xff] %v7940_v35  ;;  %v2199_v12 = vrot.slane %v7873_v48, 1  ;;  %vm801_vm8 = vmand %vm7963_vm4, %vm7967_vm5  ;;  %5961 = vmatmul.mubr.msk.bf16.gmra.mxu0 %vm11759_vm1, %v7182_v53  ;;  %v7183_v53 = vld [vmem:[%s7294_s6 + $0x108] sm:$0xff]  }
 0x133   : > { %11952 = vst [vmem:[#allocation18_spill] sm:$0xff] %v7925_v17  ;;  %v2525_v30 = vrot.slane %v7925_v17, 2  ;;  %v5871_v31 = vpop.f32.mrf.mxu0  ;;  %vm8000_vm11 = vmand %vm801_vm8, %vm1020_vm10  ;;  %5964 = vmatprep.mubr.msk.bf16.mxu0 %vm7217_vm0, %v11719_v1 }
 0x134   : > { %6161 = vrot.lane.b32.xlu0 %v6155_v61, %s7224_s23  ;;  %v364_v61 = vadd.s32 192, %v7402_v32  ;;  %v2200_v37 = vsel %vm2167_vm3, %v7534_v40, %v2199_v12 }
 0x135   : > { %6151 = vrot.lane.b32.xlu1 %v6135_v52, %s7223_s11  ;;  %v1596_v36 = vpop.f32.mrf.mxu0  ;;  %v7944_v39 = vsel %vm11781_vm6, %v2523_v11, %v2525_v30  ;;  %v7992_v24 = vsel %vm11781_vm6, %v2525_v30, %v7494_v23  ;;  %v2198_v30 = vsel %vm2167_vm3, %v2195_v26, %v7534_v40  ;;  %v366_v26 = vadd.s32 208, %v7402_v32 }
 0x136   : > { %11954 = vst [vmem:[#allocation20_spill] sm:$0xff] %v7944_v39  ;;  %v1597_v44 = vadd.f32 %v7413_v38, %v1596_v36  ;;  %v511_v20 = vshra.s32 %v364_v61, 5  ;;  %11964 = vst [vmem:[#allocation22_spill] sm:$0xff] %v7992_v24  ;;  %v365_v36 = vadd.s32 200, %v7402_v32  ;;  %v584_v45 = vand.u32 31, %v364_v61 }
 0x137   : > { %v5874_v46 = vpop.f32.mrf.mxu0  ;;  %v6200_v56 = vpack.i.bf16 %v2200_v37, %v2198_v30  ;;  %v368_v30 = vadd.s32 224, %v7402_v32 }
 0x138   : > { %6171 = vrot.lane.b32.xlu0 %v6170_v33, %s7224_s23  ;;  %v1830_v52 = vmax.f32 %v1597_v44, 0.0  ;;  %vm8013_vm12 = vcmp.ge.s32.totalorder %v511_v20, 1  ;;  %vm8017_vm13 = vcmp.le.s32.totalorder %v511_v20, 16  ;;  %vm876_vm15 = vcmp.ge.s32.totalorder %v584_v45, 1 }
 0x139   : > { %6166 = vrot.lane.b32.xlu1 %v6170_v33, %s7221_s29  ;;  %v1599_v7 = vpop.f32.mrf.mxu0  ;;  %v6225_v46 = vpack.i.bf16 %v7891_v2, %v7873_v48 }
 0x13a   : > { %v7972_v5 = vsel %vm945_vm14, %v1830_v52, 0.0  ;;  %v1600_v6 = vadd.f32 %v7413_v38, %v1599_v7  ;;  %vm803_vm14 = vmand %vm8013_vm12, %vm8017_vm13  ;;  %5965 = vmatmul.mubr.msk.bf16.gmra.mxu0 %vm11759_vm1, %v7183_v53 }
 0x13b   : > { %11963 = vst [vmem:[#allocation21_spill] sm:$0xff] %v7972_v5  ;;  %v2529_v50 = vrot.slane %v7972_v5, 2  ;;  %v5875_v11 = vpop.f32.mrf.mxu0  ;;  %vm949_vm2 = vmand %vm803_vm14, %vm876_vm15  ;;  %5968 = vmatprep.mubr.msk.bf16.mxu0 %vm7217_vm0, %v11719_v1 }
 0x13c   : > { %6176 = vrot.lane.b32.xlu0 %v6175_v3, %s7218_s17  ;;  %v1831_v15 = vmax.f32 %v1600_v6, 0.0  ;;  %v512_v6 = vshra.s32 %v365_v36, 5 }
 0x13d   : > { %6186 = vrot.lane.b32.xlu1 %v6175_v3, %s7225_s25  ;;  %v1604_v16 = vpop.f32.mrf.mxu0  ;;  %v7996_v25 = vsel %vm11781_vm6, %v7494_v23, %v2529_v50 }
 0x13e   : > { %v1605_v22 = vadd.f32 %v7413_v38, %v1604_v16  ;;  %11965 = vst [vmem:[#allocation23_spill] sm:$0xff] %v7996_v25  ;;  %v7998_v31 = vsel %vm800_vm7, %v1831_v15, 0.0  ;;  %v513_v15 = vshra.s32 %v366_v26, 5  ;;  %vm8049_vm4 = vcmp.ge.s32.totalorder %v512_v6, 1 }
 0x13f   : > { %11966 = vst [vmem:[#allocation24_spill] sm:$0xff] %v7998_v31  ;;  %v5878_v34 = vpop.f32.mrf.mxu0  ;;  %v2531_v55 = vrot.slane %v7998_v31, 2  ;;  %vm8054_vm5 = vcmp.le.s32.totalorder %v512_v6, 16 }
 0x140   : > { %6181 = vrot.lane.b32.xlu0 %v6180_v21, %s7220_s24  ;;  %v1832_v44 = vmax.f32 %v1605_v22, 0.0  ;;  %vm8060_vm7 = vcmp.ge.s32.totalorder %v513_v15, 1  ;;  %vm8064_vm8 = vcmp.le.s32.totalorder %v513_v15, 16  ;;  %vm804_vm10 = vmand %vm8049_vm4, %vm8054_vm5 }
 0x141   : > { %6196 = vrot.lane.b32.xlu1 %v6180_v21, %s7223_s11  ;;  %v1607_v41 = vpop.f32.mrf.mxu0  ;;  %v8042_v20 = vsel %vm11781_vm6, %v2529_v50, %v2531_v55  ;;  %v6205_v21 = vpack.i.bf16 %v7905_v9, %v7901_v8  ;;  %v586_v50 = vand.u32 31, %v366_v26  ;;  %v8355_v8 = vadd.s32 320, %v7402_v32 }
 0x142   : > { %v8028_v7 = vsel %vm8000_vm11, %v1832_v44, 0.0  ;;  %11974 = vst [vmem:[#allocation26_spill] sm:$0xff] %v8042_v20  ;;  %vm805_vm11 = vmand %vm8060_vm7, %vm8064_vm8  ;;  %v7184_v41 = vld [vmem:[%s7294_s6 + $0x110] sm:$0xff]  }
 0x143   : > { %11973 = vst [vmem:[#allocation25_spill] sm:$0xff] %v8028_v7  ;;  %v2533_v57 = vrot.slane %v8028_v7, 2  ;;  %v5879_v61 = vpop.f32.mrf.mxu0  ;;  %vm1024_vm12 = vcmp.le.s32.totalorder %v586_v50, 16  ;;  %v2201_v50 = vrot.slane %v7891_v2, 1  ;;  %5969 = vmatmul.mubr.msk.bf16.gmra.mxu0 %vm11759_vm1, %v7184_v41  ;;  %v2211_v18 = vrot.slane %v8028_v7, 1 }
 0x144   : > { %6191 = vrot.lane.b32.xlu0 %v6175_v3, %s7222_s10  ;;  %vm1097_vm13 = vmand %vm805_vm11, %vm1024_vm12  ;;  %5972 = vmatprep.mubr.msk.bf16.mxu0 %vm7217_vm0, %v11719_v1  ;;  %v8291_v2 = vadd.s32 288, %v7402_v32 }
 0x145   : > { %6201 = vrot.lane.b32.xlu1 %v6200_v56, %s7218_s17  ;;  %v1612_v11 = vpop.f32.mrf.mxu0  ;;  %v8045_v3 = vsel %vm11781_vm6, %v2531_v55, %v2533_v57 }
 0x146   : > { %v1613_v16 = vadd.f32 %v7413_v38, %v1612_v11  ;;  %11975 = vst [vmem:[#allocation27_spill] sm:$0xff] %v8045_v3  ;;  %v515_v11 = vshra.s32 %v368_v30, 5 }
 0x147   : > { %v5882_v22 = vpop.f32.mrf.mxu0 }
 0x148   : > { %6216 = vrot.lane.b32.xlu0 %v6200_v56, %s7222_s10  ;;  %v1834_v34 = vmax.f32 %v1613_v16, 0.0  ;;  %v588_v16 = vand.u32 31, %v368_v30  ;;  %vm8108_vm14 = vcmp.ge.s32.totalorder %v515_v11, 1  ;;  %vm8113_vm15 = vcmp.le.s32.totalorder %v515_v11, 16 }
 0x149   : > { %6206 = vrot.lane.b32.xlu1 %v6205_v21, %s7220_s24  ;;  %v1615_v37 = vpop.f32.mrf.mxu0 }
 0x14a   : > { %v8072_v52 = vsel %vm949_vm2, %v1834_v34, 0.0  ;;  %v1616_v26 = vadd.f32 %v7413_v38, %v1615_v37  ;;  %v8095_v34 = vsel %vm11781_vm6, %v2533_v57, %v7494_v23  ;;  %v369_v37 = vadd.s32 232, %v7402_v32  ;;  %vm807_vm2 = vmand %vm8108_vm14, %vm8113_vm15 }
 0x14b   : > { %11984 = vst [vmem:[#allocation28_spill] sm:$0xff] %v8072_v52  ;;  %v2537_v55 = vrot.slane %v8072_v52, 2  ;;  %v5883_v61 = vpop.f32.mrf.mxu0  ;;  %11986 = vst [vmem:[#allocation30_spill] sm:$0xff] %v8095_v34  ;;  %vm880_vm4 = vcmp.ge.s32.totalorder %v588_v16, 1 }
 0x14c   : > { %6226 = vrot.lane.b32.xlu0 %v6225_v46, %s7221_s29  ;;  %v1835_v6 = vmax.f32 %v1616_v26, 0.0  ;;  %v370_v61 = vadd.s32 240, %v7402_v32  ;;  %v516_v11 = vshra.s32 %v369_v37, 5  ;;  %v8142_v37 = vld [vmem:[%s11713_s2] ss:$0 sm:$0xff]  ;;  %vm953_vm5 = vmand %vm807_vm2, %vm880_vm4 }
 0x14d   : > { %6211 = vrot.lane.b32.xlu1 %v6200_v56, %s7225_s25  ;;  %v1620_v15 = vpop.f32.mrf.mxu0  ;;  %v8099_v36 = vsel %vm11781_vm6, %v7494_v23, %v2537_v55  ;;  %v2203_v56 = vrot.slane %v7925_v17, 1 }
 0x14e   : > { %v8090_v22 = vsel %vm804_vm10, %v1835_v6, 0.0  ;;  %v1621_v33 = vadd.f32 %v7413_v38, %v1620_v15  ;;  %11987 = vst [vmem:[#allocation31_spill] sm:$0xff] %v8099_v36  ;;  %v6240_v38 = vpack.i.bf16 %v11719_v1, %v7925_v17  ;;  %v2202_v15 = vsel %vm2167_vm3, %v2199_v12, %v2201_v50 }
 0x14f   : > { %11985 = vst [vmem:[#allocation29_spill] sm:$0xff] %v8090_v22  ;;  %v5886_v30 = vpop.f32.mrf.mxu0  ;;  %v2539_v57 = vrot.slane %v8090_v22, 2  ;;  %vm8145_vm7 = vcmp.ge.s32.totalorder %v516_v11, 1  ;;  %vm8153_vm8 = vcmp.le.s32.totalorder %v516_v11, 16  ;;  %v6250_v11 = vpack.i.bf16 %v7944_v39, %v7940_v35 }
 0x150   : > { %6231 = vrot.lane.b32.xlu0 %v6225_v46, %s7224_s23  ;;  %v1836_v44 = vmax.f32 %v1621_v33, 0.0  ;;  %v2204_v33 = vsel %vm2167_vm3, %v2201_v50, %v2203_v56  ;;  %vm808_vm12 = vmand %vm8145_vm7, %vm8153_vm8  ;;  %v2206_v51 = vsel %vm2167_vm3, %v2203_v56, %v7534_v40  ;;  %v8352_v9 = vpack.i.bf16 %v8090_v22, %v8072_v52 }
 0x151   : > { %6221 = vrot.lane.b32.xlu1 %v6205_v21, %s7223_s11  ;;  %v1623_v26 = vpop.f32.mrf.mxu0 }
 0x152   : > { %v8120_v6 = vsel %vm1097_vm13, %v1836_v44, 0.0  ;;  %v8133_v44 = vsel %vm11781_vm6, %v2537_v55, %v2539_v57  ;;  %v517_v26 = vshra.s32 %v370_v61, 5 }
 0x153   : > { %11992 = vst [vmem:[#allocation32_spill] sm:$0xff] %v8120_v6  ;;  %v2541_v21 = vrot.slane %v8120_v6, 2  ;;  %v5887_v30 = vpop.f32.mrf.mxu0  ;;  %11993 = vst [vmem:[#allocation33_spill] sm:$0xff] %v8133_v44 }
 0x154   : > { %6241 = vrot.lane.b32.xlu0 %v6240_v38, %s7224_s23  ;;  %v6245_v30 = vpack.i.bf16 %v2204_v33, %v2202_v15  ;;  %v590_v33 = vand.u32 31, %v370_v61  ;;  %vm8158_vm10 = vcmp.ge.s32.totalorder %v517_v26, 1  ;;  %vm8162_vm11 = vcmp.le.s32.totalorder %v517_v26, 16 }
 0x155   : > { %6236 = vrot.lane.b32.xlu1 %v6240_v38, %s7221_s29  ;;  %v1628_v12 = vpop.f32.mrf.mxu0  ;;  %v8137_v50 = vsel %vm11781_vm6, %v2539_v57, %v2541_v21  ;;  %v11717_v57 = vrot.slane %v7972_v5, 1  ;;  %v372_v38 = vadd.s32 256, %v7402_v32  ;;  %vm809_vm13 = vmand %vm8158_vm10, %vm8162_vm11 }
 0x156   : > { %11994 = vst [vmem:[#allocation34_spill] sm:$0xff] %v8137_v50  ;;  %v1629_v45 = vadd.f32 %v8142_v37, %v1628_v12  ;;  %vm1028_vm14 = vcmp.le.s32.totalorder %v590_v33, 16  ;;  %v8198_v33 = vsel %vm11781_vm6, %v2541_v21, %v7494_v23 }
 0x157   : > { %v5890_v16 = vpop.f32.mrf.mxu0  ;;  %v519_v15 = vshra.s32 %v372_v38, 5  ;;  %vm1101_vm15 = vmand %vm809_vm13, %vm1028_vm14  ;;  %12005 = vst [vmem:[#allocation37_spill] sm:$0xff] %v8198_v33  ;;  %vm3940_vm14 = vcmask 261120  }
 0x158   : > { %6246 = vrot.lane.b32.xlu0 %v6245_v30, %s7218_s17  ;;  %v1838_v53 = vmax.f32 %v1629_v45, 0.0 }
 0x159   : > { %6256 = vrot.lane.b32.xlu1 %v6245_v30, %s7225_s25  ;;  %v1631_v12 = vpop.f32.mrf.mxu0  ;;  %vm8207_vm2 = vcmp.ge.s32.totalorder %v519_v15, 1  ;;  %vm8211_vm4 = vcmp.le.s32.totalorder %v519_v15, 16 }
 0x15a   : > { %v8169_v45 = vsel %vm953_vm5, %v1838_v53, 0.0  ;;  %v1632_v61 = vadd.f32 %v8142_v37, %v1631_v12  ;;  %v2208_v53 = vsel %vm2167_vm3, %v7534_v40, %v11717_v57  ;;  %vm811_vm5 = vmand %vm8207_vm2, %vm8211_vm4 }
 0x15b   : > { %12003 = vst [vmem:[#allocation35_spill] sm:$0xff] %v8169_v45  ;;  %v2545_v54 = vrot.slane %v8169_v45, 2  ;;  %v5891_v26 = vpop.f32.mrf.mxu0  ;;  %v2223_v35 = vrot.slane %v8169_v45, 1 }
 0x15c   : > { %6251 = vrot.lane.b32.xlu0 %v6250_v11, %s7220_s24  ;;  %v1839_v12 = vmax.f32 %v1632_v61, 0.0  ;;  %v6270_v26 = vpack.i.bf16 %v2208_v53, %v2206_v51 }
 0x15d   : > { %6266 = vrot.lane.b32.xlu1 %v6250_v11, %s7223_s11  ;;  %v1636_v55 = vpop.f32.mrf.mxu0  ;;  %v8202_v41 = vsel %vm11781_vm6, %v7494_v23, %v2545_v54  ;;  %v592_v11 = vand.u32 31, %v372_v38  ;;  %v6275_v38 = vpack.i.bf16 %v7996_v25, %v7992_v24  ;;  %v6320_v24 = vpack.i.bf16 %v8045_v3, %v8042_v20 }
 0x15e   : > { %v8193_v56 = vsel %vm808_vm12, %v1839_v12, 0.0  ;;  %v1637_v61 = vadd.f32 %v8142_v37, %v1636_v55  ;;  %12006 = vst [vmem:[#allocation38_spill] sm:$0xff] %v8202_v41  ;;  %v523_v20 = vshra.s32 %v8291_v2, 5  ;;  %v8394_v62 = vpack.i.bf16 %v8202_v41, %v8198_v33 }
 0x15f   : > { %12004 = vst [vmem:[#allocation36_spill] sm:$0xff] %v8193_v56  ;;  %v5894_v46 = vpop.f32.mrf.mxu0  ;;  %v2547_v12 = vrot.slane %v8193_v56, 2  ;;  %vm884_vm7 = vcmp.ge.s32.totalorder %v592_v11, 1 }
 0x160   : > { %6261 = vrot.lane.b32.xlu0 %v6245_v30, %s7222_s10  ;;  %v1840_v16 = vmax.f32 %v1637_v61, 0.0  ;;  %v7185_v46 = vld [vmem:[%s7294_s6 + $0x118] sm:$0xff]   ;;  %vm957_vm8 = vmand %vm811_vm5, %vm884_vm7  ;;  %vm8418_vm2 = vcmp.le.s32.totalorder %v523_v20, 16  ;;  %vm11776_vm5 = vcmask 392192  }
 0x161   : > { %6271 = vrot.lane.b32.xlu1 %v6270_v26, %s7218_s17  ;;  %v1639_v55 = vpop.f32.mrf.mxu0  ;;  %5973 = vmatmul.mubr.msk.bf16.gmra.mxu0 %vm11759_vm1, %v7185_v46  ;;  %v7186_v46 = vld [vmem:[%s7294_s6 + $0x120] ss:$0 sps:$4 sm:$0xff]  }
 0x162   : > { %v8215_v53 = vsel %vm1101_vm15, %v1840_v16, 0.0  ;;  %v8231_v16 = vsel %vm11781_vm6, %v2545_v54, %v2547_v12  ;;  %5976 = vmatprep.mubr.msk.bf16.mxu0 %vm7217_vm0, %v11719_v1  ;;  %v12015_v54 = vrot.slane %v7972_v5, 1  ;;  %vm8414_vm15 = vcmp.ge.s32.totalorder %v523_v20, 1 }
 0x163   : > { %12011 = vst [vmem:[#allocation39_spill] sm:$0xff] %v8215_v53  ;;  %v2549_v61 = vrot.slane %v8215_v53, 2  ;;  %v5895_v55 = vpop.f32.mrf.mxu0  ;;  %12012 = vst [vmem:[#allocation40_spill] sm:$0xff] %v8231_v16 }
 0x164   : > { %6286 = vrot.lane.b32.xlu0 %v6270_v26, %s7222_s10  ;;  %v6295_v55 = vpack.i.bf16 %v7998_v31, %v7972_v5 }
 0x165   : > { %6276 = vrot.lane.b32.xlu1 %v6275_v38, %s7220_s24  ;;  %v1644_v15 = vpop.f32.mrf.mxu0  ;;  %v8234_v30 = vsel %vm11781_vm6, %v2547_v12, %v2549_v61 }
 0x166   : > { %12013 = vst [vmem:[#allocation41_spill] sm:$0xff] %v8234_v30  ;;  %v1645_v21 = vadd.f32 %v8142_v37, %v1644_v15  ;;  %v2209_v15 = vrot.slane %v7998_v31, 1 }
 0x167   : > { %v5898_v11 = vpop.f32.mrf.mxu0 }
 0x168   : > { %6296 = vrot.lane.b32.xlu0 %v6295_v55, %s7221_s29  ;;  %v1842_v51 = vmax.f32 %v1645_v21, 0.0  ;;  %v6310_v21 = vpack.i.bf16 %v11719_v1, %v8028_v7  ;;  %v2210_v31 = vsel %vm2167_vm3, %v12015_v54, %v2209_v15  ;;  %v2212_v11 = vsel %vm2167_vm3, %v2209_v15, %v2211_v18 }
 0x169   : > { %6281 = vrot.lane.b32.xlu1 %v6270_v26, %s7225_s25  ;;  %v8245_v12 = vpop.f32.mrf.mxu0  ;;  %5977 = vmatmul.mubr.msk.bf16.gmra.mxu0 %vm11759_vm1, %v7186_v46  ;;  %v373_v46 = vadd.s32 264, %v7402_v32  ;;  %v374_v54 = vadd.s32 272, %v7402_v32  ;;  %v6315_v5 = vpack.i.bf16 %v2212_v11, %v2210_v31  ;;  %v8299_v31 = vadd.s32 296, %v7402_v32 }
 0x16a   : > { %v8248_v27 = vpop.permute.xlu0 %6016  ;;  %v8250_v42 = vsel %vm957_vm8, %v1842_v51, 0.0  ;;  %v8302_v11 = vadd.s32 304, %v7402_v32  ;;  %v1648_v29 = vadd.f32 %v8142_v37, %v8245_v12  ;;  %v8401_v12 = vadd.s32 328, %v7402_v32 }
 0x16b   : > { %12014 = vst [vmem:[#allocation42_spill] sm:$0xff] %v8250_v42  ;;  %v5899_v57 = vpop.f32.mrf.mxu0  ;;  %v12017_v1 = vrot.slane %v8250_v42, 2  ;;  %v520_v48 = vshra.s32 %v373_v46, 5  ;;  %v2219_v46 = vrot.slane %v8120_v6, 1  ;;  %v594_v49 = vand.u32 31, %v374_v54 }
 0x16c   : > { %6301 = vrot.lane.b32.xlu0 %v6295_v55, %s7224_s23  ;;  %v8270_v55 = vsel %vm11781_vm6, %v2549_v61, %v7494_v23  ;;  %v1843_v33 = vmax.f32 %v1648_v29, 0.0  ;;  %v6018_v20 = vunpack.i.l.bf16 %v8248_v27  ;;  %vm11780_vm1 = vcmask 523264  }
 0x16d   : > { %6291 = vrot.lane.b32.xlu1 %v6275_v38, %s7223_s11  ;;  %v8260_v26 = vpop.f32.mrf.mxu0  ;;  %12016 = vst [vmem:[#allocation43_spill] sm:$0xff] %v8270_v55  ;;  %v8276_v38 = vsel %vm11781_vm6, %v7494_v23, %v12017_v1  ;;  %vm8316_vm0 = vcmp.ge.s32.totalorder %v520_v48, 1  ;;  %vm8320_vm10 = vcmp.le.s32.totalorder %v520_v48, 16  ;;  %v8336_v48 = vpack.i.bf16 %v8099_v36, %v8095_v34 }
 0x16e   : > { %v8262_v51 = vpop.permute.xlu0 %6021  ;;  %12018 = vst [vmem:[#allocation44_spill] sm:$0xff] %v8276_v38  ;;  %v2224_v34 = vsel %vm2167_vm3, %v7534_v40, %v2223_v35  ;;  %vm8371_vm13 = vcmp.le.s32.totalorder %v594_v49, 16  ;;  %vm812_vm4 = vmand %vm8316_vm0, %vm8320_vm10  ;;  %vm11775_vm10 = vcmask 654336  }
 0x16f   : > { %v5902_v57 = vpop.f32.mrf.mxu0 }
 0x170   : > { %6311 = vrot.lane.b32.xlu0 %v6310_v21, %s7224_s23  ;;  %v2215_v57 = vrot.slane %v8072_v52, 1  ;;  %v2225_v52 = vrot.slane %v8193_v56, 1 }
 0x171   : > { %6306 = vrot.lane.b32.xlu1 %v6310_v21, %s7221_s29  ;;  %v1655_v15 = vpop.f32.mrf.mxu0  ;;  %v2214_v21 = vsel %vm2167_vm3, %v2211_v18, %v7534_v40 }
 0x172   : > { %v8283_v7 = vpop.permute.xlu1 %6031  ;;  %v8285_v61 = vpop.permute.xlu0 %6026  ;;  %v521_v15 = vshra.s32 %v374_v54, 5  ;;  %v2216_v18 = vsel %vm2167_vm3, %v7534_v40, %v2215_v57 }
 0x173   : > { %v5903_v17 = vpop.f32.mrf.mxu0  ;;  %v6340_v54 = vpack.i.bf16 %v2216_v18, %v2214_v21  ;;  %v6029_v39 = vunpack.i.h.bf16 %v8285_v61 }
 0x174   : > { %6316 = vrot.lane.b32.xlu0 %v6315_v5, %s7218_s17  ;;  %v2217_v17 = vrot.slane %v8090_v22, 1  ;;  %vm8340_vm11 = vcmp.ge.s32.totalorder %v521_v15, 1  ;;  %vm8344_vm12 = vcmp.le.s32.totalorder %v521_v15, 16  ;;  %v2222_v15 = vsel %vm2167_vm3, %v2219_v46, %v7534_v40 }
 0x175   : > { %6326 = vrot.lane.b32.xlu1 %v6315_v5, %s7225_s25  ;;  %v8296_v19 = vpop.f32.mrf.mxu0  ;;  %vm813_vm7 = vmand %vm8340_vm11, %vm8344_vm12 }
 0x176   : > { %v8306_v1 = vpop.permute.xlu0 %6036  ;;  %v2218_v28 = vsel %vm2167_vm3, %v2215_v57, %v2217_v17  ;;  %v2220_v3 = vsel %vm2167_vm3, %v2217_v17, %v2219_v46  ;;  %v12027_v57 = vmov 0.0   ;;  %v8381_v46 = vpack.i.bf16 %v8137_v50, %v8133_v44  ;;  %vm8492_vm0 = vmand %vm813_vm7, %vm8371_vm13 }
 0x177   : > { %v8312_v25 = vpop.permute.xlu1 %6041  ;;  %v5906_v63 = vpop.f32.mrf.mxu0  ;;  %v8360_v17 = vpack.i.bf16 %v12027_v57, %v8120_v6  ;;  %v8369_v22 = vpack.i.bf16 %v2220_v3, %v2218_v28  ;;  %v8387_v28 = vpack.i.bf16 %v2224_v34, %v2222_v15  ;;  %v8398_v44 = vpack.i.bf16 %v8193_v56, %v8169_v45 }
 0x178   : > { %6321 = vrot.lane.b32.xlu0 %v6320_v24, %s7220_s24  ;;  %v2226_v15 = vsel %vm2167_vm3, %v2223_v35, %v2225_v52  ;;  %v8412_v45 = vpack.i.bf16 %v12027_v57, %v8215_v53  ;;  %v6019_v35 = vunpack.i.h.bf16 %v8248_v27  ;;  %v8449_v27 = vpack.i.bf16 %v8234_v30, %v8231_v16 }
 0x179   : > { %6336 = vrot.lane.b32.xlu1 %v6320_v24, %s7223_s11  ;;  %v8328_v47 = vpop.f32.mrf.mxu0  ;;  %v6044_v56 = vunpack.i.h.bf16 %v8312_v25 }
 0x17a   : > { %v8332_v59 = vpop.permute.xlu0 %6051  ;;  %12030 = vst [vmem:[#allocation45_spill] sm:$0xff] %v8412_v45  ;;  %12036 = vst [vmem:[#allocation47_spill] sm:$0xff] %v8449_v27  ;;  %v6023_v45 = vunpack.i.l.bf16 %v8262_v51  ;;  %v1664_v41 = vadd.f32 %v8142_v37, %v8328_v47 }
 0x17b   : > { %v8348_v18 = vpop.permute.xlu1 %6046  ;;  %v5907_v63 = vpop.f32.mrf.mxu0 }
 0x17c   : > { %6331 = vrot.lane.b32.xlu0 %v6315_v5, %s7222_s10  ;;  %v2227_v63 = vrot.slane %v8215_v53, 1 }
 0x17d   : > { %6341 = vrot.lane.b32.xlu1 %v6340_v54, %s7218_s17  ;;  %v8375_v6 = vpop.f32.mrf.mxu0 }
 0x17e   : > { %v8377_v36 = vpop.permute.xlu0 %6056  ;;  %v2230_v50 = vsel %vm2167_vm3, %v2227_v63, %v7534_v40 }
 0x17f   : > { %v8385_v13 = vpop.permute.xlu1 %6061  ;;  %v5910_v49 = vpop.f32.mrf.mxu0 }
 0x180   : > { %6356 = vrot.lane.b32.xlu0 %v6340_v54, %s7222_s10  ;;  %v2228_v49 = vsel %vm2167_vm3, %v2225_v52, %v2227_v63  ;;  %v8432_v52 = vadd.s32 336, %v7402_v32  ;;  %v12038_v63 = vand.u32 31, %v8291_v2  ;;  %v3877_v2 = vsel %vm11774_vm9, %v7460_v60, %v6019_v35 }
 0x181   : > { %6346 = vrot.lane.b32.xlu1 %v8336_v48, %s7220_s24  ;;  %v1671_v23 = vpop.f32.mrf.mxu0  ;;  %v8437_v53 = vpack.i.bf16 %v2228_v49, %v2226_v15  ;;  %v3879_v60 = vsel %vm11774_vm9, 0.0, %v6029_v39  ;;  %v6059_v39 = vunpack.i.h.bf16 %v8377_v36 }
 0x182   : > { %v8408_v3 = vpop.permute.xlu0 %6076  ;;  %v1653_v23 = vadd.f32 %v8142_v37, %v8260_v26  ;;  %v12037_v26 = vrot.slane %v8250_v42, 1  ;;  %vm8457_vm8 = vcmp.ge.s32.totalorder %v12038_v63, 1 }
 0x183   : > { %v8423_v34 = vpop.permute.xlu1 %6066  ;;  %v5911_v29 = vpop.f32.mrf.mxu0  ;;  %12035 = vst [vmem:[#allocation46_spill] sm:$0xff] %v8437_v53  ;;  %v3876_v53 = vsel %vm11774_vm9, %v7466_v0, %v6018_v20 }
 0x184   : > { %6366 = vrot.lane.b32.xlu0 %v8352_v9, %s7221_s29  ;;  %v2232_v15 = vsel %vm2167_vm3, %v7534_v40, %v12037_v26  ;;  %v6024_v29 = vunpack.i.h.bf16 %v8262_v51  ;;  %v8472_v26 = vsel %vm812_vm4, %v1843_v33, 0.0  ;;  %v1844_v30 = vmax.f32 %v1653_v23, 0.0 }
 0x185   : > { %6351 = vrot.lane.b32.xlu1 %v6340_v54, %s7225_s25  ;;  %v8461_v54 = vpop.f32.mrf.mxu0  ;;  %12041 = vst [vmem:[#allocation48_spill] sm:$0xff] %v8472_v26  ;;  %v8496_v14 = vpack.i.bf16 %v2232_v15, %v2230_v50  ;;  %v2233_v0 = vrot.slane %v8472_v26, 1  ;;  %v8504_v33 = vpack.i.bf16 %v8276_v38, %v8270_v55  ;;  %v8508_v24 = vpack.i.bf16 %v8472_v26, %v8250_v42 }
 0x186   : > { %v8465_v16 = vpop.permute.xlu0 %6086  ;;  %v3941_v50 = vsel %vm3940_vm14, %v3876_v53, %v6023_v45  ;;  %v3942_v5 = vsel %vm3940_vm14, %v3877_v2, %v6024_v29  ;;  %v6028_v23 = vunpack.i.l.bf16 %v8285_v61  ;;  %v1661_v15 = vadd.f32 %v8142_v37, %v8296_v19  ;;  %v12089_v53 = vld [vmem:[#allocation9_spill] sm:$0xff] }
 0x187   : > { %v8476_v63 = vpop.permute.xlu1 %6071  ;;  %v5914_v27 = vpop.f32.mrf.mxu0  ;;  %12044 = vst [vmem:[#allocation49_spill] sm:$0xff] %v8496_v14  ;;  %12045 = vst [vmem:[#allocation50_spill] sm:$0xff] %v8504_v33  ;;  %v12048_v45 = vshra.s32 %v8302_v11, 5  ;;  %v6038_v51 = vunpack.i.l.bf16 %v8306_v1  ;;  %v12054_v19 = vshra.s32 %v8299_v31, 5  ;;  %v12090_v61 = vpack.c.bf16 %v7807_v4, %v12089_v53 }
 0x188   : > { %6371 = vrot.lane.b32.xlu0 %v8352_v9, %s7224_s23  ;;  %v2555_v9 = vrot.slane %v8472_v26, 2  ;;  %12046 = vst [vmem:[#allocation51_spill] sm:$0xff] %v8508_v24  ;;  %v8522_v27 = vsel %vm8492_vm0, %v1844_v30, 0.0  ;;  %v6039_v30 = vunpack.i.h.bf16 %v8306_v1  ;;  %vm815_vm0 = vmand %vm8414_vm15, %vm8418_vm2  ;;  %v12060_v1 = vrot.slane %v8250_v42, 1 }
 0x189   : > { %6361 = vrot.lane.b32.xlu1 %v8336_v48, %s7223_s11  ;;  %v8510_v21 = vpop.f32.mrf.mxu0  ;;  %v6034_v48 = vunpack.i.h.bf16 %v8283_v7  ;;  %12047 = vst [vmem:[#allocation52_spill] sm:$0xff] %v8522_v27  ;;  %vm8528_vm12 = vcmp.ge.s32.totalorder %v12048_v45, 1  ;;  %v12051_v29 = vmov %v12048_v45  ;;  %vm8545_vm4 = vcmp.ge.s32.totalorder %v12054_v19, 1  ;;  %v12093_v45 = vld [vmem:[#allocation3_spill] sm:$0xff] }
 0x18a   : > { %v8514_v35 = vpop.permute.xlu0 %6091  ;;  %vm8534_vm13 = vcmp.le.s32.totalorder %v12051_v29, 16  ;;  %v12057_v29 = vmov %v12054_v19  ;;  %v2234_v31 = vsel %vm2167_vm3, %v12060_v1, %v2233_v0  ;;  %v12061_v19 = vrot.slane %v8250_v42, 2 }
 0x18b   : > { %v8518_v20 = vpop.permute.xlu1 %6081  ;;  %v5915_v2 = vpop.f32.mrf.mxu0  ;;  %vm8551_vm7 = vcmp.le.s32.totalorder %v12057_v29, 16  ;;  %v8580_v24 = vpack.i.bf16 %v12027_v57, %v8522_v27  ;;  %v12065_v1 = vand.u32 31, %v8302_v11  ;;  %v4007_v38 = vsel %vm11776_vm5, %v3942_v5, %v6039_v30 }
 0x18c   : > { %6381 = vrot.lane.b32.xlu0 %v8360_v17, %s7224_s23  ;;  %v6058_v2 = vunpack.i.l.bf16 %v8377_v36  ;;  %v8569_v29 = vsel %vm11781_vm6, %v12061_v19, %v2555_v9  ;;  %v6033_v36 = vunpack.i.l.bf16 %v8283_v7  ;;  %v3944_v19 = vsel %vm3940_vm14, %v3879_v60, %v6034_v48 }
 0x18d   : > { %6376 = vrot.lane.b32.xlu1 %v8360_v17, %s7221_s29  ;;  %12062 = vst [vmem:[#allocation53_spill] sm:$0xff] %v8569_v29  ;;  %v8571_v26 = vpop.f32.mrf.mxu0  ;;  %12064 = vst [vmem:[#allocation55_spill] sm:$0xff] %v8580_v24  ;;  %vm8584_vm11 = vcmp.le.s32.totalorder %v12065_v1, 16  ;;  %v3878_v7 = vsel %vm11774_vm9, %v7479_v10, %v6028_v23  ;;  %v1846_v17 = vmax.f32 %v1661_v15, 0.0  ;;  %v6064_v24 = vunpack.i.h.bf16 %v8385_v13 }
 0x18e   : > { %12063 = vst [vmem:[#allocation54_spill] sm:$0xff] %v8571_v26  ;;  %v8574_v55 = vpop.permute.xlu0 %6101  ;;  %v4006_v26 = vsel %vm11776_vm5, %v3941_v50, %v6038_v51  ;;  %v6063_v11 = vunpack.i.l.bf16 %v8385_v13  ;;  %vm961_vm9 = vmand %vm815_vm0, %vm8457_vm8  ;;  %v4072_v10 = vsel %vm11780_vm1, %v4007_v38, %v6059_v39  ;;  %v6094_v51 = vunpack.i.h.bf16 %v8514_v35 }
 0x18f   : > { %v8591_v33 = vpop.permute.xlu1 %6096  ;;  %v5918_v14 = vpop.f32.mrf.mxu0  ;;  %v6093_v50 = vunpack.i.l.bf16 %v8514_v35  ;;  %v3943_v49 = vsel %vm3940_vm14, %v3878_v7, %v6033_v36  ;;  %v12068_v38 = vrot.slane %v8522_v27, 1  ;;  %v6043_v48 = vunpack.i.l.bf16 %v8312_v25  ;;  %vm817_vm0 = vmand %vm8528_vm12, %vm8534_vm13 }
 0x190   : > { %6386 = vrot.lane.b32.xlu0 %v8369_v22, %s7218_s17  ;;  %v4071_v14 = vsel %vm11780_vm1, %v4006_v26, %v6058_v2  ;;  %v8622_v23 = vsel %vm961_vm9, %v1846_v17, 0.0  ;;  %v1669_v15 = vadd.f32 %v8142_v37, %v8375_v6  ;;  %v12070_v60 = vrot.slane %v8522_v27, 2 }
 0x191   : > { %6396 = vrot.lane.b32.xlu1 %v8369_v22, %s7225_s25  ;;  %v1687_v13 = vpop.f32.mrf.mxu0  ;;  %v2236_v26 = vsel %vm2167_vm3, %v2233_v0, %v12068_v38  ;;  %12069 = vst [vmem:[#allocation56_spill] sm:$0xff] %v8622_v23  ;;  %v4137_v47 = vsel %vm11775_vm10, %v4072_v10, %v6064_v24  ;;  %v4136_v2 = vsel %vm11775_vm10, %v4071_v14, %v6063_v11  ;;  %v6049_v25 = vunpack.i.h.bf16 %v8348_v18 }
 0x192   : > { %v8614_v5 = vpop.permute.xlu0 %6106  ;;  %v8629_v30 = vsel %vm11781_vm6, %v2555_v9, %v12070_v60  ;;  %v6048_v17 = vunpack.i.l.bf16 %v8348_v18  ;;  %vm12072_vm9 = vcmask 785408   ;;  %vm12074_vm2 = vcmask 916480  }
 0x193   : > { %v6117_v35 = vpop.permute.xlu1 %6116  ;;  %12071 = vst [vmem:[#allocation57_spill] sm:$0xff] %v8629_v30  ;;  %v5919_v39 = vpop.f32.mrf.mxu0  ;;  %v4200_v6 = vsel %vm12072_vm9, %v4136_v2, %v6093_v50  ;;  %vm12073_vm15 = vmmov %vm12072_vm9  ;;  %v11778_v10 = vrot.slane %v8622_v23, 1  ;;  %v1847_v14 = vmax.f32 %v1664_v41, 0.0  ;;  %v12076_v18 = vshra.s32 %v8355_v8, 5 }
 0x194   : > { %v6119_v36 = vunpack.i.h.bf16 %v6117_v35  ;;  %v6118_v0 = vunpack.i.l.bf16 %v6117_v35  ;;  %6391 = vrot.lane.b32.xlu0 %v8381_v46, %s7220_s24  ;;  %v4201_v9 = vsel %vm12073_vm15, %v4137_v47, %v6094_v51  ;;  %vm12075_vm8 = vmmov %vm12074_vm2  ;;  %v11777_v38 = vrot.slane %v8622_v23, 2 }
 0x195   : > { %6406 = vrot.lane.b32.xlu1 %v8381_v46, %s7223_s11  ;;  %v8641_v1 = vpop.f32.mrf.mxu0  ;;  %vm8654_vm9 = vcmp.ge.s32.totalorder %v12076_v18, 1  ;;  %v12079_v51 = vmov %v12076_v18  ;;  %v8671_v35 = vpack.i.bf16 %v2236_v26, %v2234_v31  ;;  %v4009_v39 = vsel %vm11776_vm5, %v3944_v19, %v6044_v56 }
 0x196   : > { %v8643_v24 = vpop.permute.xlu0 %6111  ;;  %v4265_v7 = vsel %vm12074_vm2, %v4200_v6, %v6118_v0  ;;  %v4266_v11 = vsel %vm12075_vm8, %v4201_v9, %v6119_v36  ;;  %vm8660_vm15 = vcmp.le.s32.totalorder %v12079_v51, 16  ;;  %vm816_vm2 = vmand %vm8545_vm4, %vm8551_vm7  ;;  %v1848_v47 = vmax.f32 %v1669_v15, 0.0 }
 0x197   : > { %v8664_v13 = vpop.permute.xlu1 %6126  ;;  %v4329_v41 = vpack.c.bf16 %v4266_v11, %v4265_v7  ;;  %v5922_v60 = vpop.f32.mrf.mxu0  ;;  %v8678_v2 = vpack.i.bf16 %v8629_v30, %v8569_v29  ;;  %v4008_v36 = vsel %vm11776_vm5, %v3943_v49, %v6043_v48  ;;  %v6054_v0 = vunpack.i.h.bf16 %v8332_v59  ;;  %vm8695_vm5 = vmand %vm817_vm0, %vm8584_vm11 }
 0x198   : > { %6401 = vrot.lane.b32.xlu0 %v8369_v22, %s7222_s10  ;;  %vm12082_vm8 = vcmask 130048   ;;  %v6053_v49 = vunpack.i.l.bf16 %v8332_v59  ;;  %v12092_v56 = vrot.slane %v8522_v27, 1  ;;  %v2240_v59 = vsel %vm2167_vm3, %v7534_v40, %v11778_v10  ;;  %vm819_vm4 = vmand %vm8654_vm9, %vm8660_vm15 }
 0x199   : > { %v3881_v6 = vsel %vm12082_vm8, %v7577_v58, %v6049_v25  ;;  %vm12083_vm10 = vmmov %vm12082_vm8  ;;  %4601 = vmatmul.mubr.bf16.vlgmr.msra.gmra.mxu1 %v4329_v41  ;;  %6411 = vrot.lane.b32.xlu1 %v8387_v28, %s7218_s17  ;;  %v12086_v58 = vand.u32 31, %v8355_v8  ;;  %v8719_v8 = vsel %vm816_vm2, %v1847_v14, 0.0  ;;  %v6079_v4 = vunpack.i.h.bf16 %v8408_v3 }
 0x19a   : > { %v3880_v31 = vsel %vm12083_vm10, %v7540_v43, %v6048_v17  ;;  %v8705_v43 = vpop.f32.mrf.mxu0  ;;  %v8708_v42 = vpop.permute.xlu0 %6121  ;;  %5424 = vmatprep.mubr.msk.bf16.mxu1 %vm12083_vm10, %v12090_v61  ;;  %12091 = vst [vmem:[#allocation9_spill] sm:$0xff] %v8719_v8  ;;  %v2238_v26 = vsel %vm2167_vm3, %v12092_v56, %v7534_v40  ;;  %v12094_v32 = vrot.slane %v8522_v27, 2  ;;  %v8742_v25 = vsel %vm11781_vm6, %v12093_v45, %v11777_v38  ;;  %vm12113_vm0 = vmmov %vm12083_vm10 }
 0x19b   : > { %vm8701_vm8 = vcmp.ge.s32.totalorder %v12086_v58, 1  ;;  %v8730_v48 = vpop.permute.xlu1 %6131  ;;  %12096 = vst [vmem:[#allocation59_spill] sm:$0xff] %v8742_v25  ;;  %v12097_v17 = vshra.s32 %v8401_v12, 5  ;;  %v6078_v18 = vunpack.i.l.bf16 %v8408_v3  ;;  %v8758_v51 = vsel %vm3940_vm14, %v3880_v31, %v6053_v49  ;;  %vm12115_vm2 = vmmov %vm12113_vm0 }
 0x19c   : > { %v8736_v15 = vsel %vm11781_vm6, %v12094_v32, %v12093_v45  ;;  %v5923_v14 = vpop.f32.mrf.mxu0  ;;  %v8761_v41 = vsel %vm3940_vm14, %v3881_v6, %v6054_v0  ;;  %6426 = vrot.lane.b32.xlu0 %v8387_v28, %s7222_s10  ;;  %v8767_v60 = vsel %vm8695_vm5, %v1848_v47, 0.0  ;;  %v2241_v12 = vrot.slane %v8719_v8, 1 }
 0x19d   : > { %12095 = vst [vmem:[#allocation58_spill] sm:$0xff] %v8736_v15  ;;  %vm8746_vm11 = vcmp.ge.s32.totalorder %v12097_v17, 1  ;;  %v12100_v7 = vmov %v12097_v17  ;;  %12103 = vst [vmem:[#allocation60_spill] sm:$0xff] %v8767_v60  ;;  %6416 = vrot.lane.b32.xlu1 %v8394_v62, %s7220_s24  ;;  %v8773_v58 = vpack.i.bf16 %v2240_v59, %v2238_v26  ;;  %v6069_v0 = vunpack.i.h.bf16 %v8423_v34 }
 0x19e   : > { %vm8752_vm12 = vcmp.le.s32.totalorder %v12100_v7, 16  ;;  %v8775_v31 = vpop.f32.mrf.mxu0  ;;  %v6068_v6 = vunpack.i.l.bf16 %v8423_v34  ;;  %v8779_v49 = vpop.permute.xlu0 %6146  ;;  %v8783_v47 = vpack.i.bf16 %v8742_v25, %v8736_v15  ;;  %v8787_v22 = vpack.i.bf16 %v8719_v8, %v8622_v23  ;;  %v12184_v15 = vld [vmem:[#allocation51_spill] sm:$0xff] }
 0x19f   : > { %v12104_v53 = vshra.s32 %v8432_v52, 5  ;;  %v4074_v26 = vsel %vm11780_vm1, %v4009_v39, %v6079_v4  ;;  %v8802_v59 = vpop.permute.xlu1 %6136  ;;  %v1677_v7 = vadd.f32 %v8142_v37, %v8461_v54  ;;  %v6084_v38 = vunpack.i.h.bf16 %v8518_v20  ;;  %vm820_vm9 = vmand %vm8746_vm11, %vm8752_vm12 }
 0x1a0   : > { %v5926_v14 = vpop.f32.mrf.mxu0  ;;  %6436 = vrot.lane.b32.xlu0 %v8398_v44, %s7221_s29  ;;  %v6104_v39 = vunpack.i.h.bf16 %v8574_v55  ;;  %v6103_v4 = vunpack.i.l.bf16 %v8574_v55  ;;  %v1680_v54 = vadd.f32 %v8142_v37, %v8510_v21  ;;  %v3883_v55 = vsel %vm12113_vm0, 0.0, %v6069_v0 }
 0x1a1   : > { %vm8791_vm5 = vcmp.ge.s32.totalorder %v12104_v53, 1  ;;  %v12107_v56 = vmov %v12104_v53  ;;  %v4073_v53 = vsel %vm11780_vm1, %v4008_v36, %v6078_v18  ;;  %6421 = vrot.lane.b32.xlu1 %v8387_v28, %s7225_s25  ;;  %v12114_v14 = vld [vmem:[#allocation4_spill] sm:$0xff]  ;;  %v6089_v17 = vunpack.i.h.bf16 %v8465_v16 }
 0x1a2   : > { %vm8797_vm13 = vcmp.le.s32.totalorder %v12107_v56, 16  ;;  %v6083_v56 = vunpack.i.l.bf16 %v8518_v20  ;;  %v12110_v20 = vand.u32 31, %v8432_v52  ;;  %v1703_v18 = vpop.f32.mrf.mxu0  ;;  %v3882_v28 = vsel %vm12115_vm2, %v12114_v14, %v6068_v6  ;;  %v8833_v3 = vpop.permute.xlu0 %6156  ;;  %vm965_vm2 = vmand %vm819_vm4, %vm8701_vm8 }
 0x1a3   : > { %v6088_v32 = vunpack.i.l.bf16 %v8465_v16  ;;  %v6073_v21 = vunpack.i.l.bf16 %v8476_v63  ;;  %v6142_v10 = vpop.permute.xlu1 %6141  ;;  %v1850_v52 = vmax.f32 %v1677_v7, 0.0  ;;  %vm12116_vm10 = vcmask 654336   ;;  %vm821_vm8 = vmand %vm8791_vm5, %vm8797_vm13 }
 0x1a4   : > { %vm8825_vm7 = vcmp.le.s32.totalorder %v12110_v20, 16  ;;  %v8839_v20 = vpack.i.bf16 %v12027_v57, %v8767_v60  ;;  %v5927_v18 = vpop.f32.mrf.mxu0  ;;  %v4139_v0 = vsel %vm12116_vm10, %v4074_v26, %v6084_v38  ;;  %vm12117_vm0 = vmmov %vm12116_vm10  ;;  %v6144_v6 = vunpack.i.h.bf16 %v6142_v10  ;;  %6441 = vrot.lane.b32.xlu0 %v8398_v44, %s7224_s23 }
 0x1a5   : > { %v4138_v27 = vsel %vm12117_vm0, %v4073_v53, %v6083_v56  ;;  %v6143_v14 = vunpack.i.l.bf16 %v6142_v10  ;;  %6431 = vrot.lane.b32.xlu1 %v8394_v62, %s7223_s11  ;;  %vm12118_vm1 = vcmask 785408   ;;  %v1851_v26 = vmax.f32 %v1680_v54, 0.0  ;;  %vm1113_vm12 = vmand %vm821_vm8, %vm8825_vm7 }
 0x1a6   : > { %v4202_v16 = vsel %vm12118_vm1, %v4138_v27, %v6103_v4  ;;  %vm12119_vm10 = vmmov %vm12118_vm1  ;;  %v8856_v10 = vpop.f32.mrf.mxu0  ;;  %v6074_v44 = vunpack.i.h.bf16 %v8476_v63  ;;  %v8859_v7 = vpop.permute.xlu0 %6161  ;;  %vm12120_vm0 = vcmask 916480   ;;  %v12122_v62 = vrot.slane %v8622_v23, 1  ;;  %v12124_v63 = vld [vmem:[#allocation54_spill] sm:$0xff] }
 0x1a7   : > { %v4203_v38 = vsel %vm12119_vm10, %v4139_v0, %v6104_v39  ;;  %v4267_v46 = vsel %vm12120_vm0, %v4202_v16, %v6143_v14  ;;  %vm12121_vm6 = vmmov %vm12120_vm0  ;;  %v8870_v19 = vpop.permute.xlu1 %6151  ;;  %v8872_v56 = vsel %vm965_vm2, %v1850_v52, 0.0  ;;  %v1685_v39 = vadd.f32 %v8142_v37, %v12124_v63  ;;  %v12128_v16 = vld [vmem:[#allocation45_spill] sm:$0xff] }
 0x1a8   : > { %v4268_v50 = vsel %vm12121_vm6, %v4203_v38, %v6144_v6  ;;  %v2242_v27 = vsel %vm2167_vm3, %v12122_v62, %v2241_v12  ;;  %12123 = vst [vmem:[#allocation4_spill] sm:$0xff] %v8872_v56  ;;  %v12125_v4 = vrot.slane %v8767_v60, 1  ;;  %v5930_v18 = vpop.f32.mrf.mxu0  ;;  %vm12126_vm1 = vcmask 392192   ;;  %6451 = vrot.lane.b32.xlu0 %v12128_v16, %s7224_s23 }
 0x1a9   : > { %v4331_v53 = vpack.c.bf16 %v4268_v50, %v4267_v46  ;;  %v4011_v0 = vsel %vm12126_vm1, %v8761_v41, %v6089_v17  ;;  %vm12127_vm6 = vmmov %vm12126_vm1  ;;  %v3947_v14 = vsel %vm3940_vm14, %v3882_v28, %v6073_v21  ;;  %v12129_v52 = vrot.slane %v8719_v8, 2  ;;  %6446 = vrot.lane.b32.xlu1 %v12128_v16, %s7221_s29  ;;  %v12138_v28 = vld [vmem:[#allocation13_spill] sm:$0xff]  ;;  %v12139_v21 = vld [vmem:[#allocation12_spill] sm:$0xff] }
 0x1aa   : > { %v2244_v54 = vsel %vm2167_vm3, %v2241_v12, %v12125_v4  ;;  %v4010_v6 = vsel %vm12127_vm6, %v8758_v51, %v6088_v32  ;;  %v12130_v37 = vrot.slane %v8622_v23, 2  ;;  %vm12131_vm15 = vcmask 1045504   ;;  %v8915_v17 = vpop.f32.mrf.mxu0  ;;  %v8918_v11 = vpop.permute.xlu0 %6171  ;;  %v12142_v16 = vld [vmem:[#allocation46_spill] sm:$0xff]  ;;  %vm12146_vm5 = vmmov %vm12126_vm1 }
 0x1ab   : > { %v6124_v12 = vunpack.i.h.bf16 %v8708_v42  ;;  %v6123_v46 = vunpack.i.l.bf16 %v8708_v42  ;;  %4609 = vmatmul.mubr.bf16.gmra.mxu1 %v4331_v53  ;;  %v8902_v51 = vsel %vm820_vm9, %v1851_v26, 0.0  ;;  %v12134_v41 = vrot.slane %v8767_v60, 2  ;;  %vm12136_vm4 = vmmov %vm12131_vm15  ;;  %v8930_v18 = vpop.permute.xlu1 %6166 }
 0x1ac   : > { %v8891_v38 = vsel %vm12131_vm15, %v12130_v37, %v12129_v52  ;;  %12133 = vst [vmem:[#allocation45_spill] sm:$0xff] %v8902_v51  ;;  %v12135_v42 = vmov %v12129_v52  ;;  %v3948_v9 = vsel %vm3940_vm14, %v3883_v55, %v6074_v44  ;;  %v12140_v26 = vpack.c.bf16 %v12138_v28, %v12139_v21  ;;  %v5931_v44 = vpop.f32.mrf.mxu0  ;;  %6456 = vrot.lane.b32.xlu0 %v12142_v16, %s7218_s17  ;;  %vm12147_vm13 = vmmov %vm12126_vm1 }
 0x1ad   : > { %12132 = vst [vmem:[#allocation54_spill] sm:$0xff] %v8891_v38  ;;  %v8913_v32 = vsel %vm12136_vm4, %v12135_v42, %v12134_v41  ;;  %vm12141_vm11 = vcmask 130048   ;;  %v11782_v50 = vrot.slane %v8872_v56, 1  ;;  %v8926_v53 = vpack.i.bf16 %v2244_v54, %v2242_v27  ;;  %v12143_v27 = vld [vmem:[#allocation2_spill] sm:$0xff]  ;;  %6466 = vrot.lane.b32.xlu1 %v12142_v16, %s7225_s25  ;;  %vm12158_vm8 = vmmov %vm12136_vm4 }
 0x1ae   : > { %12137 = vst [vmem:[#allocation61_spill] sm:$0xff] %v8913_v32  ;;  %5425 = vmatprep.mubr.msk.bf16.mxu1 %vm12141_vm11, %v12140_v26  ;;  %v6099_v63 = vunpack.i.h.bf16 %v8591_v33  ;;  %v6098_v4 = vunpack.i.l.bf16 %v8591_v33  ;;  %v1852_v55 = vmax.f32 %v1685_v39, 0.0  ;;  %v8945_v33 = vpack.i.bf16 %v8913_v32, %v8891_v38  ;;  %v8956_v61 = vpop.f32.mrf.mxu0  ;;  %v8960_v21 = vpop.permute.xlu0 %6176  ;;  %v12173_v32 = vld [vmem:[#allocation5_spill] sm:$0xff] }
 0x1af   : > { %v8948_v39 = vadd.s32 352, %v12143_v27  ;;  %vm12144_vm2 = vcmask 523264   ;;  %v6164_v42 = vunpack.i.h.bf16 %v8859_v7  ;;  %v6163_v36 = vunpack.i.l.bf16 %v8859_v7 }
 0x1b0   : > { %v4076_v54 = vsel %vm12144_vm2, %v4011_v0, %v6124_v12  ;;  %vm12145_vm10 = vmmov %vm12144_vm2  ;;  %v6129_v34 = vunpack.i.h.bf16 %v8664_v13  ;;  %v6128_v28 = vunpack.i.l.bf16 %v8664_v13  ;;  %v8963_v26 = vsel %vm12146_vm5, %v3948_v9, %v6099_v63  ;;  %v5934_v44 = vpop.f32.mrf.mxu0  ;;  %v12150_v13 = vld [vmem:[#allocation47_spill] sm:$0xff] }
 0x1b1   : > { %v4075_v41 = vsel %vm12145_vm10, %v4010_v6, %v6123_v46  ;;  %v8966_v0 = vsel %vm12147_vm13, %v3947_v14, %v6098_v4  ;;  %v6187_v6 = vpop.permute.xlu1 %6186  ;;  %v8968_v12 = vsel %vm1113_vm12, %v1852_v55, 0.0  ;;  %v12149_v7 = vrot.slane %v8767_v60, 1  ;;  %6461 = vrot.lane.b32.xlu0 %v12150_v13, %s7220_s24  ;;  %6476 = vrot.lane.b32.xlu1 %v12150_v13, %s7223_s11 }
 0x1b2   : > { %12148 = vst [vmem:[#allocation13_spill] sm:$0xff] %v8968_v12  ;;  %v6189_v37 = vunpack.i.h.bf16 %v6187_v6  ;;  %v6188_v52 = vunpack.i.l.bf16 %v6187_v6  ;;  %vm12151_vm7 = vcmask 654336   ;;  %v6109_v14 = vunpack.i.h.bf16 %v8614_v5  ;;  %v1719_v44 = vpop.f32.mrf.mxu0  ;;  %v8985_v62 = vpop.permute.xlu0 %6181 }
 0x1b3   : > { %v2246_v46 = vsel %vm2167_vm3, %v12149_v7, %v7534_v40  ;;  %v4140_v9 = vsel %vm12151_vm7, %v4075_v41, %v6128_v28  ;;  %vm12152_vm0 = vmmov %vm12151_vm7  ;;  %vm12153_vm9 = vcmask 785408   ;;  %v531_v7 = vshra.s32 %v8948_v39, 5 }
 0x1b4   : > { %v4141_v63 = vsel %vm12152_vm0, %v4076_v54, %v6129_v34  ;;  %v4204_v4 = vsel %vm12153_vm9, %v4140_v9, %v6163_v36  ;;  %vm12154_vm1 = vmmov %vm12153_vm9  ;;  %v6108_v6 = vunpack.i.l.bf16 %v8614_v5  ;;  %vm12155_vm6 = vcmask 916480   ;;  %v5935_v9 = vpop.f32.mrf.mxu0 }
 0x1b5   : > { %v4205_v55 = vsel %vm12154_vm1, %v4141_v63, %v6164_v42  ;;  %v4269_v41 = vsel %vm12155_vm6, %v4204_v4, %v6188_v52  ;;  %vm12156_vm15 = vmmov %vm12155_vm6  ;;  %v385_v34 = vadd.s32 360, %v12143_v27  ;;  %v8990_v28 = vpop.permute.xlu1 %6196  ;;  %v2248_v5 = vsel %vm2167_vm3, %v7534_v40, %v11782_v50  ;;  %6471 = vrot.lane.b32.xlu0 %v12142_v16, %s7222_s10  ;;  %v12170_v50 = vld [vmem:[#allocation16_spill] sm:$0xff] }
 0x1b6   : > { %v4270_v54 = vsel %vm12156_vm15, %v4205_v55, %v6189_v37  ;;  %v12157_v52 = vrot.slane %v8767_v60, 2  ;;  %v12160_v63 = vrot.slane %v8872_v56, 2  ;;  %v604_v55 = vand.u32 31, %v8948_v39  ;;  %v12167_v39 = vld [vmem:[#allocation6_spill] sm:$0xff] }
 0x1b7   : > { %v4333_v13 = vpack.c.bf16 %v4270_v54, %v4269_v41  ;;  %v386_v44 = vadd.s32 368, %v12143_v27  ;;  %v6114_v41 = vunpack.i.h.bf16 %v8643_v24  ;;  %v6113_v16 = vunpack.i.l.bf16 %v8643_v24  ;;  %v12162_v54 = vld [vmem:[#allocation49_spill] sm:$0xff]  ;;  %v9031_v24 = vpop.permute.xlu0 %6191 }
 0x1b8   : > { %v9004_v37 = vsel %vm12158_vm8, %v12157_v52, %v12093_v45  ;;  %v9010_v4 = vsel %vm12136_vm4, %v12093_v45, %v12160_v63  ;;  %6481 = vrot.lane.b32.xlu1 %v12162_v54, %s7218_s17  ;;  %vm9018_vm11 = vcmp.ge.s32.totalorder %v531_v7, 1  ;;  %vm9022_vm12 = vcmp.le.s32.totalorder %v531_v7, 16  ;;  %v9026_v63 = vpop.f32.mrf.mxu0  ;;  %v9040_v7 = vld [vmem:[%s11713_s2] ss:$0 sm:$0xff] }
 0x1b9   : > { %12159 = vst [vmem:[#allocation12_spill] sm:$0xff] %v9004_v37  ;;  %12161 = vst [vmem:[#allocation46_spill] sm:$0xff] %v9010_v4  ;;  %4617 = vmatmul.mubr.bf16.gmra.mxu1 %v4333_v13  ;;  %vm12168_vm2 = vcmask 130048   ;;  %v6134_v36 = vunpack.i.h.bf16 %v8730_v48  ;;  %v12169_v13 = vld [vmem:[#allocation17_spill] sm:$0xff]  ;;  %v1693_v23 = vadd.f32 %v9040_v7, %v8641_v1  ;;  %v532_v8 = vshra.s32 %v385_v34, 5  ;;  %6496 = vrot.lane.b32.xlu0 %v12162_v54, %s7222_s10 }
 0x1ba   : > { %v3885_v42 = vsel %vm12168_vm2, %v12167_v39, %v6109_v14  ;;  %v12171_v60 = vpack.c.bf16 %v12169_v13, %v12170_v50  ;;  %vm12172_vm10 = vmmov %vm12168_vm2  ;;  %v9046_v39 = vpop.permute.xlu1 %6201  ;;  %v9048_v38 = vpack.i.bf16 %v2248_v5, %v2246_v46  ;;  %v9052_v50 = vpack.i.bf16 %v8902_v51, %v8872_v56 }
 0x1bb   : > { %vm12174_vm5 = vmmov %vm12168_vm2  ;;  %v9058_v13 = vpack.i.bf16 %v9010_v4, %v9004_v37  ;;  %vm896_vm7 = vcmp.ge.s32.totalorder %v604_v55, 1  ;;  %v533_v1 = vshra.s32 %v386_v44, 5  ;;  %v9068_v46 = vsel %vm3940_vm14, %v3885_v42, %v6114_v41  ;;  %v9076_v4 = vpop.permute.xlu0 %6216 }
 0x1bc   : > { %5426 = vmatprep.mubr.msk.bf16.mxu1 %vm12172_vm10, %v12171_v60  ;;  %v3884_v14 = vsel %vm12174_vm5, %v12173_v32, %v6108_v6  ;;  %12175 = vst [vmem:[#allocation2_spill] sm:$0xff] %v9052_v50  ;;  %v5938_v60 = vpop.f32.mrf.mxu0  ;;  %vm823_vm13 = vmand %vm9018_vm11, %vm9022_vm12  ;;  %v12177_v6 = vld [vmem:[#allocation50_spill] sm:$0xff]  ;;  %v1854_v37 = vmax.f32 %v1693_v23, 0.0  ;;  %vm9078_vm9 = vcmp.ge.s32.totalorder %v532_v8, 1  ;;  %v6148_v42 = vunpack.i.l.bf16 %v8779_v49 }
 0x1bd   : > { %12176 = vst [vmem:[#allocation47_spill] sm:$0xff] %v9058_v13  ;;  %v9065_v32 = vsel %vm3940_vm14, %v3884_v14, %v6113_v16  ;;  %6486 = vrot.lane.b32.xlu1 %v12177_v6, %s7220_s24  ;;  %vm12179_vm0 = vmmov %vm12168_vm2  ;;  %v6133_v60 = vunpack.i.l.bf16 %v8730_v48  ;;  %v6149_v16 = vunpack.i.h.bf16 %v8779_v49  ;;  %v1696_v23 = vadd.f32 %v9040_v7, %v8705_v43  ;;  %6506 = vrot.lane.b32.xlu0 %v12184_v15, %s7221_s29 }
 0x1be   : > { %v9072_v34 = vpop.f32.mrf.mxu0  ;;  %v3887_v5 = vsel %vm12179_vm0, 0.0, %v6134_v36  ;;  %v9084_v41 = vpop.permute.xlu1 %6206  ;;  %vm9091_vm1 = vmand %vm823_vm13, %vm896_vm7  ;;  %v606_v36 = vand.u32 31, %v386_v44  ;;  %v6154_v25 = vunpack.i.h.bf16 %v8870_v19  ;;  %v6153_v49 = vunpack.i.l.bf16 %v8870_v19 }
 0x1bf   : > { %12178 = vst [vmem:[#allocation49_spill] sm:$0xff] %v9072_v34  ;;  %vm9101_vm6 = vcmp.ge.s32.totalorder %v533_v1, 1  ;;  %vm9105_vm15 = vcmp.le.s32.totalorder %v533_v1, 16  ;;  %v6174_v30 = vunpack.i.h.bf16 %v8918_v11  ;;  %v6173_v43 = vunpack.i.l.bf16 %v8918_v11  ;;  %v12192_v1 = vld [vmem:[#allocation7_spill] sm:$0xff]  ;;  %vm12193_vm4 = vmmov %vm12179_vm0  ;;  %v9125_v11 = vpop.permute.xlu0 %6226 }
 0x1c0   : > { %v5939_v14 = vpop.f32.mrf.mxu0  ;;  %vm9113_vm8 = vcmp.le.s32.totalorder %v532_v8, 16  ;;  %v1701_v44 = vadd.f32 %v9040_v7, %v8775_v31  ;;  %v3886_v29 = vsel %vm12193_vm4, %v12192_v1, %v6133_v60  ;;  %v6139_v50 = vunpack.i.h.bf16 %v8802_v59  ;;  %vm825_vm2 = vmand %vm9101_vm6, %vm9105_vm15 }
 0x1c1   : > { %6491 = vrot.lane.b32.xlu1 %v12162_v54, %s7225_s25  ;;  %v6138_v34 = vunpack.i.l.bf16 %v8802_v59  ;;  %v9129_v8 = vsel %vm9091_vm1, %v1854_v37, 0.0  ;;  %vm12195_vm11 = vcmask 523264   ;;  %v1855_v13 = vmax.f32 %v1696_v23, 0.0  ;;  %6511 = vrot.lane.b32.xlu0 %v12184_v15, %s7224_s23  ;;  %vm824_vm7 = vmand %vm9078_vm9, %vm9113_vm8 }
 0x1c2   : > { %v9119_v14 = vpop.f32.mrf.mxu0  ;;  %12194 = vst [vmem:[#allocation17_spill] sm:$0xff] %v9129_v8  ;;  %v4078_v54 = vsel %vm12195_vm11, %v8963_v26, %v6149_v16  ;;  %vm12196_vm12 = vmmov %vm12195_vm11  ;;  %vm9139_vm10 = vcmp.le.s32.totalorder %v606_v36, 16  ;;  %vm12199_vm5 = vcmask 654336   ;;  %vm12201_vm0 = vcmask 785408  }
 0x1c3   : > { %12191 = vst [vmem:[#allocation6_spill] sm:$0xff] %v9119_v14  ;;  %v4077_v31 = vsel %vm12196_vm12, %v8966_v0, %v6148_v42  ;;  %v6212_v14 = vpop.permute.xlu1 %6211  ;;  %v4143_v37 = vsel %vm12199_vm5, %v4078_v54, %v6154_v25  ;;  %vm12200_vm13 = vmmov %vm12199_vm5  ;;  %v11804_v25 = vrot.slane %v9129_v8, 1  ;;  %v1856_v23 = vmax.f32 %v1701_v44, 0.0 }
 0x1c4   : > { %v5942_v60 = vpop.f32.mrf.mxu0  ;;  %v4142_v48 = vsel %vm12200_vm13, %v4077_v31, %v6153_v49  ;;  %v6214_v26 = vunpack.i.h.bf16 %v6212_v14  ;;  %v6213_v16 = vunpack.i.l.bf16 %v6212_v14  ;;  %vm12202_vm1 = vmmov %vm12201_vm0  ;;  %v6159_v49 = vunpack.i.h.bf16 %v8833_v3  ;;  %v6232_v14 = vpop.permute.xlu0 %6231 }
 0x1c5   : > { %6501 = vrot.lane.b32.xlu1 %v12177_v6, %s7223_s11  ;;  %v4206_v0 = vsel %vm12201_vm0, %v4142_v48, %v6173_v43  ;;  %v4207_v42 = vsel %vm12202_vm1, %v4143_v37, %v6174_v30  ;;  %v6158_v15 = vunpack.i.l.bf16 %v8833_v3  ;;  %vm12203_vm4 = vcmask 916480   ;;  %vm9167_vm12 = vmand %vm825_vm2, %vm9139_vm10  ;;  %v12208_v60 = vld [vmem:[#allocation55_spill] sm:$0xff] }
 0x1c6   : > { %v1735_v36 = vpop.f32.mrf.mxu0  ;;  %v4271_v1 = vsel %vm12203_vm4, %v4206_v0, %v6213_v16  ;;  %vm12204_vm11 = vmmov %vm12203_vm4  ;;  %v11807_v3 = vrot.slane %v9129_v8, 2  ;;  %v9179_v44 = vsel %vm824_vm7, %v1855_v13, 0.0  ;;  %v9183_v9 = vpack.i.bf16 %v12027_v57, %v8968_v12  ;;  %6521 = vrot.lane.b32.xlu0 %v12208_v60, %s7224_s23 }
 0x1c7   : > { %v4272_v54 = vsel %vm12204_vm11, %v4207_v42, %v6214_v26  ;;  %v9171_v6 = vpop.permute.xlu1 %6221  ;;  %12207 = vst [vmem:[#allocation16_spill] sm:$0xff] %v9179_v44  ;;  %v3951_v31 = vsel %vm3940_vm14, %v3886_v29, %v6138_v34  ;;  %v3952_v59 = vsel %vm3940_vm14, %v3887_v5, %v6139_v50  ;;  %v12209_v37 = vrot.slane %v8902_v51, 1  ;;  %v12216_v42 = vld [vmem:[#allocation20_spill] sm:$0xff]  ;;  %v12217_v36 = vld [vmem:[#allocation19_spill] sm:$0xff] }
 0x1c8   : > { %v4335_v43 = vpack.c.bf16 %v4272_v54, %v4271_v1  ;;  %v5943_v52 = vpop.f32.mrf.mxu0  ;;  %v12210_v55 = vrot.slane %v8872_v56, 1  ;;  %v9195_v13 = vadd.s32 384, %v12143_v27  ;;  %v6194_v48 = vunpack.i.h.bf16 %v9031_v24  ;;  %v9214_v0 = vpop.permute.xlu0 %6241 }
 0x1c9   : > { %v6193_v26 = vunpack.i.l.bf16 %v9031_v24  ;;  %6516 = vrot.lane.b32.xlu1 %v12208_v60, %s7221_s29  ;;  %v9203_v29 = vsel %vm9167_vm12, %v1856_v23, 0.0  ;;  %v12212_v50 = vrot.slane %v8968_v12, 1  ;;  %v12213_v34 = vmov %v12209_v37 }
 0x1ca   : > { %v2250_v19 = vsel %vm2167_vm3, %v12210_v55, %v12209_v37  ;;  %4625 = vmatmul.mubr.bf16.gmra.mxu1 %v4335_v43  ;;  %12211 = vst [vmem:[#allocation5_spill] sm:$0xff] %v9203_v29  ;;  %vm12214_vm9 = vcmask 392192   ;;  %v12218_v1 = vpack.c.bf16 %v12216_v42, %v12217_v36  ;;  %vm12219_vm15 = vcmask 130048   ;;  %6526 = vrot.lane.b32.xlu0 %v8671_v35, %s7218_s17 }
 0x1cb   : > { %v2252_v5 = vsel %vm2167_vm3, %v12213_v34, %v12212_v50  ;;  %v4015_v16 = vsel %vm12214_vm9, %v9068_v46, %v6159_v49  ;;  %vm12215_vm6 = vmmov %vm12214_vm9  ;;  %v6169_v54 = vunpack.i.h.bf16 %v8930_v18  ;;  %v6168_v30 = vunpack.i.l.bf16 %v8930_v18  ;;  %v9223_v43 = vpop.permute.xlu1 %6236 }
 0x1cc   : > { %v4014_v24 = vsel %vm12215_vm6, %v9065_v32, %v6158_v15  ;;  %5427 = vmatprep.mubr.msk.bf16.mxu1 %vm12219_vm15, %v12218_v1  ;;  %v12220_v49 = vrot.slane %v8902_v51, 2  ;;  %v12221_v32 = vrot.slane %v8872_v56, 2  ;;  %vm12222_vm8 = vcmask 1045504   ;;  %vm12230_vm13 = vmmov %vm12215_vm6 }
 0x1cd   : > { %v9237_v37 = vpack.i.bf16 %v2252_v5, %v2250_v19  ;;  %v535_v18 = vshra.s32 %v9195_v13, 5  ;;  %vm12224_vm2 = vcmask 523264   ;;  %v6234_v34 = vunpack.i.h.bf16 %v6232_v14  ;;  %6536 = vrot.lane.b32.xlu1 %v8671_v35, %s7225_s25  ;;  %vm12228_vm5 = vmmov %vm12222_vm8 }
 0x1ce   : > { %v9231_v15 = vsel %vm12222_vm8, %v12221_v32, %v12220_v49  ;;  %v4080_v55 = vsel %vm12224_vm2, %v4015_v16, %v6194_v48  ;;  %vm12225_vm10 = vmmov %vm12224_vm2  ;;  %v6233_v42 = vunpack.i.l.bf16 %v6232_v14  ;;  %v6199_v36 = vunpack.i.h.bf16 %v8990_v28  ;;  %v9246_v49 = vpop.permute.xlu0 %6246  ;;  %6531 = vrot.lane.b32.xlu0 %v8678_v2, %s7220_s24 }
 0x1cf   : > { %12223 = vst [vmem:[#allocation50_spill] sm:$0xff] %v9231_v15  ;;  %v4079_v50 = vsel %vm12225_vm10, %v4014_v24, %v6193_v26  ;;  %v6198_v1 = vunpack.i.l.bf16 %v8990_v28  ;;  %v12226_v19 = vrot.slane %v8968_v12, 2  ;;  %v12227_v5 = vrot.slane %v8902_v51, 2  ;;  %vm12231_vm7 = vmmov %vm12215_vm6  ;;  %v6257_v16 = vpop.permute.xlu1 %6256  ;;  %v9263_v24 = vpop.f32.mrf.mxu0 }
 0x1d0   : > { %v9256_v48 = vsel %vm12230_vm13, %v3952_v59, %v6169_v54  ;;  %v9259_v14 = vsel %vm12231_vm7, %v3951_v31, %v6168_v30  ;;  %v6179_v26 = vunpack.i.h.bf16 %v8960_v21  ;;  %v608_v28 = vand.u32 31, %v9195_v13  ;;  %vm12246_vm10 = vmmov %vm12228_vm5 }
 0x1d1   : > { %v9253_v32 = vsel %vm12228_vm5, %v12227_v5, %v12226_v19  ;;  %v6259_v60 = vunpack.i.h.bf16 %v6257_v16  ;;  %v6258_v46 = vunpack.i.l.bf16 %v6257_v16  ;;  %vm12232_vm0 = vcmask 654336   ;;  %6546 = vrot.lane.b32.xlu1 %v8678_v2, %s7223_s11  ;;  %v5946_v5 = vpop.f32.mrf.mxu0 }
 0x1d2   : > { %12229 = vst [vmem:[#allocation51_spill] sm:$0xff] %v9253_v32  ;;  %v4144_v19 = vsel %vm12232_vm0, %v4079_v50, %v6198_v1  ;;  %vm12233_vm1 = vmmov %vm12232_vm0  ;;  %vm12234_vm4 = vcmask 785408   ;;  %vm9273_vm12 = vcmp.ge.s32.totalorder %v535_v18, 1  ;;  %vm9277_vm9 = vcmp.le.s32.totalorder %v535_v18, 16  ;;  %v9282_v1 = vpop.permute.xlu0 %6251  ;;  %6541 = vrot.lane.b32.xlu0 %v8671_v35, %s7222_s10 }
 0x1d3   : > { %v4145_v59 = vsel %vm12233_vm1, %v4080_v55, %v6199_v36  ;;  %v4208_v31 = vsel %vm12234_vm4, %v4144_v19, %v6233_v42  ;;  %vm12235_vm11 = vmmov %vm12234_vm4  ;;  %v6178_v50 = vunpack.i.l.bf16 %v8960_v21  ;;  %vm12240_vm6 = vcmask 916480   ;;  %v9288_v42 = vpop.permute.xlu1 %6266 }
 0x1d4   : > { %v4209_v54 = vsel %vm12235_vm11, %v4145_v59, %v6234_v34  ;;  %v4273_v55 = vsel %vm12240_vm6, %v4208_v31, %v6258_v46  ;;  %vm12241_vm15 = vmmov %vm12240_vm6  ;;  %v1709_v34 = vadd.f32 %v9040_v7, %v8856_v10  ;;  %v9292_v18 = vpack.i.bf16 %v9253_v32, %v9231_v15  ;;  %v9299_v46 = vpop.f32.mrf.mxu0 }
 0x1d5   : > { %v4274_v2 = vsel %vm12241_vm15, %v4209_v54, %v6259_v60  ;;  %v12242_v16 = vrot.slane %v8968_v12, 1  ;;  %v390_v19 = vadd.s32 400, %v12143_v27  ;;  %v6184_v60 = vunpack.i.h.bf16 %v8985_v62  ;;  %vm827_vm8 = vmand %vm9273_vm12, %vm9277_vm9  ;;  %6551 = vrot.lane.b32.xlu1 %v8773_v58, %s7218_s17 }
 0x1d6   : > { %v4337_v36 = vpack.c.bf16 %v4274_v2, %v4273_v55  ;;  %v6183_v10 = vunpack.i.l.bf16 %v8985_v62  ;;  %v2256_v59 = vsel %vm2167_vm3, %v7534_v40, %v11804_v25  ;;  %vm9313_vm2 = vcmp.ge.s32.totalorder %v608_v28, 1  ;;  %v5947_v5 = vpop.f32.mrf.mxu0  ;;  %v12249_v55 = vld [vmem:[#allocation10_spill] sm:$0xff]  ;;  %v9336_v52 = vpop.permute.xlu0 %6261  ;;  %v12253_v25 = vld [vmem:[#allocation23_spill] sm:$0xff]  ;;  %6566 = vrot.lane.b32.xlu0 %v8773_v58, %s7222_s10 }
 0x1d7   : > { %v2254_v21 = vsel %vm2167_vm3, %v12242_v16, %v7534_v40  ;;  %v12245_v35 = vrot.slane %v8968_v12, 2  ;;  %v9329_v54 = vsel %vm12228_vm5, %v12093_v45, %v11807_v3  ;;  %v389_v28 = vadd.s32 392, %v12143_v27  ;;  %v9342_v56 = vpop.permute.xlu1 %6271  ;;  %vm973_vm1 = vmand %vm827_vm8, %vm9313_vm2 }
 0x1d8   : > { %4633 = vmatmul.mubr.bf16.gmra.mxu1 %v4337_v36  ;;  %12248 = vst [vmem:[#allocation55_spill] sm:$0xff] %v9329_v54  ;;  %vm12250_vm13 = vcmask 130048   ;;  %v12251_v36 = vld [vmem:[#allocation8_spill] sm:$0xff]  ;;  %v1858_v12 = vmax.f32 %v1709_v34, 0.0  ;;  %v9344_v3 = vpack.i.bf16 %v2256_v59, %v2254_v21  ;;  %v9348_v5 = vpack.i.bf16 %v9179_v44, %v9129_v8  ;;  %v9369_v34 = vpop.f32.mrf.mxu0 }
 0x1d9   : > { %v9323_v62 = vsel %vm12246_vm10, %v12245_v35, %v12093_v45  ;;  %v3889_v2 = vsel %vm12250_vm13, %v12249_v55, %v6179_v26  ;;  %vm12252_vm7 = vmmov %vm12250_vm13  ;;  %v12254_v35 = vld [vmem:[#allocation22_spill] sm:$0xff]  ;;  %12258 = vst [vmem:[#allocation19_spill] sm:$0xff] %v9369_v34  ;;  %v6204_v13 = vunpack.i.h.bf16 %v9046_v39  ;;  %v6203_v30 = vunpack.i.l.bf16 %v9046_v39  ;;  %6556 = vrot.lane.b32.xlu1 %v8783_v47, %s7220_s24 }
 0x1da   : > { %12247 = vst [vmem:[#allocation7_spill] sm:$0xff] %v9323_v62  ;;  %v3888_v16 = vsel %vm12252_vm7, %v12251_v36, %v6178_v50  ;;  %v12255_v23 = vpack.c.bf16 %v12253_v25, %v12254_v35  ;;  %vm12256_vm0 = vmmov %vm12252_vm7  ;;  %v537_v25 = vshra.s32 %v390_v19, 5  ;;  %v9361_v26 = vsel %vm3940_vm14, %v3889_v2, %v6184_v60  ;;  %v5950_v2 = vpop.f32.mrf.mxu0  ;;  %6576 = vrot.lane.b32.xlu0 %v8787_v22, %s7221_s29 }
 0x1db   : > { %12257 = vst [vmem:[#allocation20_spill] sm:$0xff] %v9348_v5  ;;  %v9367_v50 = vpack.i.bf16 %v9329_v54, %v9323_v62  ;;  %v536_v21 = vshra.s32 %v389_v28, 5  ;;  %v6219_v60 = vunpack.i.h.bf16 %v9076_v4  ;;  %v9378_v59 = vsel %vm973_vm1, %v1858_v12, 0.0  ;;  %vm12269_vm6 = vmmov %vm12256_vm0  ;;  %v12270_v54 = vld [vmem:[#allocation11_spill] sm:$0xff] }
 0x1dc   : > { %5428 = vmatprep.mubr.msk.bf16.mxu1 %vm12256_vm0, %v12255_v23  ;;  %v9358_v23 = vsel %vm3940_vm14, %v3888_v16, %v6183_v10  ;;  %v9376_v10 = vpop.permute.xlu0 %6286  ;;  %12259 = vst [vmem:[#allocation10_spill] sm:$0xff] %v9378_v59  ;;  %v1712_v31 = vadd.f32 %v9040_v7, %v8915_v17  ;;  %v610_v55 = vand.u32 31, %v390_v19  ;;  %v6218_v36 = vunpack.i.l.bf16 %v9076_v4  ;;  %v9383_v16 = vpop.permute.xlu1 %6276  ;;  %vm12271_vm15 = vmmov %vm12256_vm0 }
 0x1dd   : > { %vm9385_vm4 = vcmp.ge.s32.totalorder %v537_v25, 1  ;;  %vm9389_vm11 = vcmp.le.s32.totalorder %v537_v25, 16  ;;  %v1717_v12 = vadd.f32 %v9040_v7, %v8956_v61  ;;  %v6224_v35 = vunpack.i.h.bf16 %v9171_v6  ;;  %v1751_v19 = vpop.f32.mrf.mxu0  ;;  %6561 = vrot.lane.b32.xlu1 %v8773_v58, %s7225_s25 }
 0x1de   : > { %v6223_v17 = vunpack.i.l.bf16 %v9171_v6  ;;  %v9401_v4 = vpack.i.bf16 %v12027_v57, %v9203_v29  ;;  %v6244_v25 = vunpack.i.h.bf16 %v9214_v0  ;;  %v6243_v2 = vunpack.i.l.bf16 %v9214_v0  ;;  %vm829_vm8 = vmand %vm9385_vm4, %vm9389_vm11  ;;  %6581 = vrot.lane.b32.xlu0 %v8787_v22, %s7224_s23 }
 0x1df   : > { %vm9407_vm12 = vcmp.ge.s32.totalorder %v536_v21, 1  ;;  %vm9411_vm9 = vcmp.le.s32.totalorder %v536_v21, 16  ;;  %v3891_v51 = vsel %vm12269_vm6, 0.0, %v6204_v13  ;;  %v3890_v19 = vsel %vm12271_vm15, %v12270_v54, %v6203_v30  ;;  %v5951_v21 = vpop.f32.mrf.mxu0 }
 0x1e0   : > { %12264 = vst [vmem:[#allocation8_spill] sm:$0xff] %v9401_v4  ;;  %v9418_v62 = vpop.permute.xlu0 %6296  ;;  %vm9425_vm2 = vcmp.le.s32.totalorder %v610_v55, 16  ;;  %vm12274_vm10 = vcmask 523264   ;;  %v6282_v30 = vpop.permute.xlu1 %6281  ;;  %v1859_v32 = vmax.f32 %v1712_v31, 0.0  ;;  %v1860_v15 = vmax.f32 %v1717_v12, 0.0  ;;  %vm828_vm0 = vmand %vm9407_vm12, %vm9411_vm9 }
 0x1e1   : > { %v4082_v13 = vsel %vm12274_vm10, %v9256_v48, %v6219_v60  ;;  %vm12275_vm5 = vmmov %vm12274_vm10  ;;  %vm12276_vm13 = vcmask 654336   ;;  %v6284_v5 = vunpack.i.h.bf16 %v6282_v30  ;;  %v6283_v34 = vunpack.i.l.bf16 %v6282_v30  ;;  %6571 = vrot.lane.b32.xlu1 %v8783_v47, %s7223_s11 }
 0x1e2   : > { %v4081_v54 = vsel %vm12275_vm5, %v9259_v14, %v6218_v36  ;;  %v4147_v0 = vsel %vm12276_vm13, %v4082_v13, %v6224_v35  ;;  %vm12277_vm7 = vmmov %vm12276_vm13  ;;  %v6209_v48 = vunpack.i.h.bf16 %v9084_v41  ;;  %v6208_v14 = vunpack.i.l.bf16 %v9084_v41  ;;  %6591 = vrot.lane.b32.xlu0 %v8839_v20, %s7224_s23 }
 0x1e3   : > { %v4146_v4 = vsel %vm12277_vm7, %v4081_v54, %v6223_v17  ;;  %vm12278_vm1 = vcmask 785408   ;;  %vm1121_vm15 = vmand %vm829_vm8, %vm9425_vm2  ;;  %v6229_v22 = vunpack.i.h.bf16 %v9125_v11  ;;  %v6228_v55 = vunpack.i.l.bf16 %v9125_v11  ;;  %v12290_v54 = vld [vmem:[#allocation27_spill] sm:$0xff] }
 0x1e4   : > { %v4210_v60 = vsel %vm12278_vm1, %v4146_v4, %v6243_v2  ;;  %vm12279_vm6 = vmmov %vm12278_vm1  ;;  %v6302_v41 = vpop.permute.xlu0 %6301  ;;  %vm12280_vm12 = vcmask 916480   ;;  %v9458_v12 = vpop.permute.xlu1 %6291  ;;  %v11817_v17 = vrot.slane %v9378_v59, 2  ;;  %v9461_v4 = vsel %vm828_vm0, %v1859_v32, 0.0 }
 0x1e5   : > { %v4211_v31 = vsel %vm12279_vm6, %v4147_v0, %v6244_v25  ;;  %v4275_v36 = vsel %vm12280_vm12, %v4210_v60, %v6283_v34  ;;  %vm12281_vm9 = vmmov %vm12280_vm12  ;;  %12282 = vst [vmem:[#allocation23_spill] sm:$0xff] %v9461_v4  ;;  %v9465_v39 = vsel %vm1121_vm15, %v1860_v15, 0.0  ;;  %v12284_v28 = vrot.slane %v9179_v44, 1  ;;  %6586 = vrot.lane.b32.xlu1 %v8839_v20, %s7221_s29 }
 0x1e6   : > { %v4276_v47 = vsel %vm12281_vm9, %v4211_v31, %v6284_v5  ;;  %12283 = vst [vmem:[#allocation22_spill] sm:$0xff] %v9465_v39  ;;  %v12285_v11 = vrot.slane %v9129_v8, 1  ;;  %v12286_v5 = vrot.slane %v9203_v29, 1  ;;  %v392_v32 = vadd.s32 416, %v12143_v27  ;;  %6596 = vrot.lane.b32.xlu0 %v8926_v53, %s7218_s17  ;;  %vm12302_vm13 = vmmov %vm12275_vm5 }
 0x1e7   : > { %v4339_v35 = vpack.c.bf16 %v4276_v47, %v4275_v36  ;;  %v12287_v25 = vmov %v12284_v28  ;;  %v9479_v61 = vsel %vm3940_vm14, %v3890_v19, %v6208_v14  ;;  %v3956_v15 = vsel %vm3940_vm14, %v3891_v51, %v6209_v48  ;;  %v12291_v51 = vld [vmem:[#allocation26_spill] sm:$0xff]  ;;  %vm12307_vm15 = vmmov %vm12279_vm6 }
 0x1e8   : > { %v2258_v34 = vsel %vm2167_vm3, %v12285_v11, %v12284_v28  ;;  %v2260_v2 = vsel %vm2167_vm3, %v12287_v25, %v12286_v5  ;;  %v6264_v6 = vunpack.i.h.bf16 %v9336_v52  ;;  %v6263_v0 = vunpack.i.l.bf16 %v9336_v52  ;;  %v9491_v19 = vpop.permute.xlu0 %6311  ;;  %v9499_v20 = vpop.permute.xlu1 %6306  ;;  %v12338_v52 = vld [vmem:[#allocation2_spill] sm:$0xff] }
 0x1e9   : > { %4641 = vmatmul.mubr.bf16.gmra.mxu1 %v4339_v35  ;;  %vm12288_vm4 = vcmask 392192   ;;  %v6239_v13 = vunpack.i.h.bf16 %v9223_v43  ;;  %v12292_v30 = vpack.c.bf16 %v12290_v54, %v12291_v51  ;;  %vm12293_vm8 = vcmask 130048   ;;  %6606 = vrot.lane.b32.xlu1 %v8926_v53, %s7225_s25 }
 0x1ea   : > { %v4019_v58 = vsel %vm12288_vm4, %v9361_v26, %v6229_v22  ;;  %vm12289_vm11 = vmmov %vm12288_vm4  ;;  %v6238_v48 = vunpack.i.l.bf16 %v9223_v43  ;;  %v12294_v60 = vrot.slane %v9179_v44, 2  ;;  %v12295_v31 = vrot.slane %v9129_v8, 2  ;;  %6601 = vrot.lane.b32.xlu0 %v8945_v33, %s7220_s24 }
 0x1eb   : > { %v4018_v21 = vsel %vm12289_vm11, %v9358_v23, %v6228_v55  ;;  %5429 = vmatprep.mubr.msk.bf16.mxu1 %vm12293_vm8, %v12292_v30  ;;  %v9503_v23 = vpack.i.bf16 %v2260_v2, %v2258_v34  ;;  %vm12296_vm2 = vcmask 1045504   ;;  %v12298_v43 = vrot.slane %v9203_v29, 2  ;;  %vm12303_vm7 = vmmov %vm12288_vm4  ;;  %v9538_v30 = vpop.f32.mrf.mxu0 }
 0x1ec   : > { %v9512_v22 = vsel %vm12296_vm2, %v12295_v31, %v12294_v60  ;;  %v12299_v55 = vmov %v12294_v60  ;;  %vm12300_vm10 = vmmov %vm12296_vm2  ;;  %v539_v47 = vshra.s32 %v392_v32, 5  ;;  %v4084_v35 = vsel %vm12275_vm5, %v4019_v58, %v6264_v6  ;;  %v9530_v54 = vpop.permute.xlu0 %6316  ;;  %v6327_v58 = vpop.permute.xlu1 %6326 }
 0x1ed   : > { %12297 = vst [vmem:[#allocation11_spill] sm:$0xff] %v9512_v22  ;;  %v9519_v36 = vsel %vm12300_vm10, %v12299_v55, %v12298_v43  ;;  %v4083_v28 = vsel %vm12302_vm13, %v4018_v21, %v6263_v0  ;;  %v6304_v11 = vunpack.i.h.bf16 %v6302_v41  ;;  %v6303_v34 = vunpack.i.l.bf16 %v6302_v41  ;;  %6616 = vrot.lane.b32.xlu1 %v8945_v33, %s7223_s11  ;;  %v5954_v55 = vpop.f32.mrf.mxu0  ;;  %vm12316_vm8 = vmmov %vm12296_vm2  ;;  %v12330_v43 = vld [vmem:[#allocation47_spill] sm:$0xff] }
 0x1ee   : > { %12301 = vst [vmem:[#allocation27_spill] sm:$0xff] %v9519_v36  ;;  %v9526_v5 = vsel %vm12303_vm7, %v3956_v15, %v6239_v13  ;;  %v6269_v25 = vunpack.i.h.bf16 %v9288_v42  ;;  %v6268_v2 = vunpack.i.l.bf16 %v9288_v42  ;;  %v6249_v51 = vunpack.i.h.bf16 %v9246_v49  ;;  %6611 = vrot.lane.b32.xlu0 %v8926_v53, %s7222_s10  ;;  %vm12321_vm13 = vmmov %vm12303_vm7  ;;  %v12328_v53 = vld [vmem:[#allocation14_spill] sm:$0xff] }
 0x1ef   : > { %v6248_v6 = vunpack.i.l.bf16 %v9246_v49  ;;  %v12304_v41 = vrot.slane %v9203_v29, 1  ;;  %v612_v21 = vand.u32 31, %v392_v32  ;;  %v6329_v15 = vunpack.i.h.bf16 %v6327_v58  ;;  %v9603_v55 = vpop.f32.mrf.mxu0 }
 0x1f0   : > { %v6328_v13 = vunpack.i.l.bf16 %v6327_v58  ;;  %vm12305_vm0 = vcmask 654336   ;;  %vm9548_vm12 = vcmp.ge.s32.totalorder %v539_v47, 1  ;;  %vm9552_vm9 = vcmp.le.s32.totalorder %v539_v47, 16  ;;  %v9556_v58 = vpop.permute.xlu0 %6321 }
 0x1f1   : > { %v2262_v0 = vsel %vm2167_vm3, %v12304_v41, %v7534_v40  ;;  %v4148_v42 = vsel %vm12305_vm0, %v4083_v28, %v6268_v2  ;;  %vm12306_vm1 = vmmov %vm12305_vm0  ;;  %vm12312_vm4 = vcmask 916480   ;;  %v12314_v33 = vrot.slane %v9378_v59, 1  ;;  %6621 = vrot.lane.b32.xlu1 %v9048_v38, %s7218_s17 }
 0x1f2   : > { %v4149_v60 = vsel %vm12306_vm1, %v4084_v35, %v6269_v25  ;;  %v4212_v49 = vsel %vm12279_vm6, %v4148_v42, %v6303_v34  ;;  %vm12313_vm11 = vmmov %vm12312_vm4  ;;  %v1725_v34 = vadd.f32 %v9040_v7, %v9026_v63  ;;  %v9566_v25 = vpop.permute.xlu1 %6336  ;;  %v12315_v2 = vrot.slane %v9203_v29, 2  ;;  %6636 = vrot.lane.b32.xlu0 %v9048_v38, %s7222_s10  ;;  %v12362_v29 = vld [vmem:[#allocation57_spill] sm:$0xff] }
 0x1f3   : > { %v4213_v31 = vsel %vm12307_vm15, %v4149_v60, %v6304_v11  ;;  %v4277_v35 = vsel %vm12312_vm4, %v4212_v49, %v6328_v13  ;;  %v2264_v11 = vsel %vm2167_vm3, %v7534_v40, %v12314_v33  ;;  %v393_v13 = vadd.s32 424, %v12143_v27  ;;  %vm831_vm10 = vmand %vm9548_vm12, %vm9552_vm9  ;;  %v12324_v33 = vld [vmem:[#allocation31_spill] sm:$0xff] }
 0x1f4   : > { %v4278_v28 = vsel %vm12313_vm11, %v4213_v31, %v6329_v15  ;;  %v9572_v41 = vsel %vm12316_vm8, %v12315_v2, %v12093_v45  ;;  %v9578_v15 = vsel %vm12296_vm2, %v12093_v45, %v11817_v17  ;;  %v6254_v42 = vunpack.i.h.bf16 %v9282_v1  ;;  %v12325_v2 = vld [vmem:[#allocation30_spill] sm:$0xff] }
 0x1f5   : > { %v4341_v47 = vpack.c.bf16 %v4278_v28, %v4277_v35  ;;  %12317 = vst [vmem:[#allocation26_spill] sm:$0xff] %v9572_v41  ;;  %12318 = vst [vmem:[#allocation62_spill] sm:$0xff] %v9578_v15  ;;  %v6253_v63 = vunpack.i.l.bf16 %v9282_v1  ;;  %vm9589_vm5 = vcmp.ge.s32.totalorder %v612_v21, 1  ;;  %v394_v49 = vadd.s32 432, %v12143_v27  ;;  %v12322_v21 = vld [vmem:[#allocation15_spill] sm:$0xff]  ;;  %v9607_v28 = vpop.permute.xlu0 %6331  ;;  %6626 = vrot.lane.b32.xlu1 %v12330_v43, %s7220_s24 }
 0x1f6   : > { %v4020_v31 = vsel %vm12321_vm13, %v9479_v61, %v6238_v48  ;;  %v9601_v1 = vpack.i.bf16 %v9519_v36, %v9512_v22  ;;  %vm12323_vm7 = vcmask 130048   ;;  %v12326_v61 = vpack.c.bf16 %v12324_v33, %v12325_v2  ;;  %v9617_v26 = vpop.permute.xlu1 %6341  ;;  %vm977_vm6 = vmand %vm831_vm10, %vm9589_vm5  ;;  %6646 = vrot.lane.b32.xlu0 %v12338_v52, %s7221_s29 }
 0x1f7   : > { %4649 = vmatmul.mubr.bf16.gmra.mxu1 %v4341_v47  ;;  %v3893_v35 = vsel %vm12323_vm7, %v12322_v21, %v6249_v51  ;;  %vm12327_vm0 = vmmov %vm12323_vm7  ;;  %v9613_v48 = vpack.i.bf16 %v2264_v11, %v2262_v0  ;;  %v1862_v47 = vmax.f32 %v1725_v34, 0.0  ;;  %v9621_v14 = vpack.i.bf16 %v9578_v15, %v9572_v41  ;;  %v12346_v41 = vld [vmem:[#allocation18_spill] sm:$0xff] }
 0x1f8   : > { %5430 = vmatprep.mubr.msk.bf16.mxu1 %vm12327_vm0, %v12326_v61  ;;  %vm12329_vm1 = vmmov %vm12327_vm0  ;;  %v9625_v51 = vpack.i.bf16 %v9461_v4, %v9378_v59  ;;  %v540_v0 = vshra.s32 %v393_v13, 5  ;;  %v9638_v34 = vsel %vm3940_vm14, %v3893_v35, %v6254_v42  ;;  %v6274_v60 = vunpack.i.h.bf16 %v9342_v56 }
 0x1f9   : > { %v3892_v17 = vsel %vm12329_vm1, %v12328_v53, %v6248_v6  ;;  %v5955_v6 = vpop.f32.mrf.mxu0  ;;  %v541_v53 = vshra.s32 %v394_v49, 5  ;;  %v6273_v32 = vunpack.i.l.bf16 %v9342_v56  ;;  %v6289_v13 = vunpack.i.h.bf16 %v9376_v10  ;;  %v9647_v21 = vpop.permute.xlu0 %6356  ;;  %vm12344_vm11 = vmmov %vm12327_vm0  ;;  %6631 = vrot.lane.b32.xlu1 %v9048_v38, %s7225_s25 }
 0x1fa   : > { %v9635_v11 = vsel %vm3940_vm14, %v3892_v17, %v6253_v63  ;;  %v9649_v17 = vsel %vm977_vm6, %v1862_v47, 0.0  ;;  %v12332_v63 = vld [vmem:[#allocation49_spill] sm:$0xff]  ;;  %v9655_v35 = vpack.i.bf16 %v12027_v57, %v9465_v39  ;;  %v6288_v33 = vunpack.i.l.bf16 %v9376_v10  ;;  %v9658_v2 = vpop.permute.xlu1 %6346  ;;  %vm12347_vm8 = vmmov %vm12327_vm0  ;;  %6651 = vrot.lane.b32.xlu0 %v12338_v52, %s7224_s23 }
 0x1fb   : > { %12331 = vst [vmem:[#allocation15_spill] sm:$0xff] %v9649_v17  ;;  %v1728_v42 = vadd.f32 %v9040_v7, %v12332_v63  ;;  %vm9660_vm15 = vcmp.ge.s32.totalorder %v540_v0, 1  ;;  %vm9664_vm12 = vcmp.le.s32.totalorder %v540_v0, 16  ;;  %v614_v47 = vand.u32 31, %v394_v49  ;;  %v9680_v0 = vpop.f32.mrf.mxu0  ;;  %v12361_v10 = vld [vmem:[#allocation53_spill] sm:$0xff] }
 0x1fc   : > { %12333 = vst [vmem:[#allocation31_spill] sm:$0xff] %v9655_v35  ;;  %v6294_v6 = vunpack.i.h.bf16 %v9458_v12  ;;  %v6293_v63 = vunpack.i.l.bf16 %v9458_v12  ;;  %vm9672_vm9 = vcmp.ge.s32.totalorder %v541_v53, 1  ;;  %vm9676_vm4 = vcmp.le.s32.totalorder %v541_v53, 16  ;;  %12343 = vst [vmem:[#allocation30_spill] sm:$0xff] %v9680_v0  ;;  %v12345_v12 = vld [vmem:[#allocation6_spill] sm:$0xff] }
 0x1fd   : > { %v3895_v8 = vsel %vm12344_vm11, 0.0, %v6274_v60  ;;  %v6314_v49 = vunpack.i.h.bf16 %v9491_v19  ;;  %v6313_v44 = vunpack.i.l.bf16 %v9491_v19  ;;  %v1733_v15 = vadd.f32 %v9040_v7, %v12345_v12  ;;  %v9692_v22 = vpop.permute.xlu0 %6366  ;;  %vm832_vm2 = vmand %vm9660_vm15, %vm9664_vm12  ;;  %v5958_v60 = vpop.f32.mrf.mxu0  ;;  %6641 = vrot.lane.b32.xlu1 %v12330_v43, %s7223_s11 }
 0x1fe   : > { %v3894_v53 = vsel %vm12347_vm8, %v12346_v41, %v6273_v32  ;;  %v6279_v36 = vunpack.i.h.bf16 %v9383_v16  ;;  %v1863_v19 = vmax.f32 %v1728_v42, 0.0  ;;  %vm12348_vm10 = vcmask 523264   ;;  %v6352_v32 = vpop.permute.xlu1 %6351  ;;  %vm833_vm13 = vmand %vm9672_vm9, %vm9676_vm4  ;;  %6661 = vrot.lane.b32.xlu0 %v9183_v9, %s7224_s23 }
 0x1ff   : > { %v4086_v38 = vsel %vm12348_vm10, %v9526_v5, %v6289_v13  ;;  %vm12349_vm5 = vmmov %vm12348_vm10  ;;  %v6278_v41 = vunpack.i.l.bf16 %v9383_v16  ;;  %vm9707_vm7 = vcmp.le.s32.totalorder %v614_v47, 16  ;;  %vm12352_vm0 = vcmask 654336   ;;  %v1767_v16 = vpop.f32.mrf.mxu0 }
 0x200   : > { %v4085_v12 = vsel %vm12349_vm5, %v4020_v31, %v6288_v33  ;;  %v4151_v42 = vsel %vm12352_vm0, %v4086_v38, %v6294_v6  ;;  %vm12353_vm1 = vmmov %vm12352_vm0  ;;  %v6354_v35 = vunpack.i.h.bf16 %v6352_v32  ;;  %v6353_v5 = vunpack.i.l.bf16 %v6352_v32 }
 0x201   : > { %v4150_v60 = vsel %vm12353_vm1, %v4085_v12, %v6293_v63  ;;  %v6299_v31 = vunpack.i.h.bf16 %v9418_v62  ;;  %vm12354_vm6 = vcmask 785408   ;;  %v1864_v47 = vmax.f32 %v1733_v15, 0.0  ;;  %v6372_v38 = vpop.permute.xlu0 %6371  ;;  %vm9737_vm5 = vmand %vm833_vm13, %vm9707_vm7  ;;  %6656 = vrot.lane.b32.xlu1 %v9183_v9, %s7221_s29 }
 0x202   : > { %v4214_v13 = vsel %vm12354_vm6, %v4150_v60, %v6313_v44  ;;  %vm12355_vm11 = vmmov %vm12354_vm6  ;;  %v6298_v6 = vunpack.i.l.bf16 %v9418_v62  ;;  %vm12356_vm8 = vcmask 916480   ;;  %v9728_v52 = vsel %vm832_vm2, %v1863_v19, 0.0  ;;  %v5959_v62 = vpop.f32.mrf.mxu0  ;;  %v9742_v43 = vpop.permute.xlu1 %6361  ;;  %6666 = vrot.lane.b32.xlu0 %v9237_v37, %s7218_s17 }
 0x203   : > { %v4215_v33 = vsel %vm12355_vm11, %v4151_v42, %v6314_v49  ;;  %v4279_v63 = vsel %vm12356_vm8, %v4214_v13, %v6353_v5  ;;  %vm12357_vm10 = vmmov %vm12356_vm8  ;;  %12358 = vst [vmem:[#allocation14_spill] sm:$0xff] %v9728_v52  ;;  %v3959_v15 = vsel %vm3940_vm14, %v3894_v53, %v6278_v41  ;;  %v11826_v56 = vrot.slane %v9649_v17, 2 }
 0x204   : > { %v4280_v12 = vsel %vm12357_vm10, %v4215_v33, %v6354_v35  ;;  %v3960_v61 = vsel %vm3940_vm14, %v3895_v8, %v6279_v36  ;;  %v12363_v49 = vrot.slane %v9461_v4, 1  ;;  %v12364_v19 = vrot.slane %v9378_v59, 1 }
 0x205   : > { %v4343_v35 = vpack.c.bf16 %v4280_v12, %v4279_v63  ;;  %v12365_v53 = vrot.slane %v9465_v39, 1  ;;  %v6334_v8 = vunpack.i.h.bf16 %v9607_v28  ;;  %v6333_v36 = vunpack.i.l.bf16 %v9607_v28  ;;  %v9774_v63 = vpop.permute.xlu0 %6381  ;;  %v12370_v28 = vld [vmem:[#allocation34_spill] sm:$0xff]  ;;  %v12371_v12 = vld [vmem:[#allocation33_spill] sm:$0xff]  ;;  %6676 = vrot.lane.b32.xlu1 %v9237_v37, %s7225_s25 }
 0x206   : > { %v2266_v32 = vsel %vm2167_vm3, %v12364_v19, %v12363_v49  ;;  %v12366_v41 = vmov %v12363_v49  ;;  %v9767_v5 = vsel %vm9737_vm5, %v1864_v47, 0.0  ;;  %vm12368_vm15 = vcmask 392192   ;;  %v9782_v44 = vpop.permute.xlu1 %6376  ;;  %6671 = vrot.lane.b32.xlu0 %v9292_v18, %s7220_s24 }
 0x207   : > { %v2268_v42 = vsel %vm2167_vm3, %v12366_v41, %v12365_v53  ;;  %4657 = vmatmul.mubr.bf16.gmra.mxu1 %v4343_v35  ;;  %12367 = vst [vmem:[#allocation47_spill] sm:$0xff] %v9767_v5  ;;  %v4023_v16 = vsel %vm12368_vm15, %v9638_v34, %v6299_v31  ;;  %vm12369_vm12 = vmmov %vm12368_vm15  ;;  %v6309_v33 = vunpack.i.h.bf16 %v9499_v20  ;;  %v12372_v62 = vpack.c.bf16 %v12370_v28, %v12371_v12 }
 0x208   : > { %v4022_v13 = vsel %vm12369_vm12, %v9635_v11, %v6298_v6  ;;  %vm12373_vm9 = vcmask 130048   ;;  %v6308_v47 = vunpack.i.l.bf16 %v9499_v20  ;;  %v9784_v35 = vpack.i.bf16 %v2268_v42, %v2266_v32  ;;  %vm12384_vm0 = vmmov %vm12369_vm12  ;;  %v12408_v11 = vld [vmem:[#allocation37_spill] sm:$0xff] }
 0x209   : > { %5431 = vmatprep.mubr.msk.bf16.mxu1 %vm12373_vm9, %v12372_v62  ;;  %v396_v34 = vadd.s32 448, %v12143_v27  ;;  %v12374_v6 = vrot.slane %v9461_v4, 2  ;;  %v12375_v49 = vrot.slane %v9378_v59, 2  ;;  %vm12376_vm4 = vcmask 1045504   ;;  %v9814_v0 = vpop.permute.xlu0 %6386  ;;  %vm12385_vm1 = vmmov %vm12384_vm0  ;;  %6686 = vrot.lane.b32.xlu1 %v9292_v18, %s7223_s11 }
 0x20a   : > { %v12378_v20 = vrot.slane %v9465_v39, 2  ;;  %vm12380_vm2 = vmmov %vm12376_vm4  ;;  %vm12382_vm13 = vcmask 523264   ;;  %v6374_v28 = vunpack.i.h.bf16 %v6372_v38  ;;  %v6373_v12 = vunpack.i.l.bf16 %v6372_v38  ;;  %v6397_v38 = vpop.permute.xlu1 %6396  ;;  %6681 = vrot.lane.b32.xlu0 %v9237_v37, %s7222_s10 }
 0x20b   : > { %v9796_v19 = vsel %vm12376_vm4, %v12375_v49, %v12374_v6  ;;  %v12379_v32 = vmov %v12374_v6  ;;  %v4088_v41 = vsel %vm12382_vm13, %v4023_v16, %v6334_v8  ;;  %vm12383_vm7 = vmmov %vm12382_vm13  ;;  %v9810_v62 = vsel %vm12384_vm0, %v3960_v61, %v6309_v33 }
 0x20c   : > { %12377 = vst [vmem:[#allocation49_spill] sm:$0xff] %v9796_v19  ;;  %v9803_v53 = vsel %vm12380_vm2, %v12379_v32, %v12378_v20  ;;  %v4087_v42 = vsel %vm12383_vm7, %v4022_v13, %v6333_v36  ;;  %v6339_v6 = vunpack.i.h.bf16 %v9566_v25  ;;  %v6338_v49 = vunpack.i.l.bf16 %v9566_v25  ;;  %v9821_v13 = vpop.f32.mrf.mxu0  ;;  %vm12395_vm12 = vmmov %vm12380_vm2 }
 0x20d   : > { %12381 = vst [vmem:[#allocation2_spill] sm:$0xff] %v9803_v53  ;;  %v9817_v20 = vsel %vm12385_vm1, %v3959_v15, %v6308_v47  ;;  %v6319_v8 = vunpack.i.h.bf16 %v9530_v54  ;;  %v6318_v36 = vunpack.i.l.bf16 %v9530_v54  ;;  %v543_v16 = vshra.s32 %v396_v34, 5  ;;  %6691 = vrot.lane.b32.xlu1 %v9344_v3, %s7218_s17 }
 0x20e   : > { %v6399_v32 = vunpack.i.h.bf16 %v6397_v38  ;;  %v6398_v61 = vunpack.i.l.bf16 %v6397_v38  ;;  %vm12386_vm6 = vcmask 654336   ;;  %vm12388_vm8 = vcmask 785408   ;;  %6706 = vrot.lane.b32.xlu0 %v9344_v3, %s7222_s10 }
 0x20f   : > { %v4152_v25 = vsel %vm12386_vm6, %v4087_v42, %v6338_v49  ;;  %vm12387_vm11 = vmmov %vm12386_vm6  ;;  %v12390_v47 = vrot.slane %v9465_v39, 1  ;;  %v12391_v38 = vrot.slane %v9649_v17, 1  ;;  %v5962_v42 = vpop.f32.mrf.mxu0  ;;  %v9839_v49 = vpop.permute.xlu0 %6391  ;;  %vm12392_vm5 = vcmask 916480  }
 0x210   : > { %v4153_v33 = vsel %vm12387_vm11, %v4088_v41, %v6339_v6  ;;  %v4216_v15 = vsel %vm12388_vm8, %v4152_v25, %v6373_v12  ;;  %vm12389_vm10 = vmmov %vm12388_vm8  ;;  %v616_v6 = vand.u32 31, %v396_v34  ;;  %v9849_v25 = vpop.permute.xlu1 %6406  ;;  %vm9851_vm9 = vcmp.ge.s32.totalorder %v543_v16, 1 }
 0x211   : > { %v4217_v54 = vsel %vm12389_vm10, %v4153_v33, %v6374_v28  ;;  %v2270_v31 = vsel %vm2167_vm3, %v12390_v47, %v7534_v40  ;;  %v2272_v9 = vsel %vm2167_vm3, %v7534_v40, %v12391_v38  ;;  %v4281_v41 = vsel %vm12392_vm5, %v4216_v15, %v6398_v61  ;;  %vm12393_vm15 = vmmov %vm12392_vm5  ;;  %v9881_v42 = vpop.f32.mrf.mxu0  ;;  %6696 = vrot.lane.b32.xlu1 %v9367_v50, %s7220_s24 }
 0x212   : > { %v4282_v18 = vsel %vm12393_vm15, %v4217_v54, %v6399_v32  ;;  %v12394_v28 = vrot.slane %v9465_v39, 2  ;;  %vm9855_vm4 = vcmp.le.s32.totalorder %v543_v16, 16  ;;  %v398_v32 = vadd.s32 464, %v12143_v27 }
 0x213   : > { %v4345_v33 = vpack.c.bf16 %v4282_v18, %v4281_v41  ;;  %v6324_v61 = vunpack.i.h.bf16 %v9556_v58  ;;  %v6323_v15 = vunpack.i.l.bf16 %v9556_v58  ;;  %v9868_v34 = vsel %vm12380_vm2, %v12093_v45, %v11826_v56  ;;  %v12403_v41 = vld [vmem:[#allocation24_spill] sm:$0xff]  ;;  %v12407_v56 = vld [vmem:[#allocation38_spill] sm:$0xff]  ;;  %vm835_vm1 = vmand %vm9851_vm9, %vm9855_vm4 }
 0x214   : > { %v9847_v12 = vsel %vm12395_vm12, %v12394_v28, %v12093_v45  ;;  %12401 = vst [vmem:[#allocation18_spill] sm:$0xff] %v9868_v34  ;;  %v1741_v16 = vadd.f32 %v9040_v7, %v9263_v24  ;;  %v9876_v54 = vpack.i.bf16 %v9803_v53, %v9796_v19  ;;  %v9878_v58 = vpack.i.bf16 %v2272_v9, %v2270_v31  ;;  %v12405_v28 = vld [vmem:[#allocation21_spill] sm:$0xff] }
 0x215   : > { %12396 = vst [vmem:[#allocation6_spill] sm:$0xff] %v9847_v12  ;;  %4665 = vmatmul.mubr.bf16.gmra.mxu1 %v4345_v33  ;;  %v397_v37 = vadd.s32 456, %v12143_v27  ;;  %vm12404_vm13 = vcmask 130048   ;;  %v9887_v33 = vpop.permute.xlu0 %6401  ;;  %v12409_v60 = vpack.c.bf16 %v12407_v56, %v12408_v11  ;;  %vm908_vm6 = vcmp.ge.s32.totalorder %v616_v6, 1  ;;  %v5963_v11 = vpop.f32.mrf.mxu0  ;;  %6701 = vrot.lane.b32.xlu1 %v9344_v3, %s7225_s25 }
 0x216   : > { %12402 = vst [vmem:[#allocation53_spill] sm:$0xff] %v9878_v58  ;;  %v3897_v18 = vsel %vm12404_vm13, %v12403_v41, %v6319_v8  ;;  %vm12406_vm7 = vmmov %vm12404_vm13  ;;  %v9899_v8 = vpop.permute.xlu1 %6411  ;;  %v9907_v56 = vpack.i.bf16 %v9728_v52, %v9649_v17  ;;  %v1866_v6 = vmax.f32 %v1741_v16, 0.0  ;;  %v6344_v47 = vunpack.i.h.bf16 %v9617_v26 }
 0x217   : > { %v3896_v24 = vsel %vm12406_vm7, %v12405_v28, %v6318_v36  ;;  %vm12410_vm0 = vmmov %vm12406_vm7  ;;  %v9903_v36 = vpack.i.bf16 %v9868_v34, %v9847_v12  ;;  %v9913_v38 = vsel %vm3940_vm14, %v3897_v18, %v6324_v61  ;;  %v544_v28 = vshra.s32 %v397_v37, 5 }
 0x218   : > { %5432 = vmatprep.mubr.msk.bf16.mxu1 %vm12410_vm0, %v12409_v60  ;;  %12414 = vst [vmem:[#allocation34_spill] sm:$0xff] %v9907_v56  ;;  %v545_v60 = vshra.s32 %v398_v32, 5  ;;  %v9910_v41 = vsel %vm3940_vm14, %v3896_v24, %v6323_v15  ;;  %vm981_vm11 = vmand %vm835_vm1, %vm908_vm6  ;;  %v6343_v31 = vunpack.i.l.bf16 %v9617_v26  ;;  %v6359_v11 = vunpack.i.h.bf16 %v9647_v21  ;;  %v12419_v26 = vld [vmem:[#allocation19_spill] sm:$0xff] }
 0x219   : > { %12413 = vst [vmem:[#allocation57_spill] sm:$0xff] %v9903_v36  ;;  %v9922_v15 = vpop.permute.xlu0 %6426  ;;  %v1744_v61 = vadd.f32 %v9040_v7, %v9299_v46  ;;  %v618_v18 = vand.u32 31, %v398_v32  ;;  %v6358_v24 = vunpack.i.l.bf16 %v9647_v21  ;;  %v1749_v4 = vadd.f32 %v9040_v7, %v12419_v26  ;;  %v12420_v32 = vld [vmem:[#allocation20_spill] sm:$0xff]  ;;  %6711 = vrot.lane.b32.xlu1 %v9367_v50, %s7223_s11 }
 0x21a   : > { %v9927_v16 = vpop.permute.xlu1 %6416  ;;  %vm9929_vm8 = vcmp.ge.s32.totalorder %v545_v60, 1  ;;  %vm9933_vm10 = vcmp.le.s32.totalorder %v545_v60, 16  ;;  %v6364_v34 = vunpack.i.h.bf16 %v9742_v43  ;;  %v6363_v46 = vunpack.i.l.bf16 %v9742_v43  ;;  %6716 = vrot.lane.b32.xlu0 %v12420_v32, %s7221_s29  ;;  %v9949_v60 = vpop.f32.mrf.mxu0 }
 0x21b   : > { %v9943_v21 = vsel %vm981_vm11, %v1866_v6, 0.0  ;;  %v9947_v12 = vpack.i.bf16 %v12027_v57, %v9767_v5  ;;  %12423 = vst [vmem:[#allocation21_spill] sm:$0xff] %v9949_v60  ;;  %v6384_v53 = vunpack.i.h.bf16 %v9774_v63  ;;  %v6383_v19 = vunpack.i.l.bf16 %v9774_v63  ;;  %vm837_vm12 = vmand %vm9929_vm8, %vm9933_vm10 }
 0x21c   : > { %12421 = vst [vmem:[#allocation33_spill] sm:$0xff] %v9943_v21  ;;  %vm9955_vm5 = vcmp.ge.s32.totalorder %v544_v28, 1  ;;  %vm9959_vm15 = vcmp.le.s32.totalorder %v544_v28, 16  ;;  %v6349_v6 = vunpack.i.h.bf16 %v9658_v2  ;;  %v6348_v26 = vunpack.i.l.bf16 %v9658_v2  ;;  %v5966_v63 = vpop.f32.mrf.mxu0 }
 0x21d   : > { %12422 = vst [vmem:[#allocation24_spill] sm:$0xff] %v9947_v12  ;;  %v9965_v12 = vpop.permute.xlu0 %6436  ;;  %v1867_v56 = vmax.f32 %v1744_v61, 0.0  ;;  %vm9971_vm9 = vcmp.le.s32.totalorder %v618_v18, 16  ;;  %vm12430_vm4 = vcmask 523264   ;;  %v6369_v2 = vunpack.i.h.bf16 %v9692_v22  ;;  %vm836_vm0 = vmand %vm9955_vm5, %vm9959_vm15 }
 0x21e   : > { %v4090_v28 = vsel %vm12430_vm4, %v9810_v62, %v6359_v11  ;;  %vm12431_vm2 = vmmov %vm12430_vm4  ;;  %v6422_v60 = vpop.permute.xlu1 %6421  ;;  %v1868_v61 = vmax.f32 %v1749_v4, 0.0  ;;  %vm12432_vm13 = vcmask 654336   ;;  %6721 = vrot.lane.b32.xlu0 %v12420_v32, %s7224_s23  ;;  %v1783_v62 = vpop.f32.mrf.mxu0  ;;  %vm12434_vm1 = vcmask 130048   ;;  %v12435_v11 = vld [vmem:[#allocation25_spill] sm:$0xff]  ;;  %v12443_v32 = vld [vmem:[#allocation8_spill] sm:$0xff] }
 0x21f   : > { %v4089_v36 = vsel %vm12431_vm2, %v9817_v20, %v6358_v24  ;;  %v4155_v39 = vsel %vm12432_vm13, %v4090_v28, %v6364_v34  ;;  %vm12433_vm7 = vmmov %vm12432_vm13  ;;  %v6424_v58 = vunpack.i.h.bf16 %v6422_v60  ;;  %v6423_v18 = vunpack.i.l.bf16 %v6422_v60  ;;  %6726 = vrot.lane.b32.xlu1 %v12443_v32, %s7221_s29 }
 0x220   : > { %v4154_v9 = vsel %vm12433_vm7, %v4089_v36, %v6363_v46  ;;  %v3899_v20 = vsel %vm12434_vm1, 0.0, %v6344_v47  ;;  %vm12436_vm6 = vmmov %vm12434_vm1  ;;  %vm12437_vm11 = vcmask 785408   ;;  %v6368_v47 = vunpack.i.l.bf16 %v9692_v22 }
 0x221   : > { %v3898_v4 = vsel %vm12436_vm6, %v12435_v11, %v6343_v31  ;;  %v4218_v34 = vsel %vm12437_vm11, %v4154_v9, %v6383_v19  ;;  %vm12438_vm4 = vmmov %vm12437_vm11  ;;  %v6442_v24 = vpop.permute.xlu0 %6441  ;;  %vm12439_vm13 = vcmask 916480   ;;  %v11838_v50 = vrot.slane %v9943_v21, 1  ;;  %v5967_v19 = vpop.f32.mrf.mxu0 }
 0x222   : > { %v4219_v36 = vsel %vm12438_vm4, %v4155_v39, %v6384_v53  ;;  %vm1129_vm2 = vmand %vm837_vm12, %vm9971_vm9  ;;  %v4283_v31 = vsel %vm12439_vm13, %v4218_v34, %v6423_v18  ;;  %v10006_v9 = vpop.permute.xlu1 %6431  ;;  %v11839_v53 = vrot.slane %v9943_v21, 2  ;;  %v10014_v59 = vsel %vm836_vm0, %v1867_v56, 0.0  ;;  %6731 = vrot.lane.b32.xlu0 %v12443_v32, %s7224_s23  ;;  %v12450_v18 = vld [vmem:[#allocation40_spill] sm:$0xff] }
 0x223   : > { %vm12440_vm7 = vmmov %vm12439_vm13  ;;  %12441 = vst [vmem:[#allocation38_spill] sm:$0xff] %v10014_v59  ;;  %v3963_v22 = vsel %vm3940_vm14, %v3898_v4, %v6348_v26  ;;  %v3964_v37 = vsel %vm3940_vm14, %v3899_v20, %v6349_v6  ;;  %vm12442_vm8 = vcmask 392192   ;;  %v10022_v60 = vsel %vm1129_vm2, %v1868_v61, 0.0  ;;  %v12449_v61 = vld [vmem:[#allocation41_spill] sm:$0xff]  ;;  %6746 = vrot.lane.b32.xlu1 %v9503_v23, %s7225_s25 }
 0x224   : > { %v4284_v46 = vsel %vm12440_vm7, %v4219_v36, %v6424_v58  ;;  %v4027_v58 = vsel %vm12442_vm8, %v9913_v38, %v6369_v2  ;;  %v6404_v3 = vunpack.i.h.bf16 %v9887_v33  ;;  %v6403_v7 = vunpack.i.l.bf16 %v9887_v33  ;;  %vm12448_vm10 = vmmov %vm12442_vm8 }
 0x225   : > { %v4347_v39 = vpack.c.bf16 %v4284_v46, %v4283_v31  ;;  %v12444_v56 = vrot.slane %v9728_v52, 1  ;;  %v12445_v43 = vrot.slane %v9649_v17, 1  ;;  %v12446_v38 = vrot.slane %v9767_v5, 1  ;;  %v10041_v2 = vpop.permute.xlu0 %6451  ;;  %vm12452_vm5 = vmmov %vm12434_vm1 }
 0x226   : > { %v4026_v28 = vsel %vm12448_vm10, %v9910_v41, %v6368_v47  ;;  %v6379_v33 = vunpack.i.h.bf16 %v9782_v44  ;;  %v12451_v62 = vpack.c.bf16 %v12449_v61, %v12450_v18  ;;  %v6378_v4 = vunpack.i.l.bf16 %v9782_v44  ;;  %v10050_v34 = vpop.permute.xlu1 %6446  ;;  %v12453_v41 = vld [vmem:[#allocation54_spill] sm:$0xff]  ;;  %v12454_v47 = vld [vmem:[#allocation61_spill] sm:$0xff]  ;;  %6736 = vrot.lane.b32.xlu0 %v9503_v23, %s7218_s17  ;;  %v10077_v61 = vpop.f32.mrf.mxu0  ;;  %vm12465_vm1 = vmmov %vm12442_vm8 }
 0x227   : > { %4673 = vmatmul.mubr.bf16.gmra.mxu1 %v4347_v39  ;;  %v2274_v6 = vsel %vm2167_vm3, %v12445_v43, %v12444_v56  ;;  %v12447_v26 = vmov %v12444_v56  ;;  %v10056_v46 = vadd.s32 480, %v12143_v27  ;;  %v12455_v32 = vrot.slane %v9728_v52, 2  ;;  %vm12466_vm6 = vmmov %vm12465_vm1  ;;  %6756 = vrot.lane.b32.xlu1 %v9601_v1, %s7223_s11 }
 0x228   : > { %v2276_v63 = vsel %vm2167_vm3, %v12447_v26, %v12446_v38  ;;  %5433 = vmatprep.mubr.msk.bf16.mxu1 %vm12452_vm5, %v12451_v62  ;;  %v12456_v44 = vrot.slane %v9649_v17, 2  ;;  %vm12457_vm15 = vcmask 1045504   ;;  %v12459_v43 = vrot.slane %v9767_v5, 2  ;;  %vm12471_vm8 = vmmov %vm12440_vm7 }
 0x229   : > { %v10061_v39 = vpack.i.bf16 %v2276_v63, %v2274_v6  ;;  %v12460_v38 = vmov %v12455_v32  ;;  %vm12461_vm12 = vmmov %vm12457_vm15  ;;  %vm12463_vm9 = vcmask 523264   ;;  %v6444_v63 = vunpack.i.h.bf16 %v6442_v24 }
 0x22a   : > { %v10068_v56 = vsel %vm12457_vm15, %v12456_v44, %v12455_v32  ;;  %v10075_v26 = vsel %vm12461_vm12, %v12460_v38, %v12459_v43  ;;  %v4092_v18 = vsel %vm12463_vm9, %v4027_v58, %v6404_v3  ;;  %vm12464_vm0 = vmmov %vm12463_vm9  ;;  %v6443_v62 = vunpack.i.l.bf16 %v6442_v24  ;;  %v10088_v43 = vpop.permute.xlu0 %6456  ;;  %v5970_v38 = vpop.f32.mrf.mxu0  ;;  %6741 = vrot.lane.b32.xlu0 %v9601_v1, %s7220_s24 }
 0x22b   : > { %12458 = vst [vmem:[#allocation37_spill] sm:$0xff] %v10068_v56  ;;  %12462 = vst [vmem:[#allocation19_spill] sm:$0xff] %v10075_v26  ;;  %v4091_v6 = vsel %vm12464_vm0, %v4026_v28, %v6403_v7  ;;  %v10084_v32 = vsel %vm12465_vm1, %v3964_v37, %v6379_v33  ;;  %v6409_v44 = vunpack.i.h.bf16 %v9849_v25  ;;  %v6408_v31 = vunpack.i.l.bf16 %v9849_v25  ;;  %v6467_v3 = vpop.permute.xlu1 %6466  ;;  %6761 = vrot.lane.b32.xlu1 %v9613_v48, %s7218_s17 }
 0x22c   : > { %v10091_v19 = vsel %vm12466_vm6, %v3963_v22, %v6378_v4  ;;  %v6389_v58 = vunpack.i.h.bf16 %v9814_v0  ;;  %v6388_v24 = vunpack.i.l.bf16 %v9814_v0  ;;  %v10097_v7 = vpack.i.bf16 %v10075_v26, %v10068_v56  ;;  %v10107_v4 = vpop.f32.mrf.mxu0  ;;  %vm12474_vm10 = vmmov %vm12461_vm12 }
 0x22d   : > { %v6469_v37 = vunpack.i.h.bf16 %v6467_v3  ;;  %v6468_v28 = vunpack.i.l.bf16 %v6467_v3  ;;  %vm12467_vm11 = vcmask 654336   ;;  %vm12469_vm2 = vcmask 785408   ;;  %vm12476_vm5 = vmmov %vm12474_vm10 }
 0x22e   : > { %v4156_v25 = vsel %vm12467_vm11, %v4091_v6, %v6408_v31  ;;  %vm12468_vm4 = vmmov %vm12467_vm11  ;;  %v10109_v38 = vpop.permute.xlu0 %6461  ;;  %v12472_v31 = vrot.slane %v9767_v5, 1  ;;  %v2280_v1 = vsel %vm2167_vm3, %v7534_v40, %v11838_v50  ;;  %v6393_v6 = vunpack.i.l.bf16 %v9839_v49  ;;  %6751 = vrot.lane.b32.xlu0 %v9503_v23, %s7222_s10  ;;  %v12484_v23 = vld [vmem:[#allocation44_spill] sm:$0xff] }
 0x22f   : > { %v4157_v33 = vsel %vm12468_vm4, %v4092_v18, %v6409_v44  ;;  %v4220_v22 = vsel %vm12469_vm2, %v4156_v25, %v6443_v62  ;;  %vm12470_vm13 = vmmov %vm12469_vm2  ;;  %v12473_v44 = vrot.slane %v9767_v5, 2  ;;  %v5971_v25 = vpop.f32.mrf.mxu0  ;;  %vm12479_vm15 = vcmask 130048   ;;  %6766 = vrot.lane.b32.xlu1 %v9621_v14, %s7220_s24 }
 0x230   : > { %v4221_v0 = vsel %vm12470_vm13, %v4157_v33, %v6444_v63  ;;  %v4285_v3 = vsel %vm12440_vm7, %v4220_v22, %v6468_v28  ;;  %v2278_v18 = vsel %vm2167_vm3, %v12472_v31, %v7534_v40  ;;  %v10122_v63 = vpop.permute.xlu1 %6476  ;;  %v10134_v28 = vsel %vm12476_vm5, %v12093_v45, %v11839_v53  ;;  %v12478_v33 = vld [vmem:[#allocation29_spill] sm:$0xff]  ;;  %vm12481_vm12 = vmmov %vm12479_vm15 }
 0x231   : > { %v4286_v11 = vsel %vm12471_vm8, %v4221_v0, %v6469_v37  ;;  %v10128_v37 = vsel %vm12474_vm10, %v12473_v44, %v12093_v45  ;;  %12477 = vst [vmem:[#allocation25_spill] sm:$0xff] %v10134_v28  ;;  %v3901_v22 = vsel %vm12479_vm15, %v12478_v33, %v6389_v58  ;;  %v12480_v0 = vld [vmem:[#allocation28_spill] sm:$0xff]  ;;  %v547_v36 = vshra.s32 %v10056_v46, 5  ;;  %v10151_v33 = vpop.f32.mrf.mxu0  ;;  %vm12487_vm9 = vmmov %vm12481_vm12 }
 0x232   : > { %v4349_v62 = vpack.c.bf16 %v4286_v11, %v4285_v3  ;;  %12475 = vst [vmem:[#allocation20_spill] sm:$0xff] %v10128_v37  ;;  %v3900_v31 = vsel %vm12481_vm12, %v12480_v0, %v6388_v24  ;;  %v6394_v50 = vunpack.i.h.bf16 %v9839_v49  ;;  %v10148_v25 = vpack.i.bf16 %v2280_v1, %v2278_v18  ;;  %v10153_v24 = vpop.permute.xlu0 %6471  ;;  %v12485_v0 = vld [vmem:[#allocation43_spill] sm:$0xff]  ;;  %6776 = vrot.lane.b32.xlu0 %v9613_v48, %s7222_s10 }
 0x233   : > { %v404_v58 = vadd.s32 512, %v12143_v27  ;;  %v12486_v53 = vpack.c.bf16 %v12484_v23, %v12485_v0  ;;  %v10161_v49 = vpack.i.bf16 %v10134_v28, %v10128_v37  ;;  %v405_v18 = vadd.s32 520, %v12143_v27  ;;  %v5974_v0 = vpop.f32.mrf.mxu0  ;;  %6771 = vrot.lane.b32.xlu1 %v9613_v48, %s7225_s25 }
 0x234   : > { %4681 = vmatmul.mubr.bf16.gmra.mxu1 %v4349_v62  ;;  %v10165_v62 = vpack.i.bf16 %v10014_v59, %v9943_v21  ;;  %v10169_v1 = vsel %vm3940_vm14, %v3900_v31, %v6393_v6  ;;  %v10171_v44 = vpop.permute.xlu1 %6481  ;;  %vm10182_vm0 = vcmp.ge.s32.totalorder %v547_v36, 1  ;;  %vm10186_vm1 = vcmp.le.s32.totalorder %v547_v36, 16 }
 0x235   : > { %5434 = vmatprep.mubr.msk.bf16.mxu1 %vm12487_vm9, %v12486_v53  ;;  %12488 = vst [vmem:[#allocation8_spill] sm:$0xff] %v10161_v49  ;;  %v551_v20 = vshra.s32 %v404_v58, 5  ;;  %v624_v5 = vand.u32 31, %v404_v58  ;;  %v10176_v53 = vld [vmem:[%s11713_s2] ss:$0 sm:$0xff]  ;;  %v552_v31 = vshra.s32 %v405_v18, 5  ;;  %v1799_v18 = vpop.f32.mrf.mxu0  ;;  %v6429_v28 = vunpack.i.h.bf16 %v9922_v15  ;;  %vm839_vm2 = vmand %vm10182_vm0, %vm10186_vm1 }
 0x236   : > { %12489 = vst [vmem:[#allocation41_spill] sm:$0xff] %v10165_v62  ;;  %v1773_v23 = vadd.f32 %v10176_v53, %v9821_v13  ;;  %v1776_v58 = vadd.f32 %v10176_v53, %v9881_v42  ;;  %v620_v13 = vand.u32 31, %v10056_v46  ;;  %v1757_v0 = vadd.f32 %v10176_v53, %v9538_v30  ;;  %v10208_v26 = vpop.permute.xlu0 %6496  ;;  %6786 = vrot.lane.b32.xlu0 %v9625_v51, %s7221_s29 }
 0x237   : > { %vm10197_vm6 = vcmp.ge.s32.totalorder %v551_v20, 1  ;;  %vm10201_vm11 = vcmp.le.s32.totalorder %v551_v20, 16  ;;  %v6428_v42 = vunpack.i.l.bf16 %v9922_v15  ;;  %v6434_v37 = vunpack.i.h.bf16 %v10006_v9  ;;  %v5975_v56 = vpop.f32.mrf.mxu0  ;;  %6781 = vrot.lane.b32.xlu1 %v9621_v14, %s7223_s11 }
 0x238   : > { %v10211_v46 = vadd.s32 496, %v12143_v27  ;;  %vm843_vm4 = vmand %vm10197_vm6, %vm10201_vm11  ;;  %v6433_v30 = vunpack.i.l.bf16 %v10006_v9  ;;  %v10218_v20 = vpop.permute.xlu1 %6486  ;;  %vm916_vm13 = vcmp.ge.s32.totalorder %v624_v5, 1  ;;  %v1874_v15 = vmax.f32 %v1773_v23, 0.0 }
 0x239   : > { %vm10224_vm7 = vcmp.ge.s32.totalorder %v552_v31, 1  ;;  %v10229_v36 = vsel %vm3940_vm14, %v3901_v22, %v6394_v50  ;;  %vm10233_vm8 = vmand %vm843_vm4, %vm916_vm13  ;;  %vm10237_vm10 = vcmp.le.s32.totalorder %v552_v31, 16  ;;  %v1875_v5 = vmax.f32 %v1776_v58, 0.0  ;;  %v10254_v22 = vpop.f32.mrf.mxu0 }
 0x23a   : > { %v6454_v23 = vunpack.i.h.bf16 %v10041_v2  ;;  %v6453_v45 = vunpack.i.l.bf16 %v10041_v2  ;;  %vm10245_vm5 = vcmp.ge.s32.totalorder %v620_v13, 1  ;;  %v401_v56 = vadd.s32 488, %v12143_v27  ;;  %vm844_vm15 = vmand %vm10224_vm7, %vm10237_vm10  ;;  %v10260_v48 = vpop.permute.xlu0 %6506  ;;  %6791 = vrot.lane.b32.xlu0 %v9625_v51, %s7224_s23 }
 0x23b   : > { %vm12506_vm12 = vcmask 523264   ;;  %v1870_v58 = vmax.f32 %v1757_v0, 0.0  ;;  %v549_v13 = vshra.s32 %v10211_v46, 5  ;;  %vm12508_vm6 = vcmask 654336   ;;  %vm10280_vm4 = vmand %vm839_vm2, %vm10245_vm5 }
 0x23c   : > { %v4094_v31 = vsel %vm12506_vm12, %v10084_v32, %v6429_v28  ;;  %vm12507_vm9 = vmmov %vm12506_vm12  ;;  %v6492_v49 = vpop.permute.xlu1 %6491  ;;  %v10267_v18 = vsel %vm10233_vm8, %v1874_v15, 0.0  ;;  %v10269_v11 = vsel %vm844_vm15, %v1875_v5, 0.0  ;;  %v5978_v32 = vpop.f32.mrf.mxu0  ;;  %vm12513_vm13 = vcmask 785408  }
 0x23d   : > { %v4093_v2 = vsel %vm12507_vm9, %v10091_v19, %v6428_v42  ;;  %v4159_v62 = vsel %vm12508_vm6, %v4094_v31, %v6434_v37  ;;  %vm12509_vm11 = vmmov %vm12508_vm6  ;;  %v6494_v28 = vunpack.i.h.bf16 %v6492_v49  ;;  %v6493_v3 = vunpack.i.l.bf16 %v6492_v49 }
 0x23e   : > { %v4158_v9 = vsel %vm12509_vm11, %v4093_v2, %v6433_v30  ;;  %v10286_v37 = vpack.i.bf16 %v10269_v11, %v10267_v18  ;;  %v6414_v49 = vunpack.i.h.bf16 %v9899_v8  ;;  %vm12514_vm7 = vmmov %vm12513_vm13  ;;  %v548_v0 = vshra.s32 %v401_v56, 5  ;;  %v1807_v6 = vpop.f32.mrf.mxu0  ;;  %v10294_v30 = vpop.permute.xlu0 %6511  ;;  %v12522_v2 = vld [vmem:[#allocation30_spill] sm:$0xff] }
 0x23f   : > { %v4222_v51 = vsel %vm12513_vm13, %v4158_v9, %v6453_v45  ;;  %v4223_v17 = vsel %vm12514_vm7, %v4159_v62, %v6454_v23  ;;  %v6413_v42 = vunpack.i.l.bf16 %v9899_v8  ;;  %vm12515_vm0 = vcmask 916480  }
 0x240   : > { %12512 = vst [vmem:[#allocation40_spill] sm:$0xff] %v10286_v37  ;;  %v4287_v15 = vsel %vm12515_vm0, %v4222_v51, %v6493_v3  ;;  %vm12516_vm1 = vmmov %vm12515_vm0  ;;  %v1760_v5 = vadd.f32 %v10176_v53, %v9603_v55  ;;  %v6439_v50 = vunpack.i.h.bf16 %v9965_v12  ;;  %v10301_v14 = vpop.permute.xlu1 %6501  ;;  %v10305_v62 = vsel %vm10280_vm4, %v1870_v58, 0.0  ;;  %v5979_v23 = vpop.f32.mrf.mxu0  ;;  %v12517_v3 = vld [vmem:[#allocation31_spill] sm:$0xff] }
 0x241   : > { %v4288_v52 = vsel %vm12516_vm1, %v4223_v17, %v6494_v28  ;;  %v622_v8 = vand.u32 31, %v10211_v46  ;;  %v6438_v56 = vunpack.i.l.bf16 %v9965_v12  ;;  %6801 = vrot.lane.b32.xlu0 %v12517_v3, %s7224_s23  ;;  %vm10311_vm2 = vcmp.ge.s32.totalorder %v549_v13, 1  ;;  %6796 = vrot.lane.b32.xlu1 %v12517_v3, %s7221_s29  ;;  %v12528_v28 = vld [vmem:[#allocation32_spill] sm:$0xff] }
 0x242   : > { %v4351_v45 = vpack.c.bf16 %v4288_v52, %v4287_v15  ;;  %vm10315_vm8 = vcmp.le.s32.totalorder %v549_v13, 16  ;;  %v1765_v58 = vadd.f32 %v10176_v53, %v12522_v2  ;;  %v6474_v9 = vunpack.i.h.bf16 %v10153_v24  ;;  %v12572_v15 = vld [vmem:[#allocation57_spill] sm:$0xff] }
 0x243   : > { %v6473_v46 = vunpack.i.l.bf16 %v10153_v24  ;;  %vm10325_vm10 = vcmp.ge.s32.totalorder %v548_v0, 1  ;;  %vm10329_vm5 = vcmp.le.s32.totalorder %v548_v0, 16  ;;  %vm12527_vm15 = vcmask 130048   ;;  %v10337_v24 = vpop.permute.xlu0 %6521  ;;  %vm841_vm6 = vmand %vm10311_vm2, %vm10315_vm8 }
 0x244   : > { %4689 = vmatmul.mubr.bf16.gmra.mxu1 %v4351_v45  ;;  %v3903_v32 = vsel %vm12527_vm15, 0.0, %v6414_v49  ;;  %vm12529_vm12 = vmmov %vm12527_vm15  ;;  %v6418_v51 = vunpack.i.l.bf16 %v9927_v16  ;;  %v12530_v17 = vpack.c.bf16 %v12362_v29, %v12361_v10  ;;  %v6419_v6 = vunpack.i.h.bf16 %v9927_v16  ;;  %v10344_v0 = vpop.permute.xlu1 %6516 }
 0x245   : > { %v3902_v19 = vsel %vm12529_vm12, %v12528_v28, %v6413_v42  ;;  %vm12531_vm9 = vmmov %vm12529_vm12  ;;  %v1871_v52 = vmax.f32 %v1760_v5, 0.0  ;;  %vm10351_vm11 = vcmp.le.s32.totalorder %v622_v8, 16  ;;  %vm12534_vm4 = vcmask 392192   ;;  %6806 = vrot.lane.b32.xlu0 %v9784_v35, %s7218_s17  ;;  %6816 = vrot.lane.b32.xlu1 %v9784_v35, %s7225_s25 }
 0x246   : > { %5435 = vmatprep.mubr.msk.bf16.mxu1 %vm12531_vm9, %v12530_v17  ;;  %v4031_v10 = vsel %vm12534_vm4, %v10229_v36, %v6439_v50  ;;  %vm12535_vm13 = vmmov %vm12534_vm4  ;;  %v1872_v42 = vmax.f32 %v1765_v58, 0.0  ;;  %vm12536_vm0 = vcmask 523264   ;;  %v6514_v36 = vunpack.i.h.bf16 %v10294_v30 }
 0x247   : > { %v4030_v29 = vsel %vm12535_vm13, %v10169_v1, %v6438_v56  ;;  %vm840_vm7 = vmand %vm10325_vm10, %vm10329_vm5  ;;  %v4096_v5 = vsel %vm12536_vm0, %v4031_v10, %v6474_v9  ;;  %v6513_v50 = vunpack.i.l.bf16 %v10294_v30  ;;  %v3967_v1 = vsel %vm3940_vm14, %v3902_v19, %v6418_v51  ;;  %v10375_v56 = vpop.permute.xlu0 %6526  ;;  %v12551_v30 = vld [vmem:[#allocation51_spill] sm:$0xff] }
 0x248   : > { %vm12537_vm1 = vmmov %vm12536_vm0  ;;  %v6479_v8 = vunpack.i.h.bf16 %v10122_v63  ;;  %v6478_v23 = vunpack.i.l.bf16 %v10122_v63  ;;  %v406_v3 = vadd.s32 528, %v12143_v27  ;;  %v3968_v2 = vsel %vm3940_vm14, %v3903_v32, %v6419_v6  ;;  %v6537_v58 = vpop.permute.xlu1 %6536 }
 0x249   : > { %v4095_v45 = vsel %vm12537_vm1, %v4030_v29, %v6473_v46  ;;  %vm10384_vm10 = vmand %vm841_vm6, %vm10351_vm11  ;;  %v10390_v9 = vsel %vm840_vm7, %v1871_v52, 0.0  ;;  %v12540_v63 = vrot.slane %v10014_v59, 1  ;;  %v12541_v46 = vrot.slane %v9943_v21, 1  ;;  %6811 = vrot.lane.b32.xlu0 %v9876_v54, %s7220_s24  ;;  %6826 = vrot.lane.b32.xlu1 %v9876_v54, %s7223_s11 }
 0x24a   : > { %v12542_v55 = vrot.slane %v10022_v60, 1  ;;  %v6539_v28 = vunpack.i.h.bf16 %v6537_v58  ;;  %v6538_v19 = vunpack.i.l.bf16 %v6537_v58  ;;  %vm12544_vm2 = vcmask 654336   ;;  %vm12556_vm11 = vmmov %vm12534_vm4 }
 0x24b   : > { %v2282_v31 = vsel %vm2167_vm3, %v12541_v46, %v12540_v63  ;;  %v12543_v12 = vmov %v12540_v63  ;;  %v4160_v32 = vsel %vm12544_vm2, %v4095_v45, %v6478_v23  ;;  %vm12545_vm8 = vmmov %vm12544_vm2  ;;  %v6449_v17 = vunpack.i.h.bf16 %v10050_v34  ;;  %v10416_v29 = vpop.permute.xlu0 %6531 }
 0x24c   : > { %v2284_v13 = vsel %vm2167_vm3, %v12543_v12, %v12542_v55  ;;  %v4161_v51 = vsel %vm12545_vm8, %v4096_v5, %v6479_v8  ;;  %vm12546_vm5 = vcmask 785408   ;;  %v10413_v49 = vsel %vm10384_vm10, %v1872_v42, 0.0  ;;  %v10420_v23 = vpop.permute.xlu1 %6546  ;;  %v12550_v42 = vld [vmem:[#allocation50_spill] sm:$0xff]  ;;  %vm12562_vm13 = vmmov %vm12556_vm11 }
 0x24d   : > { %v4224_v6 = vsel %vm12546_vm5, %v4160_v32, %v6513_v50  ;;  %vm12547_vm15 = vmmov %vm12546_vm5  ;;  %v6448_v10 = vunpack.i.l.bf16 %v10050_v34  ;;  %vm12548_vm12 = vcmask 916480   ;;  %v553_v8 = vshra.s32 %v406_v3, 5  ;;  %6821 = vrot.lane.b32.xlu0 %v9784_v35, %s7222_s10 }
 0x24e   : > { %v4225_v52 = vsel %vm12547_vm15, %v4161_v51, %v6514_v36  ;;  %v4289_v45 = vsel %vm12548_vm12, %v4224_v6, %v6538_v19  ;;  %vm12549_vm9 = vmmov %vm12548_vm12  ;;  %v10425_v36 = vpack.i.bf16 %v12027_v57, %v10022_v60  ;;  %v10432_v63 = vpack.i.bf16 %v2284_v13, %v2282_v31  ;;  %v12557_v19 = vld [vmem:[#allocation53_spill] sm:$0xff] }
 0x24f   : > { %v4290_v5 = vsel %vm12549_vm9, %v4225_v52, %v6539_v28  ;;  %v12552_v46 = vrot.slane %v10014_v59, 2  ;;  %v12553_v55 = vrot.slane %v9943_v21, 2  ;;  %vm12554_vm6 = vcmask 1045504   ;;  %6831 = vrot.lane.b32.xlu1 %v12557_v19, %s7218_s17  ;;  %v10453_v52 = vpop.permute.xlu0 %6541  ;;  %v12581_v59 = vld [vmem:[#allocation34_spill] sm:$0xff] }
 0x250   : > { %v4353_v54 = vpack.c.bf16 %v4290_v5, %v4289_v45  ;;  %v4033_v28 = vsel %vm12556_vm11, %v3968_v2, %v6449_v17  ;;  %v12558_v35 = vrot.slane %v10022_v60, 2  ;;  %vm12560_vm4 = vmmov %vm12554_vm6  ;;  %v626_v13 = vand.u32 31, %v406_v3  ;;  %v12563_v45 = vld [vmem:[#allocation59_spill] sm:$0xff]  ;;  %v12564_v2 = vld [vmem:[#allocation58_spill] sm:$0xff] }
 0x251   : > { %v10439_v12 = vsel %vm12554_vm6, %v12553_v55, %v12552_v46  ;;  %v12559_v32 = vmov %v12552_v46  ;;  %v408_v51 = vadd.s32 544, %v12143_v27  ;;  %v4032_v6 = vsel %vm12562_vm13, %v3967_v1, %v6448_v10  ;;  %v10469_v1 = vpop.permute.xlu1 %6551  ;;  %v12571_v10 = vld [vmem:[#allocation21_spill] sm:$0xff]  ;;  %6846 = vrot.lane.b32.xlu0 %v12557_v19, %s7222_s10 }
 0x252   : > { %12555 = vst [vmem:[#allocation54_spill] sm:$0xff] %v10439_v12  ;;  %4697 = vmatmul.mubr.bf16.gmra.mxu1 %v4353_v54  ;;  %v10449_v31 = vsel %vm12560_vm4, %v12559_v32, %v12558_v35  ;;  %v12565_v17 = vpack.c.bf16 %v12563_v45, %v12564_v2  ;;  %vm12566_vm7 = vcmask 130048   ;;  %vm10459_vm0 = vcmp.ge.s32.totalorder %v553_v8, 1 }
 0x253   : > { %12561 = vst [vmem:[#allocation61_spill] sm:$0xff] %v10449_v31  ;;  %vm10463_vm1 = vcmp.le.s32.totalorder %v553_v8, 16  ;;  %v409_v3 = vadd.s32 552, %v12143_v27  ;;  %v1781_v55 = vadd.f32 %v10176_v53, %v12571_v10  ;;  %v555_v35 = vshra.s32 %v408_v51, 5  ;;  %6836 = vrot.lane.b32.xlu1 %v12572_v15, %s7220_s24  ;;  %v10502_v2 = vpop.permute.xlu0 %6566 }
 0x254   : > { %5436 = vmatprep.mubr.msk.bf16.mxu1 %vm12566_vm7, %v12565_v17  ;;  %v628_v32 = vand.u32 31, %v408_v51  ;;  %v6499_v8 = vunpack.i.h.bf16 %v10208_v26  ;;  %vm845_vm10 = vmand %vm10459_vm0, %vm10463_vm1  ;;  %vm10484_vm2 = vcmp.le.s32.totalorder %v626_v13, 16  ;;  %v6463_v34 = vunpack.i.l.bf16 %v10109_v38 }
 0x255   : > { %v556_v17 = vshra.s32 %v409_v3, 5  ;;  %vm10488_vm8 = vcmp.ge.s32.totalorder %v555_v35, 1  ;;  %vm10492_vm5 = vcmp.le.s32.totalorder %v555_v35, 16  ;;  %v1789_v3 = vadd.f32 %v10176_v53, %v10077_v61  ;;  %v10509_v45 = vpop.permute.xlu1 %6556  ;;  %6856 = vrot.lane.b32.xlu0 %v12581_v59, %s7221_s29  ;;  %vm10526_vm6 = vmand %vm845_vm10, %vm10484_vm2 }
 0x256   : > { %v6484_v16 = vunpack.i.h.bf16 %v10171_v44  ;;  %v6498_v13 = vunpack.i.l.bf16 %v10208_v26  ;;  %v6504_v50 = vunpack.i.h.bf16 %v10301_v14  ;;  %vm847_vm15 = vmand %vm10488_vm8, %vm10492_vm5  ;;  %v6503_v35 = vunpack.i.l.bf16 %v10301_v14 }
 0x257   : > { %v1876_v61 = vmax.f32 %v1781_v55, 0.0  ;;  %vm920_vm12 = vcmp.ge.s32.totalorder %v628_v32, 1  ;;  %vm10511_vm9 = vcmp.ge.s32.totalorder %v556_v17, 1  ;;  %v6483_v26 = vunpack.i.l.bf16 %v10171_v44  ;;  %6841 = vrot.lane.b32.xlu1 %v12557_v19, %s7225_s25 }
 0x258   : > { %v3007_v21 = vrot.slane %v10269_v11, 1  ;;  %vm10530_vm11 = vcmp.le.s32.totalorder %v556_v17, 16  ;;  %v1792_v44 = vadd.f32 %v10176_v53, %v10107_v4  ;;  %vm12586_vm4 = vcmask 523264   ;;  %vm10546_vm13 = vmand %vm847_vm15, %vm920_vm12 }
 0x259   : > { %v4098_v32 = vsel %vm12586_vm4, %v4033_v28, %v6499_v8  ;;  %v6524_v51 = vunpack.i.h.bf16 %v10337_v24  ;;  %v6523_v5 = vunpack.i.l.bf16 %v10337_v24  ;;  %v1878_v17 = vmax.f32 %v1789_v3, 0.0  ;;  %vm12589_vm7 = vmmov %vm12586_vm4  ;;  %v10553_v24 = vpop.permute.xlu0 %6576  ;;  %v6562_v3 = vpop.permute.xlu1 %6561  ;;  %6861 = vrot.lane.b32.xlu0 %v12581_v59, %s7224_s23 }
 0x25a   : > { %v4097_v4 = vsel %vm12589_vm7, %v4032_v6, %v6498_v13  ;;  %v6509_v28 = vunpack.i.h.bf16 %v10260_v48  ;;  %v6508_v8 = vunpack.i.l.bf16 %v10260_v48  ;;  %v11853_v19 = vrot.slane %v10267_v18, 1  ;;  %vm848_vm0 = vmand %vm10511_vm9, %vm10530_vm11 }
 0x25b   : > { %vm12590_vm1 = vcmask 654336   ;;  %v10564_v6 = vsel %vm10526_vm6, %v1876_v61, 0.0  ;;  %v1879_v13 = vmax.f32 %v1792_v44, 0.0  ;;  %v6564_v48 = vunpack.i.h.bf16 %v6562_v3  ;;  %6851 = vrot.lane.b32.xlu1 %v12572_v15, %s7223_s11 }
 0x25c   : > { %v4163_v58 = vsel %vm12590_vm1, %v4098_v32, %v6504_v50  ;;  %vm12591_vm10 = vmmov %vm12590_vm1  ;;  %v6563_v37 = vunpack.i.l.bf16 %v6562_v3  ;;  %v410_v55 = vadd.s32 560, %v12143_v27  ;;  %v3008_v46 = vsel %vm2167_vm3, %v11853_v19, %v3007_v21 }
 0x25d   : > { %v4162_v10 = vsel %vm12591_vm10, %v4097_v4, %v6503_v35  ;;  %vm12592_vm2 = vcmask 785408   ;;  %v10578_v61 = vsel %vm10546_vm13, %v1878_v17, 0.0  ;;  %v10580_v14 = vsel %vm848_vm0, %v1879_v13, 0.0  ;;  %v6582_v59 = vpop.permute.xlu0 %6581  ;;  %v12600_v13 = vld [vmem:[#allocation35_spill] sm:$0xff] }
 0x25e   : > { %v4226_v50 = vsel %vm12592_vm2, %v4162_v10, %v6523_v5  ;;  %vm12593_vm8 = vmmov %vm12592_vm2  ;;  %vm12594_vm5 = vcmask 916480   ;;  %v3009_v4 = vrot.slane %v10564_v6, 1  ;;  %v6544_v5 = vunpack.i.h.bf16 %v10453_v52  ;;  %v12597_v10 = vld [vmem:[#allocation36_spill] sm:$0xff] }
 0x25f   : > { %v4227_v35 = vsel %vm12593_vm8, %v4163_v58, %v6524_v51  ;;  %v4291_v44 = vsel %vm12594_vm5, %v4226_v50, %v6563_v37  ;;  %vm12595_vm15 = vmmov %vm12594_vm5  ;;  %v6543_v51 = vunpack.i.l.bf16 %v10453_v52  ;;  %v10589_v58 = vpop.permute.xlu1 %6571  ;;  %v12596_v17 = vunpack.i.h.bf16 %v10088_v43  ;;  %v12602_v50 = vld [vmem:[#allocation24_spill] sm:$0xff] }
 0x260   : > { %v4292_v32 = vsel %vm12595_vm15, %v4227_v35, %v6564_v48  ;;  %vm12598_vm12 = vcmask 130048   ;;  %v12599_v37 = vunpack.i.l.bf16 %v10088_v43  ;;  %6871 = vrot.lane.b32.xlu0 %v12602_v50, %s7224_s23  ;;  %v10603_v35 = vpack.i.bf16 %v10449_v31, %v10439_v12  ;;  %v12605_v43 = vld [vmem:[#allocation39_spill] sm:$0xff]  ;;  %6866 = vrot.lane.b32.xlu1 %v12602_v50, %s7221_s29 }
 0x261   : > { %v4355_v54 = vpack.c.bf16 %v4292_v32, %v4291_v44  ;;  %v3905_v3 = vsel %vm12598_vm12, %v12597_v10, %v12596_v17  ;;  %vm12601_vm9 = vmmov %vm12598_vm12  ;;  %v557_v52 = vshra.s32 %v410_v55, 5  ;;  %v12603_v32 = vunpack.i.h.bf16 %v10109_v38 }
 0x262   : > { %v3904_v48 = vsel %vm12601_vm9, %v12600_v13, %v12599_v37  ;;  %vm12604_vm6 = vmmov %vm12601_vm9  ;;  %v6489_v37 = vunpack.i.h.bf16 %v10218_v20  ;;  %vm12607_vm4 = vcmask 392192   ;;  %v12609_v38 = vpack.c.bf16 %v12454_v47, %v12453_v41 }
 0x263   : > { %v3969_v44 = vsel %vm3940_vm14, %v3904_v48, %v6463_v34  ;;  %v3970_v15 = vsel %vm3940_vm14, %v3905_v3, %v12603_v32  ;;  %v10610_v17 = vsel %vm12604_vm6, 0.0, %v6484_v16  ;;  %vm12606_vm11 = vmmov %vm12604_vm6  ;;  %4705 = vmatmul.mubr.bf16.gmra.mxu1 %v4355_v54  ;;  %v10619_v48 = vpop.permute.xlu0 %6591  ;;  %v3010_v16 = vsel %vm2167_vm3, %v3007_v21, %v3009_v4  ;;  %v10630_v3 = vpop.permute.xlu1 %6586 }
 0x264   : > { %v3906_v10 = vsel %vm12606_vm11, %v12605_v43, %v6483_v26  ;;  %v4035_v13 = vsel %vm12607_vm4, %v3970_v15, %v6509_v28  ;;  %vm12608_vm13 = vmmov %vm12607_vm4  ;;  %vm12611_vm0 = vcmask 523264   ;;  %v630_v28 = vand.u32 31, %v410_v55  ;;  %6876 = vrot.lane.b32.xlu0 %v10061_v39, %s7218_s17  ;;  %6886 = vrot.lane.b32.xlu1 %v10061_v39, %s7225_s25 }
 0x265   : > { %v4034_v34 = vsel %vm12608_vm13, %v3969_v44, %v6508_v8  ;;  %vm12610_vm7 = vmmov %vm12604_vm6  ;;  %v4100_v26 = vsel %vm12611_vm0, %v4035_v13, %v6544_v5  ;;  %v10632_v15 = vpack.i.bf16 %v3010_v16, %v3008_v46  ;;  %v6583_v8 = vunpack.i.l.bf16 %v6582_v59 }
 0x266   : > { %5437 = vmatprep.mubr.msk.bf16.mxu1 %vm12610_vm7, %v12609_v38  ;;  %vm12612_vm1 = vmmov %vm12611_vm0  ;;  %vm10636_vm10 = vcmp.ge.s32.totalorder %v557_v52, 1  ;;  %vm10640_vm2 = vcmp.le.s32.totalorder %v557_v52, 16  ;;  %v6549_v21 = vunpack.i.h.bf16 %v10420_v23  ;;  %v6548_v5 = vunpack.i.l.bf16 %v10420_v23 }
 0x267   : > { %v4099_v54 = vsel %vm12612_vm1, %v4034_v34, %v6543_v51  ;;  %v6584_v51 = vunpack.i.h.bf16 %v6582_v59  ;;  %v1797_v55 = vadd.f32 %v10176_v53, %v10151_v33  ;;  %v6488_v46 = vunpack.i.l.bf16 %v10218_v20  ;;  %v10651_v50 = vpop.permute.xlu0 %6596  ;;  %v6607_v43 = vpop.permute.xlu1 %6606  ;;  %vm849_vm15 = vmand %vm10636_vm10, %vm10640_vm2 }
 0x268   : > { %v3207_v52 = vrot.slane %v10269_v11, 2  ;;  %v3209_v44 = vrot.slane %v10564_v6, 2  ;;  %v3013_v32 = vrot.slane %v10578_v61, 1  ;;  %vm12617_vm8 = vcmask 654336   ;;  %6881 = vrot.lane.b32.xlu0 %v10097_v7, %s7220_s24  ;;  %6896 = vrot.lane.b32.xlu1 %v10097_v7, %s7223_s11 }
 0x269   : > { %v4164_v23 = vsel %vm12617_vm8, %v4099_v54, %v6548_v5  ;;  %vm12618_vm5 = vmmov %vm12617_vm8  ;;  %vm10662_vm12 = vcmp.le.s32.totalorder %v630_v28, 16  ;;  %v412_v11 = vadd.s32 576, %v12143_v27  ;;  %v6609_v13 = vunpack.i.h.bf16 %v6607_v43  ;;  %v4602_v54 = vpop.f32.mrf.mxu1 }
 0x26a   : > { %v4165_v59 = vsel %vm12618_vm5, %v4100_v26, %v6549_v21  ;;  %v6608_v34 = vunpack.i.l.bf16 %v6607_v43  ;;  %vm12621_vm9 = vcmask 785408   ;;  %v1805_v16 = vadd.f32 %v10176_v53, %v10254_v22  ;;  %v10675_v26 = vld [vmem:[%s11715_s4] ss:$0 sm:$0xff]  ;;  %vm10691_vm13 = vmand %vm849_vm15, %vm10662_vm12 }
 0x26b   : > { %v4228_v38 = vsel %vm12621_vm9, %v4164_v23, %v6583_v8  ;;  %vm12622_vm6 = vmmov %vm12621_vm9  ;;  %v1880_v28 = vmax.f32 %v1797_v55, 0.0  ;;  %v559_v21 = vshra.s32 %v412_v11, 5  ;;  %v632_v5 = vand.u32 31, %v412_v11  ;;  %v10680_v43 = vpop.permute.xlu0 %6601  ;;  %v4604_v41 = vpop.f32.mrf.mxu1 }
 0x26c   : > { %v4229_v27 = vsel %vm12622_vm6, %v4165_v59, %v6584_v51  ;;  %vm12623_vm11 = vcmask 916480   ;;  %v3012_v22 = vsel %vm2167_vm3, %v3009_v4, %v7534_v40  ;;  %v3014_v51 = vsel %vm2167_vm3, %v7534_v40, %v3013_v32  ;;  %v10704_v23 = vpop.permute.xlu1 %6616  ;;  %6891 = vrot.lane.b32.xlu0 %v10061_v39, %s7222_s10  ;;  %6901 = vrot.lane.b32.xlu1 %v10148_v25, %s7218_s17 }
 0x26d   : > { %v4293_v8 = vsel %vm12623_vm11, %v4228_v38, %v6608_v34  ;;  %vm12624_vm4 = vmmov %vm12623_vm11  ;;  %v3971_v55 = vsel %vm3940_vm14, %v3906_v10, %v6488_v46  ;;  %v11854_v59 = vrot.slane %v10267_v18, 2  ;;  %vm10707_vm7 = vcmp.ge.s32.totalorder %v559_v21, 1  ;;  %v4605_v34 = vpop.f32.mrf.mxu1 }
 0x26e   : > { %v4294_v53 = vsel %vm12624_vm4, %v4229_v27, %v6609_v13  ;;  %v6519_v4 = vunpack.i.h.bf16 %v10344_v0  ;;  %v4603_v11 = vadd.f32 %v10675_v26, %v4602_v54  ;;  %vm10715_vm0 = vcmp.le.s32.totalorder %v559_v21, 16  ;;  %v12631_v54 = vld [vmem:[#allocation46_spill] sm:$0xff]  ;;  %v12632_v27 = vld [vmem:[#allocation12_spill] sm:$0xff] }
 0x26f   : > { %v4357_v47 = vpack.c.bf16 %v4294_v53, %v4293_v8  ;;  %v1882_v46 = vmax.f32 %v1805_v16, 0.0  ;;  %v6518_v13 = vunpack.i.l.bf16 %v10344_v0  ;;  %v10724_v38 = vsel %vm10691_vm13, %v1880_v28, 0.0  ;;  %vm851_vm1 = vmand %vm10707_vm7, %vm10715_vm0  ;;  %v10734_v16 = vpop.permute.xlu0 %6611  ;;  %v4607_v53 = vpop.f32.mrf.mxu1 }
 0x270   : > { %vm924_vm10 = vcmp.ge.s32.totalorder %v632_v5, 1  ;;  %v10730_v39 = vpack.i.bf16 %v3014_v51, %v3012_v22  ;;  %v4606_v0 = vadd.f32 %v10675_v26, %v4605_v34  ;;  %v12633_v21 = vpack.c.bf16 %v12631_v54, %v12632_v27  ;;  %v10754_v7 = vpop.permute.xlu1 %6621  ;;  %6916 = vrot.lane.b32.xlu0 %v10148_v25, %s7222_s10 }
 0x271   : > { %4713 = vmatmul.mubr.bf16.gmra.mxu1 %v4357_v47  ;;  %vm12634_vm2 = vcmask 130048   ;;  %vm997_vm8 = vmand %vm851_vm1, %vm924_vm10  ;;  %vm12635_vm5 = vcmask 1045504   ;;  %v3972_v8 = vsel %vm3940_vm14, %v10610_v17, %v6489_v37  ;;  %v12637_v22 = vrot.slane %v10390_v9, 2 }
 0x272   : > { %5438 = vmatprep.mubr.msk.bf16.mxu1 %vm12634_vm2, %v12633_v21  ;;  %v10743_v28 = vsel %vm12635_vm5, %v11854_v59, %v3207_v52  ;;  %vm12636_vm15 = vmmov %vm12635_vm5  ;;  %v12638_v51 = vrot.slane %v10305_v62, 2  ;;  %v3603_v47 = vrot.slane %v10580_v14, 1  ;;  %v4857_v33 = vmax.f32 %v4603_v11, 0.0  ;;  %v12642_v11 = vld [vmem:[#allocation8_spill] sm:$0xff] }
 0x273   : > { %v10748_v5 = vsel %vm12636_vm15, %v3207_v52, %v3209_v44  ;;  %vm12639_vm12 = vmmov %vm12635_vm5  ;;  %v4858_v20 = vmax.f32 %v4606_v0, 0.0  ;;  %v3605_v17 = vrot.slane %v10724_v38, 1  ;;  %v10769_v37 = vsel %vm997_vm8, %v1882_v46, 0.0  ;;  %6906 = vrot.lane.b32.xlu1 %v12642_v11, %s7220_s24  ;;  %v10784_v21 = vpop.permute.xlu0 %6636 }
 0x274   : > { %v10761_v41 = vsel %vm12639_vm12, %v12638_v51, %v12637_v22  ;;  %vm12640_vm9 = vcmask 392192   ;;  %v6529_v54 = vunpack.i.h.bf16 %v10375_v56  ;;  %v11856_v0 = vrot.slane %v10578_v61, 2  ;;  %vm12645_vm11 = vmmov %vm12635_vm5  ;;  %v10795_v51 = vpop.permute.xlu1 %6626 }
 0x275   : > { %v4037_v10 = vsel %vm12640_vm9, %v3972_v8, %v6519_v4  ;;  %vm12641_vm6 = vmmov %vm12640_vm9  ;;  %v6528_v46 = vunpack.i.l.bf16 %v10375_v56  ;;  %v6569_v27 = vunpack.i.h.bf16 %v10502_v2  ;;  %v5589_v4 = vpack.c.bf16 %v4858_v20, %v4857_v33 }
 0x276   : > { %v4036_v34 = vsel %vm12641_vm6, %v3971_v55, %v6518_v13  ;;  %v12643_v55 = vrot.slane %v10413_v49, 2  ;;  %v12644_v13 = vmov %v12637_v22  ;;  %v6568_v53 = vunpack.i.l.bf16 %v10502_v2  ;;  %vm12650_vm4 = vmmov %vm12635_vm5 }
 0x277   : > { %v6574_v22 = vunpack.i.h.bf16 %v10589_v58  ;;  %v3609_v56 = vrot.slane %v10769_v37, 1  ;;  %v10801_v33 = vsel %vm2167_vm3, %v3013_v32, %v3603_v47  ;;  %v6534_v20 = vunpack.i.h.bf16 %v10416_v29  ;;  %5590 = vst [vmem:[%s10777_s14] sm:$0xff] %v5589_v4   ;;  %6911 = vrot.lane.b32.xlu1 %v10148_v25, %s7225_s25  ;;  %vm12651_vm13 = vmmov %vm12650_vm4 }
 0x278   : > { %v10791_v8 = vsel %vm12645_vm11, %v12644_v13, %v12643_v55  ;;  %12646 = vst [vmem:[#allocation29_spill] sm:$0xff] %v10801_v33  ;;  %v6573_v52 = vunpack.i.l.bf16 %v10589_v58  ;;  %v12647_v55 = vld [vmem:[#allocation41_spill] sm:$0xff]  ;;  %v10809_v2 = vsel %vm2167_vm3, %v3603_v47, %v3605_v17  ;;  %v12649_v13 = vld [vmem:[#allocation3_spill] sm:$0xff]  ;;  %v6594_v32 = vunpack.i.h.bf16 %v10619_v48  ;;  %vm12654_vm0 = vmmov %vm12650_vm4 }
 0x279   : > { %6926 = vrot.lane.b32.xlu0 %v12647_v55, %s7221_s29  ;;  %12648 = vst [vmem:[#allocation28_spill] sm:$0xff] %v10809_v2  ;;  %v10815_v19 = vsel %vm12650_vm4, %v3209_v44, %v12649_v13  ;;  %v6593_v59 = vunpack.i.l.bf16 %v10619_v48  ;;  %v10827_v47 = vsel %vm12651_vm13, %v12649_v13, %v11856_v0  ;;  %vm12652_vm7 = vcmask 523264   ;;  %v10830_v44 = vpop.permute.xlu0 %6646  ;;  %vm12659_vm2 = vmmov %vm12654_vm0 }
 0x27a   : > { %v4102_v4 = vsel %vm12652_vm7, %v4037_v10, %v6569_v27  ;;  %v12653_v31 = vrot.slane %v10413_v49, 2  ;;  %v10842_v58 = vsel %vm2167_vm3, %v3605_v17, %v7534_v40  ;;  %vm12656_vm1 = vmmov %vm12652_vm7  ;;  %vm12657_vm10 = vcmask 654336   ;;  %v6632_v10 = vpop.permute.xlu1 %6631 }
 0x27b   : > { %12655 = vst [vmem:[#allocation44_spill] sm:$0xff] %v10842_v58  ;;  %v4101_v0 = vsel %vm12656_vm1, %v4036_v34, %v6568_v53  ;;  %v4167_v12 = vsel %vm12657_vm10, %v4102_v4, %v6574_v22  ;;  %v12658_v27 = vrot.slane %v10267_v18, 2  ;;  %vm12661_vm8 = vmmov %vm12657_vm10  ;;  %v6634_v2 = vunpack.i.h.bf16 %v6632_v10  ;;  %v4610_v4 = vpop.f32.mrf.mxu1  ;;  %6921 = vrot.lane.b32.xlu1 %v12642_v11, %s7223_s11 }
 0x27c   : > { %v10836_v48 = vsel %vm12654_vm0, %v12653_v31, %v12649_v13  ;;  %v10854_v31 = vsel %vm2167_vm3, %v7534_v40, %v3609_v56  ;;  %v4166_v25 = vsel %vm12661_vm8, %v4101_v0, %v6573_v52  ;;  %v6633_v17 = vunpack.i.l.bf16 %v6632_v10  ;;  %vm12673_vm13 = vmmov %vm12654_vm0 }
 0x27d   : > { %v10850_v33 = vsel %vm12659_vm2, %v12649_v13, %v12658_v27  ;;  %12660 = vst [vmem:[#allocation43_spill] sm:$0xff] %v10854_v31  ;;  %6931 = vrot.lane.b32.xlu0 %v12647_v55, %s7224_s23  ;;  %v6533_v53 = vunpack.i.l.bf16 %v10416_v29  ;;  %v6579_v22 = vunpack.i.h.bf16 %v10553_v24  ;;  %vm12662_vm5 = vcmask 785408   ;;  %v6652_v0 = vpop.permute.xlu0 %6651  ;;  %v4612_v58 = vpop.f32.mrf.mxu1  ;;  %vm12676_vm1 = vmmov %vm12659_vm2 }
 0x27e   : > { %v4230_v56 = vsel %vm12662_vm5, %v4166_v25, %v6593_v59  ;;  %vm12663_vm15 = vmmov %vm12662_vm5  ;;  %vm12664_vm12 = vcmask 916480   ;;  %v3803_v27 = vrot.slane %v10580_v14, 2  ;;  %v6578_v34 = vunpack.i.l.bf16 %v10553_v24  ;;  %v10873_v31 = vpop.permute.xlu1 %6641  ;;  %v12668_v58 = vld [vmem:[#allocation42_spill] sm:$0xff] }
 0x27f   : > { %v4231_v52 = vsel %vm12663_vm15, %v4167_v12, %v6594_v32  ;;  %v4295_v10 = vsel %vm12664_vm12, %v4230_v56, %v6633_v17  ;;  %vm12665_vm9 = vmmov %vm12664_vm12  ;;  %v3805_v59 = vrot.slane %v10724_v38, 2  ;;  %v12666_v32 = vld [vmem:[#allocation48_spill] sm:$0xff]  ;;  %vm12667_vm6 = vcmask 130048   ;;  %6936 = vrot.lane.b32.xlu1 %v10425_v36, %s7221_s29 }
 0x280   : > { %v4296_v55 = vsel %vm12665_vm9, %v4231_v52, %v6634_v2  ;;  %v3909_v25 = vsel %vm12667_vm6, %v12666_v32, %v6529_v54  ;;  %v6614_v2 = vunpack.i.h.bf16 %v10734_v16  ;;  %v4611_v17 = vadd.f32 %v10675_v26, %v4610_v4  ;;  %vm12669_vm11 = vmmov %vm12667_vm6 }
 0x281   : > { %v4359_v11 = vpack.c.bf16 %v4296_v55, %v4295_v10  ;;  %6941 = vrot.lane.b32.xlu0 %v10425_v36, %s7224_s23  ;;  %v3908_v56 = vsel %vm12669_vm11, %v12668_v58, %v6528_v46  ;;  %v6613_v52 = vunpack.i.l.bf16 %v10734_v16  ;;  %v4613_v10 = vpop.f32.mrf.mxu1  ;;  %v3809_v54 = vrot.slane %v10769_v37, 2  ;;  %v10897_v12 = vpop.permute.xlu0 %6661  ;;  %vm12671_vm4 = vmmov %vm12667_vm6 }
 0x282   : > { %v3973_v55 = vsel %vm3940_vm14, %v3908_v56, %v6533_v53  ;;  %v3974_v32 = vsel %vm3940_vm14, %v3909_v25, %v6534_v20  ;;  %v4614_v24 = vadd.f32 %v10675_v26, %v4613_v10  ;;  %v12670_v16 = vpack.c.bf16 %v12551_v30, %v12550_v42  ;;  %v10910_v20 = vpop.permute.xlu1 %6656  ;;  %vm12677_vm10 = vmmov %vm12676_vm1 }
 0x283   : > { %4721 = vmatmul.mubr.bf16.gmra.mxu1 %v4359_v11  ;;  %v12672_v36 = vrot.slane %v10578_v61, 2  ;;  %vm12674_vm7 = vcmask 392192   ;;  %v4615_v11 = vpop.f32.mrf.mxu1  ;;  %v10913_v25 = vsel %vm12676_vm1, %v3803_v27, %v3805_v59  ;;  %v10917_v42 = vsel %vm12677_vm10, %v3805_v59, %v12649_v13  ;;  %6956 = vrot.lane.b32.xlu1 %v10432_v63, %s7225_s25  ;;  %vm12681_vm5 = vmmov %vm12676_vm1 }
 0x284   : > { %5439 = vmatprep.mubr.msk.bf16.mxu1 %vm12671_vm4, %v12670_v16  ;;  %v4039_v46 = vsel %vm12674_vm7, %v3974_v32, %v6579_v22  ;;  %vm12675_vm0 = vmmov %vm12674_vm7  ;;  %12678 = vst [vmem:[#allocation31_spill] sm:$0xff] %v10917_v42  ;;  %vm12679_vm2 = vcmask 523264   ;;  %v4859_v58 = vmax.f32 %v4611_v17, 0.0  ;;  %v4860_v56 = vmax.f32 %v4614_v24, 0.0 }
 0x285   : > { %v10906_v37 = vsel %vm12673_vm13, %v12672_v36, %v3803_v27  ;;  %v4038_v53 = vsel %vm12675_vm0, %v3973_v55, %v6578_v34  ;;  %v4104_v30 = vsel %vm12679_vm2, %v4039_v46, %v6614_v2  ;;  %6946 = vrot.lane.b32.xlu0 %v10432_v63, %s7218_s17  ;;  %vm12680_vm8 = vmmov %vm12679_vm2  ;;  %v6654_v10 = vunpack.i.h.bf16 %v6652_v0  ;;  %v10933_v55 = vpop.permute.xlu0 %6666  ;;  %v12698_v34 = vld [vmem:[#allocation52_spill] sm:$0xff] }
 0x286   : > { %v4103_v22 = vsel %vm12680_vm8, %v4038_v53, %v6613_v52  ;;  %v6653_v27 = vunpack.i.l.bf16 %v6652_v0  ;;  %v10929_v59 = vsel %vm12681_vm5, %v12649_v13, %v3809_v54  ;;  %v6619_v2 = vunpack.i.h.bf16 %v10704_v23  ;;  %v6677_v52 = vpop.permute.xlu1 %6676  ;;  %vm12693_vm13 = vmmov %vm12676_vm1 }
 0x287   : > { %v6618_v17 = vunpack.i.l.bf16 %v10704_v23  ;;  %v5594_v24 = vpack.c.bf16 %v4860_v56, %v4859_v58  ;;  %v12682_v0 = vrot.slane %v10022_v60, 1  ;;  %v12683_v36 = vrot.slane %v10305_v62, 1  ;;  %6966 = vrot.lane.b32.xlu1 %v10603_v35, %s7223_s11  ;;  %vm12695_vm7 = vmmov %vm12676_vm1 }
 0x288   : > { %vm12684_vm15 = vcmask 654336   ;;  %v6679_v53 = vunpack.i.h.bf16 %v6677_v52  ;;  %v6678_v11 = vunpack.i.l.bf16 %v6677_v52  ;;  %vm12686_vm9 = vcmask 785408  }
 0x289   : > { %v2286_v16 = vsel %vm2167_vm3, %v12682_v0, %v7534_v40  ;;  %v2288_v54 = vsel %vm2167_vm3, %v7534_v40, %v12683_v36  ;;  %v4168_v46 = vsel %vm12684_vm15, %v4103_v22, %v6618_v17  ;;  %vm12685_vm12 = vmmov %vm12684_vm15  ;;  %5746 = vst [vmem:[%s10777_s14 + $0x8] sm:$0xff] %v5594_v24   ;;  %6951 = vrot.lane.b32.xlu0 %v10603_v35, %s7220_s24  ;;  %v4618_v0 = vpop.f32.mrf.mxu1  ;;  %v10954_v32 = vpop.permute.xlu0 %6671  ;;  %vm12688_vm11 = vcmask 916480  }
 0x28a   : > { %v4169_v23 = vsel %vm12685_vm12, %v4104_v30, %v6619_v2  ;;  %vm12687_vm6 = vmmov %vm12686_vm9  ;;  %v10958_v17 = vpop.permute.xlu1 %6686  ;;  %v6970_v52 = vpack.i.bf16 %v2288_v54, %v2286_v16  ;;  %v4619_v36 = vadd.f32 %v10675_v26, %v4618_v0  ;;  %v12692_v35 = vrot.slane %v10022_v60, 2 }
 0x28b   : > { %v4233_v58 = vsel %vm12686_vm9, %v4169_v23, %v6654_v10  ;;  %v4232_v56 = vsel %vm12687_vm6, %v4168_v46, %v6653_v27  ;;  %vm12689_vm4 = vmmov %vm12688_vm11  ;;  %v4620_v2 = vpop.f32.mrf.mxu1  ;;  %v12690_v10 = vld [vmem:[#allocation7_spill] sm:$0xff]  ;;  %vm12696_vm0 = vcmask 130048   ;;  %v6664_v29 = vunpack.i.h.bf16 %v10897_v12 }
 0x28c   : > { %v4297_v22 = vsel %vm12688_vm11, %v4232_v56, %v6678_v11  ;;  %v4298_v30 = vsel %vm12689_vm4, %v4233_v58, %v6679_v53  ;;  %v12691_v27 = vld [vmem:[#allocation55_spill] sm:$0xff]  ;;  %v10969_v23 = vsel %vm12693_vm13, %v12692_v35, %v12649_v13  ;;  %v12694_v53 = vrot.slane %v10305_v62, 2  ;;  %6971 = vrot.lane.b32.xlu1 %v6970_v52, %s7218_s17  ;;  %vm12697_vm1 = vmmov %vm12696_vm0 }
 0x28d   : > { %v4361_v24 = vpack.c.bf16 %v4298_v30, %v4297_v22  ;;  %6961 = vrot.lane.b32.xlu0 %v10432_v63, %s7222_s10  ;;  %v4364_v46 = vpack.c.bf16 %v12691_v27, %v12690_v10  ;;  %v4621_v16 = vpop.f32.mrf.mxu1  ;;  %v10979_v54 = vpop.permute.xlu0 %6681  ;;  %v6554_v22 = vunpack.i.h.bf16 %v10469_v1  ;;  %v4861_v30 = vmax.f32 %v4619_v36, 0.0  ;;  %vm12699_vm10 = vmmov %vm12696_vm0 }
 0x28e   : > { %v10975_v11 = vsel %vm12695_vm7, %v12649_v13, %v12694_v53  ;;  %v4622_v63 = vadd.f32 %v10675_v26, %v4621_v16  ;;  %v10982_v56 = vpop.permute.xlu1 %6691  ;;  %v6553_v13 = vunpack.i.l.bf16 %v10469_v1  ;;  %v6558_v10 = vunpack.i.l.bf16 %v10509_v45  ;;  %vm12704_vm9 = vmmov %vm12685_vm12 }
 0x28f   : > { %4729 = vmatmul.mubr.bf16.gmra.mxu1 %v4361_v24  ;;  %v4623_v58 = vpop.f32.mrf.mxu1  ;;  %v6975_v0 = vpack.i.bf16 %v10975_v11, %v10969_v23  ;;  %v6559_v24 = vunpack.i.h.bf16 %v10509_v45  ;;  %v6589_v27 = vunpack.i.h.bf16 %v10630_v3  ;;  %v6995_v1 = vpack.i.bf16 %v10390_v9, %v10305_v62  ;;  %vm12705_vm11 = vmmov %vm12687_vm6 }
 0x290   : > { %5440 = vmatprep.mubr.msk.bf16.mxu1 %vm12696_vm0, %v4364_v46  ;;  %v4862_v2 = vmax.f32 %v4622_v63, 0.0  ;;  %v6588_v46 = vunpack.i.l.bf16 %v10630_v3  ;;  %v6639_v36 = vunpack.i.h.bf16 %v10784_v21  ;;  %v6638_v16 = vunpack.i.l.bf16 %v10784_v21  ;;  %vm12707_vm13 = vmmov %vm12689_vm4 }
 0x291   : > { %6986 = vrot.lane.b32.xlu0 %v6970_v52, %s7222_s10  ;;  %6976 = vrot.lane.b32.xlu1 %v6975_v0, %s7220_s24  ;;  %v10994_v53 = vpop.permute.xlu0 %6706  ;;  %v2289_v63 = vrot.slane %v10390_v9, 1  ;;  %v3911_v45 = vsel %vm12697_vm1, 0.0, %v6554_v22  ;;  %v3910_v4 = vsel %vm12699_vm10, %v12698_v34, %v6553_v13  ;;  %v6644_v3 = vunpack.i.h.bf16 %v10873_v31  ;;  %vm12711_vm7 = vmmov %vm12696_vm0 }
 0x292   : > { %v5599_v35 = vpack.c.bf16 %v4862_v2, %v4861_v30  ;;  %v11001_v58 = vpop.permute.xlu1 %6696  ;;  %v6643_v30 = vunpack.i.l.bf16 %v10873_v31  ;;  %v3975_v2 = vsel %vm3940_vm14, %v3910_v4, %v6558_v10  ;;  %v3976_v21 = vsel %vm3940_vm14, %v3911_v45, %v6559_v24  ;;  %vm12713_vm1 = vmmov %vm12696_vm0 }
 0x293   : > { %v6663_v42 = vunpack.i.l.bf16 %v10897_v12  ;;  %vm12700_vm2 = vcmask 392192   ;;  %v11863_v13 = vrot.slane %v10413_v49, 1  ;;  %vm12702_vm5 = vcmask 523264  }
 0x294   : > { %5747 = vst [vmem:[%s10777_s14 + $0x10] sm:$0xff] %v5599_v35   ;;  %v4041_v22 = vsel %vm12700_vm2, %v3976_v21, %v6589_v27  ;;  %vm12701_vm8 = vmmov %vm12700_vm2  ;;  %v7010_v24 = vpack.i.bf16 %v12027_v57, %v10413_v49  ;;  %v4626_v21 = vpop.f32.mrf.mxu1 }
 0x295   : > { %6996 = vrot.lane.b32.xlu0 %v6995_v1, %s7221_s29  ;;  %6981 = vrot.lane.b32.xlu1 %v6970_v52, %s7225_s25  ;;  %v4040_v34 = vsel %vm12701_vm8, %v3975_v2, %v6588_v46  ;;  %v11018_v31 = vpop.permute.xlu0 %6716  ;;  %v4106_v35 = vsel %vm12702_vm5, %v4041_v22, %v6639_v36  ;;  %vm12703_vm15 = vmmov %vm12702_vm5  ;;  %v12706_v36 = vrot.slane %v10305_v62, 1  ;;  %v6599_v22 = vunpack.i.h.bf16 %v10651_v50 }
 0x296   : > { %v4105_v4 = vsel %vm12703_vm15, %v4040_v34, %v6638_v16  ;;  %v6702_v10 = vpop.permute.xlu1 %6701  ;;  %v4171_v12 = vsel %vm12685_vm12, %v4106_v35, %v6644_v3  ;;  %v6598_v3 = vunpack.i.l.bf16 %v10651_v50  ;;  %v4628_v35 = vpop.f32.mrf.mxu1  ;;  %v6648_v50 = vunpack.i.l.bf16 %v10830_v44  ;;  %vm12714_vm10 = vmmov %vm12700_vm2 }
 0x297   : > { %v4170_v52 = vsel %vm12704_vm9, %v4105_v4, %v6643_v30  ;;  %v6704_v45 = vunpack.i.h.bf16 %v6702_v10  ;;  %v6703_v27 = vunpack.i.l.bf16 %v6702_v10  ;;  %v4235_v46 = vsel %vm12687_vm6, %v4171_v12, %v6664_v29  ;;  %vm12715_vm8 = vmmov %vm12702_vm5 }
 0x298   : > { %v4234_v2 = vsel %vm12705_vm11, %v4170_v52, %v6663_v42  ;;  %v2290_v16 = vsel %vm2167_vm3, %v12706_v36, %v2289_v63  ;;  %v6604_v29 = vunpack.i.h.bf16 %v10680_v43  ;;  %v6603_v42 = vunpack.i.l.bf16 %v10680_v43  ;;  %v4629_v36 = vpop.f32.mrf.mxu1  ;;  %vm12718_vm15 = vmmov %vm12704_vm9 }
 0x299   : > { %7001 = vrot.lane.b32.xlu0 %v6995_v1, %s7224_s23  ;;  %6991 = vrot.lane.b32.xlu1 %v6975_v0, %s7223_s11  ;;  %v6722_v30 = vpop.permute.xlu0 %6721  ;;  %v4299_v34 = vsel %vm12689_vm4, %v4234_v2, %v6703_v27  ;;  %v4300_v1 = vsel %vm12707_vm13, %v4235_v46, %v6704_v45  ;;  %v2292_v10 = vsel %vm2167_vm3, %v2289_v63, %v11863_v13  ;;  %v6649_v12 = vunpack.i.h.bf16 %v10830_v44  ;;  %v12708_v45 = vld [vmem:[#allocation11_spill] sm:$0xff]  ;;  %v12710_v63 = vld [vmem:[#allocation9_spill] sm:$0xff]  ;;  %vm12719_vm12 = vmmov %vm12704_vm9 }
 0x29a   : > { %v11039_v4 = vpop.permute.xlu1 %6711  ;;  %v4363_v0 = vpack.c.bf16 %v4300_v1, %v4299_v34  ;;  %v4627_v52 = vadd.f32 %v10675_v26, %v4626_v21  ;;  %v12709_v27 = vld [vmem:[#allocation27_spill] sm:$0xff]  ;;  %v6684_v43 = vunpack.i.h.bf16 %v10979_v54  ;;  %v6683_v2 = vunpack.i.l.bf16 %v10979_v54  ;;  %v12712_v1 = vld [vmem:[#allocation56_spill] sm:$0xff]  ;;  %vm12720_vm9 = vmmov %vm12687_vm6 }
 0x29b   : > { %v4366_v46 = vpack.c.bf16 %v12709_v27, %v12708_v45  ;;  %v3913_v34 = vsel %vm12711_vm7, %v12710_v63, %v6599_v22  ;;  %v3912_v44 = vsel %vm12696_vm0, %v12712_v1, %v6598_v3  ;;  %v4630_v21 = vadd.f32 %v10675_v26, %v4629_v36  ;;  %vm12721_vm11 = vmmov %vm12689_vm4 }
 0x29c   : > { %4737 = vmatmul.mubr.bf16.gmra.mxu1 %v4363_v0  ;;  %v7015_v45 = vpack.i.bf16 %v2292_v10, %v2290_v16  ;;  %v3977_v27 = vsel %vm3940_vm14, %v3912_v44, %v6603_v42  ;;  %v3978_v54 = vsel %vm3940_vm14, %v3913_v34, %v6604_v29  ;;  %v4631_v0 = vpop.f32.mrf.mxu1  ;;  %v4863_v63 = vmax.f32 %v4627_v52, 0.0  ;;  %vm12727_vm13 = vmmov %vm12696_vm0 }
 0x29d   : > { %7011 = vrot.lane.b32.xlu0 %v7010_v24, %s7224_s23  ;;  %7006 = vrot.lane.b32.xlu1 %v7010_v24, %s7221_s29  ;;  %v11058_v35 = vpop.permute.xlu0 %6731  ;;  %v4043_v24 = vsel %vm12714_vm10, %v3978_v54, %v6649_v12  ;;  %v4042_v22 = vsel %vm12700_vm2, %v3977_v27, %v6648_v50  ;;  %v4864_v3 = vmax.f32 %v4630_v21, 0.0  ;;  %v6724_v10 = vunpack.i.h.bf16 %v6722_v30  ;;  %vm12729_vm7 = vmmov %vm12696_vm0 }
 0x29e   : > { %5441 = vmatprep.mubr.msk.bf16.mxu1 %vm12713_vm1, %v4366_v46  ;;  %v11063_v13 = vpop.permute.xlu1 %6726  ;;  %v4108_v36 = vsel %vm12715_vm8, %v4043_v24, %v6684_v43  ;;  %v4107_v16 = vsel %vm12702_vm5, %v4042_v22, %v6683_v2  ;;  %v6723_v42 = vunpack.i.l.bf16 %v6722_v30  ;;  %v6689_v29 = vunpack.i.h.bf16 %v10958_v17  ;;  %v4634_v24 = vpop.f32.mrf.mxu1  ;;  %vm12732_vm10 = vmmov %vm12702_vm5 }
 0x29f   : > { %v6688_v46 = vunpack.i.l.bf16 %v10958_v17  ;;  %v5604_v12 = vpack.c.bf16 %v4864_v3, %v4863_v63  ;;  %v7020_v50 = vpack.i.bf16 %v10791_v8, %v10761_v41  ;;  %v12716_v43 = vrot.slane %v10413_v49, 1  ;;  %vm12734_vm8 = vmmov %vm12719_vm12 }
 0x2a0   : > { %v12717_v30 = vrot.slane %v10267_v18, 1  ;;  %v4173_v17 = vsel %vm12719_vm12, %v4108_v36, %v6689_v29  ;;  %v4636_v63 = vpop.f32.mrf.mxu1  ;;  %v4635_v29 = vadd.f32 %v10675_v26, %v4634_v24  ;;  %v6658_v24 = vunpack.i.l.bf16 %v10910_v20  ;;  %vm12737_vm12 = vmmov %vm12687_vm6 }
 0x2a1   : > { %7016 = vrot.lane.b32.xlu0 %v7015_v45, %s7218_s17  ;;  %7026 = vrot.lane.b32.xlu1 %v7015_v45, %s7225_s25  ;;  %v11073_v34 = vpop.permute.xlu0 %6736  ;;  %v2294_v2 = vsel %vm2167_vm3, %v12716_v43, %v7534_v40  ;;  %v4172_v44 = vsel %vm12718_vm15, %v4107_v16, %v6688_v46  ;;  %5748 = vst [vmem:[%s10777_s14 + $0x18] sm:$0xff] %v5604_v12   ;;  %v6708_v63 = vunpack.i.l.bf16 %v10994_v53  ;;  %vm12736_vm15 = vmmov %vm12687_vm6 }
 0x2a2   : > { %v6747_v52 = vpop.permute.xlu1 %6746  ;;  %v2296_v1 = vsel %vm2167_vm3, %v7534_v40, %v12717_v30  ;;  %v4237_v54 = vsel %vm12720_vm9, %v4173_v17, %v6724_v10  ;;  %v4236_v0 = vsel %vm12687_vm6, %v4172_v44, %v6723_v42  ;;  %vm12722_vm3 = vmmov %vm12689_vm4  ;;  %v12723_v10 = vld [vmem:[#allocation26_spill] sm:$0xff]  ;;  %v4637_v12 = vpop.f32.mrf.mxu1  ;;  %v4865_v44 = vmax.f32 %v4635_v29, 0.0 }
 0x2a3   : > { %v6749_v21 = vunpack.i.h.bf16 %v6747_v52  ;;  %v6748_v27 = vunpack.i.l.bf16 %v6747_v52  ;;  %v7040_v16 = vpack.i.bf16 %v2296_v1, %v2294_v2  ;;  %v12724_v42 = vld [vmem:[#allocation62_spill] sm:$0xff]  ;;  %vm12725_vm4 = vmmov %vm12696_vm0  ;;  %v11111_v2 = vpack.i.bf16 %v10850_v33, %v10836_v48 }
 0x2a4   : > { %v4368_v46 = vpack.c.bf16 %v12724_v42, %v12723_v10  ;;  %v4639_v43 = vpop.f32.mrf.mxu1  ;;  %v6623_v1 = vunpack.i.l.bf16 %v10754_v7  ;;  %v12728_v10 = vld [vmem:[#allocation60_spill] sm:$0xff]  ;;  %vm12730_vm0 = vmmov %vm12700_vm2 }
 0x2a5   : > { %7021 = vrot.lane.b32.xlu0 %v7020_v50, %s7220_s24  ;;  %7036 = vrot.lane.b32.xlu1 %v7020_v50, %s7223_s11  ;;  %v11092_v18 = vpop.permute.xlu0 %6741  ;;  %v4301_v40 = vsel %vm12721_vm11, %v4236_v0, %v6748_v27  ;;  %v4302_v22 = vsel %vm12722_vm3, %v4237_v54, %v6749_v21  ;;  %v4638_v50 = vadd.f32 %v10675_v26, %v4637_v12  ;;  %v12726_v21 = vld [vmem:[#allocation40_spill] sm:$0xff]  ;;  %v6629_v27 = vunpack.i.h.bf16 %v10795_v51  ;;  %vm12731_vm1 = vmmov %vm12730_vm0 }
 0x2a6   : > { %v11096_v3 = vpop.permute.xlu1 %6756  ;;  %v4365_v36 = vpack.c.bf16 %v4302_v22, %v4301_v40  ;;  %v6628_v54 = vunpack.i.l.bf16 %v10795_v51  ;;  %v6659_v0 = vunpack.i.h.bf16 %v10910_v20  ;;  %v3914_v42 = vsel %vm12729_vm7, %v12728_v10, %v6623_v1  ;;  %vm12733_vm2 = vmmov %vm12702_vm5 }
 0x2a7   : > { %v4866_v17 = vmax.f32 %v4638_v50, 0.0  ;;  %v6713_v20 = vunpack.i.l.bf16 %v11039_v4  ;;  %v6733_v50 = vunpack.i.l.bf16 %v11058_v35  ;;  %vm12735_vm5 = vmmov %vm12734_vm8 }
 0x2a8   : > { %4745 = vmatmul.mubr.bf16.gmra.mxu1 %v4365_v36  ;;  %v7070_v36 = vpack.i.bf16 %v12027_v57, %v10564_v6  ;;  %v6734_v6 = vunpack.i.h.bf16 %v11058_v35  ;;  %vm12738_vm9 = vmmov %vm12722_vm3 }
 0x2a9   : > { %7031 = vrot.lane.b32.xlu0 %v7015_v45, %s7222_s10  ;;  %7041 = vrot.lane.b32.xlu1 %v7040_v16, %s7218_s17  ;;  %v11104_v52 = vpop.permute.xlu0 %6751  ;;  %v6624_v45 = vunpack.i.h.bf16 %v10754_v7  ;;  %v5609_v40 = vpack.c.bf16 %v4866_v17, %v4865_v44  ;;  %v6709_v7 = vunpack.i.h.bf16 %v10994_v53  ;;  %v3979_v53 = vsel %vm3940_vm14, %v3914_v42, %v6628_v54  ;;  %vm12739_vm6 = vmmov %vm12722_vm3 }
 0x2aa   : > { %5442 = vmatprep.mubr.msk.bf16.mxu1 %vm12725_vm4, %v4368_v46  ;;  %v11107_v30 = vpop.permute.xlu1 %6761  ;;  %v6714_v46 = vunpack.i.h.bf16 %v11039_v4  ;;  %vm12743_vm11 = vmmov %vm12725_vm4 }
 0x2ab   : > { %v3915_v51 = vsel %vm12727_vm13, 0.0, %v6624_v45  ;;  %5749 = vst [vmem:[%s10777_s14 + $0x20] sm:$0xff] %v5609_v40   ;;  %v4044_v45 = vsel %vm12731_vm1, %v3979_v53, %v6658_v24  ;;  %v4642_v24 = vpop.f32.mrf.mxu1  ;;  %vm12745_vm3 = vmmov %vm12725_vm4 }
 0x2ac   : > { %v3980_v12 = vsel %vm3940_vm14, %v3915_v51, %v6629_v27  ;;  %v4109_v44 = vsel %vm12733_vm2, %v4044_v45, %v6708_v63  ;;  %v6668_v63 = vunpack.i.l.bf16 %v10933_v55  ;;  %v12741_v45 = vld [vmem:[#allocation2_spill] sm:$0xff]  ;;  %vm12746_vm4 = vmmov %vm12745_vm3 }
 0x2ad   : > { %7056 = vrot.lane.b32.xlu0 %v12726_v21, %s7221_s29  ;;  %7046 = vrot.lane.b32.xlu1 %v11111_v2, %s7220_s24  ;;  %v11123_v22 = vpop.permute.xlu0 %6776  ;;  %v4045_v43 = vsel %vm12730_vm0, %v3980_v12, %v6659_v0  ;;  %v4174_v27 = vsel %vm12735_vm5, %v4109_v44, %v6713_v20  ;;  %v4644_v20 = vpop.f32.mrf.mxu1  ;;  %v6754_v44 = vunpack.i.h.bf16 %v11104_v52  ;;  %vm12747_vm13 = vmmov %vm12730_vm0 }
 0x2ae   : > { %v11129_v29 = vpop.permute.xlu1 %6766  ;;  %v4110_v4 = vsel %vm12732_vm10, %v4045_v43, %v6709_v7  ;;  %v4238_v0 = vsel %vm12737_vm12, %v4174_v27, %v6733_v50  ;;  %v6669_v7 = vunpack.i.h.bf16 %v10933_v55  ;;  %v6718_v50 = vunpack.i.l.bf16 %v11018_v31  ;;  %v12740_v55 = vld [vmem:[#allocation49_spill] sm:$0xff]  ;;  %vm12748_vm7 = vmmov %vm12730_vm0 }
 0x2af   : > { %v4643_v43 = vadd.f32 %v10675_v26, %v4642_v24  ;;  %vm12749_vm0 = vmmov %vm12733_vm2 }
 0x2b0   : > { %vm12750_vm1 = vmmov %vm12749_vm0 }
 0x2b1   : > { %7061 = vrot.lane.b32.xlu0 %v12726_v21, %s7224_s23  ;;  %7051 = vrot.lane.b32.xlu1 %v7040_v16, %s7225_s25  ;;  %v11146_v1 = vpop.permute.xlu0 %6786  ;;  %v4175_v21 = vsel %vm12734_vm8, %v4110_v4, %v6714_v46  ;;  %v6674_v46 = vunpack.i.h.bf16 %v10954_v32  ;;  %v4370_v4 = vpack.c.bf16 %v12741_v45, %v12740_v55  ;;  %vm12751_vm10 = vmmov %vm12735_vm5 }
 0x2b2   : > { %v6772_v17 = vpop.permute.xlu1 %6771  ;;  %v4239_v35 = vsel %vm12736_vm15, %v4175_v21, %v6734_v6  ;;  %v6719_v6 = vunpack.i.h.bf16 %v11018_v31  ;;  %v12742_v21 = vld [vmem:[#allocation45_spill] sm:$0xff]  ;;  %v12744_v31 = vld [vmem:[#allocation4_spill] sm:$0xff]  ;;  %vm12752_vm2 = vmmov %vm12735_vm5 }
 0x2b3   : > { %v6774_v54 = vunpack.i.h.bf16 %v6772_v17  ;;  %v6773_v40 = vunpack.i.l.bf16 %v6772_v17  ;;  %v6753_v17 = vunpack.i.l.bf16 %v11104_v52  ;;  %v3917_v27 = vsel %vm12743_vm11, %v12742_v21, %v6669_v7  ;;  %vm12754_vm8 = vmmov %vm12737_vm12 }
 0x2b4   : > { %v3982_v52 = vsel %vm3940_vm14, %v3917_v27, %v6674_v46  ;;  %v6759_v46 = vunpack.i.h.bf16 %v11096_v3  ;;  %vm12755_vm5 = vmmov %vm12754_vm8 }
 0x2b5   : > { %7066 = vrot.lane.b32.xlu0 %v7040_v16, %s7222_s10  ;;  %7071 = vrot.lane.b32.xlu1 %v7070_v36, %s7221_s29  ;;  %v6792_v51 = vpop.permute.xlu0 %6791  ;;  %v4303_v10 = vsel %vm12738_vm9, %v4238_v0, %v6773_v40  ;;  %v4304_v42 = vsel %vm12739_vm6, %v4239_v35, %v6774_v54  ;;  %v6673_v16 = vunpack.i.l.bf16 %v10954_v32  ;;  %v4645_v32 = vpop.f32.mrf.mxu1  ;;  %v3916_v54 = vsel %vm12745_vm3, %v12744_v31, %v6668_v63  ;;  %vm12756_vm15 = vmmov %vm12739_vm6 }
 0x2b6   : > { %v11162_v53 = vpop.permute.xlu1 %6781  ;;  %v4367_v12 = vpack.c.bf16 %v4304_v42, %v4303_v10  ;;  %v4047_v10 = vsel %vm12747_vm13, %v3982_v52, %v6719_v6  ;;  %v4867_v42 = vmax.f32 %v4643_v43, 0.0  ;;  %v6793_v55 = vunpack.i.l.bf16 %v6792_v51  ;;  %vm12757_vm12 = vmmov %vm12739_vm6  ;;  %v12759_v52 = vld [vmem:[#allocation18_spill] sm:$0xff] }
 0x2b7   : > { %v3981_v35 = vsel %vm3940_vm14, %v3916_v54, %v6673_v16  ;;  %v4647_v0 = vpop.f32.mrf.mxu1  ;;  %v4112_v20 = vsel %vm12749_vm0, %v4047_v10, %v6754_v44  ;;  %v6794_v16 = vunpack.i.h.bf16 %v6792_v51  ;;  %v6758_v6 = vunpack.i.l.bf16 %v11096_v3  ;;  %vm12761_vm9 = vmmov %vm12745_vm3 }
 0x2b8   : > { %4753 = vmatmul.mubr.bf16.gmra.mxu1 %v4367_v12  ;;  %v4046_v7 = vsel %vm12748_vm7, %v3981_v35, %v6718_v50  ;;  %v12753_v51 = vpack.i.bf16 %v10580_v14, %v10578_v61  ;;  %v12758_v14 = vld [vmem:[#allocation6_spill] sm:$0xff]  ;;  %vm12765_vm6 = vmmov %vm12745_vm3 }
 0x2b9   : > { %7086 = vrot.lane.b32.xlu0 %v7070_v36, %s7224_s23  ;;  %7076 = vrot.lane.b32.xlu1 %v10632_v15, %s7225_s25  ;;  %v4646_v36 = vadd.f32 %v10675_v26, %v4645_v32  ;;  %v11179_v40 = vpop.permute.xlu0 %6801  ;;  %v4111_v12 = vsel %vm12750_vm1, %v4046_v7, %v6753_v17  ;;  %v4650_v32 = vpop.f32.mrf.mxu1  ;;  %v4372_v0 = vpack.c.bf16 %v12759_v52, %v12758_v14  ;;  %vm12767_vm11 = vmmov %vm12745_vm3 }
 0x2ba   : > { %5443 = vmatprep.mubr.msk.bf16.mxu1 %vm12746_vm4, %v4370_v4  ;;  %v11184_v24 = vpop.permute.xlu1 %6796  ;;  %v4176_v4 = vsel %vm12751_vm10, %v4111_v12, %v6758_v6  ;;  %v4651_v61 = vadd.f32 %v10675_v26, %v4650_v32  ;;  %v12760_v7 = vpack.i.bf16 %v10748_v5, %v10743_v28  ;;  %v12766_v32 = vld [vmem:[#allocation13_spill] sm:$0xff]  ;;  %v12768_v14 = vpack.i.bf16 %v10827_v47, %v10815_v19  ;;  %vm12769_vm3 = vmmov %vm12748_vm7 }
 0x2bb   : > { %v4868_v63 = vmax.f32 %v4646_v36, 0.0  ;;  %v4240_v3 = vsel %vm12755_vm5, %v4176_v4, %v6793_v55  ;;  %v4652_v54 = vpop.f32.mrf.mxu1  ;;  %v6693_v55 = vunpack.i.l.bf16 %v10982_v56  ;;  %vm12770_vm4 = vmmov %vm12769_vm3 }
 0x2bc   : > { %v6783_v54 = vunpack.i.l.bf16 %v11162_v53  ;;  %vm12771_vm13 = vmmov %vm12749_vm0 }
 0x2bd   : > { %7091 = vrot.lane.b32.xlu0 %v10632_v15, %s7222_s10  ;;  %7081 = vrot.lane.b32.xlu1 %v11111_v2, %s7223_s11  ;;  %v5614_v50 = vpack.c.bf16 %v4868_v63, %v4867_v42  ;;  %v11196_v45 = vpop.permute.xlu0 %6806  ;;  %v4177_v15 = vsel %vm12752_vm2, %v4112_v20, %v6759_v46  ;;  %v4653_v10 = vpop.f32.mrf.mxu1  ;;  %v7125_v42 = vpack.i.bf16 %v12027_v57, %v10724_v38  ;;  %v4869_v46 = vmax.f32 %v4651_v61, 0.0  ;;  %vm12772_vm7 = vmmov %vm12749_vm0 }
 0x2be   : > { %v6817_v43 = vpop.permute.xlu1 %6816  ;;  %v4241_v2 = vsel %vm12754_vm8, %v4177_v15, %v6794_v16  ;;  %v4654_v63 = vadd.f32 %v10675_v26, %v4653_v10  ;;  %v6694_v16 = vunpack.i.h.bf16 %v10982_v56  ;;  %v6699_v57 = vunpack.i.h.bf16 %v11001_v58  ;;  %vm12773_vm0 = vmmov %vm12752_vm2 }
 0x2bf   : > { %5750 = vst [vmem:[%s10777_s14 + $0x28] sm:$0xff] %v5614_v50   ;;  %v6819_v44 = vunpack.i.h.bf16 %v6817_v43  ;;  %v6818_v17 = vunpack.i.l.bf16 %v6817_v43  ;;  %v6698_v38 = vunpack.i.l.bf16 %v11001_v58  ;;  %v12762_v50 = vld [vmem:[#allocation28_spill] sm:$0xff]  ;;  %v12763_v43 = vld [vmem:[#allocation29_spill] sm:$0xff]  ;;  %v6729_v15 = vunpack.i.h.bf16 %v11063_v13  ;;  %vm12774_vm1 = vmmov %vm12773_vm0 }
 0x2c0   : > { %v4870_v6 = vmax.f32 %v4654_v63, 0.0  ;;  %v12764_v4 = vpack.i.bf16 %v12762_v50, %v12763_v43  ;;  %v3919_v58 = vsel %vm12765_vm6, 0.0, %v6694_v16  ;;  %v6804_v61 = vunpack.i.h.bf16 %v11179_v40  ;;  %vm12775_vm10 = vmmov %vm12755_vm5 }
 0x2c1   : > { %7106 = vrot.lane.b32.xlu0 %v12753_v51, %s7224_s23  ;;  %7096 = vrot.lane.b32.xlu1 %v10730_v39, %s7225_s25  ;;  %v11209_v21 = vpop.permute.xlu0 %6811  ;;  %v4305_v27 = vsel %vm12756_vm15, %v4240_v3, %v6818_v17  ;;  %v4306_v31 = vsel %vm12757_vm12, %v4241_v2, %v6819_v44  ;;  %v6728_v44 = vunpack.i.l.bf16 %v11063_v13  ;;  %v6779_v51 = vunpack.i.h.bf16 %v11123_v22  ;;  %vm12776_vm2 = vmmov %vm12755_vm5 }
 0x2c2   : > { %v11213_v36 = vpop.permute.xlu1 %6826  ;;  %v4369_v35 = vpack.c.bf16 %v4306_v31, %v4305_v27  ;;  %v5619_v17 = vpack.c.bf16 %v4870_v6, %v4869_v46  ;;  %v6778_v2 = vunpack.i.l.bf16 %v11123_v22  ;;  %v3918_v27 = vsel %vm12767_vm11, %v12766_v32, %v6693_v55  ;;  %vm12780_vm8 = vmmov %vm12757_vm12 }
 0x2c3   : > { %v6784_v31 = vunpack.i.h.bf16 %v11162_v53  ;;  %v3983_v13 = vsel %vm3940_vm14, %v3918_v27, %v6698_v38  ;;  %v6803_v22 = vunpack.i.l.bf16 %v11179_v40  ;;  %v12778_v38 = vld [vmem:[#allocation44_spill] sm:$0xff]  ;;  %v6739_v43 = vunpack.i.h.bf16 %v11073_v34  ;;  %vm12781_vm5 = vmmov %vm12780_vm8 }
 0x2c4   : > { %4761 = vmatmul.mubr.bf16.gmra.mxu1 %v4369_v35  ;;  %5751 = vst [vmem:[%s10777_s14 + $0x30] sm:$0xff] %v5619_v17   ;;  %v3984_v35 = vsel %vm3940_vm14, %v3919_v58, %v6699_v57  ;;  %v12777_v57 = vld [vmem:[#allocation43_spill] sm:$0xff]  ;;  %vm12785_vm15 = vmmov %vm12765_vm6 }
 0x2c5   : > { %7111 = vrot.lane.b32.xlu0 %v10730_v39, %s7222_s10  ;;  %7101 = vrot.lane.b32.xlu1 %v12760_v7, %s7223_s11  ;;  %v11227_v20 = vpop.permute.xlu0 %6821  ;;  %v4655_v39 = vpop.f32.mrf.mxu1  ;;  %v4049_v52 = vsel %vm12769_vm3, %v3984_v35, %v6729_v15  ;;  %v12779_v50 = vpack.i.bf16 %v12777_v57, %v12778_v38  ;;  %v12783_v35 = vld [vmem:[#allocation19_spill] sm:$0xff]  ;;  %vm12787_vm12 = vmmov %vm12765_vm6 }
 0x2c6   : > { %5444 = vmatprep.mubr.msk.bf16.mxu1 %vm12761_vm9, %v4372_v0  ;;  %v11230_v12 = vpop.permute.xlu1 %6831  ;;  %v4048_v0 = vsel %vm12770_vm4, %v3983_v13, %v6728_v44  ;;  %v4114_v53 = vsel %vm12771_vm13, %v4049_v52, %v6779_v51  ;;  %v6744_v51 = vunpack.i.h.bf16 %v11092_v18  ;;  %vm12788_vm9 = vmmov %vm12765_vm6 }
 0x2c7   : > { %v4113_v7 = vsel %vm12772_vm7, %v4048_v0, %v6778_v2  ;;  %v4179_v63 = vsel %vm12773_vm0, %v4114_v53, %v6784_v31  ;;  %v4658_v6 = vpop.f32.mrf.mxu1  ;;  %v6743_v2 = vunpack.i.l.bf16 %v11092_v18  ;;  %v6789_v31 = vunpack.i.h.bf16 %v11146_v1  ;;  %v12784_v18 = vld [vmem:[#allocation16_spill] sm:$0xff]  ;;  %v12786_v53 = vld [vmem:[#allocation17_spill] sm:$0xff]  ;;  %vm12789_vm6 = vmmov %vm12769_vm3 }
 0x2c8   : > { %v4178_v40 = vsel %vm12774_vm1, %v4113_v7, %v6783_v54  ;;  %v4243_v55 = vsel %vm12775_vm10, %v4179_v63, %v6804_v61  ;;  %v6788_v54 = vunpack.i.l.bf16 %v11146_v1  ;;  %v4659_v13 = vadd.f32 %v10675_v26, %v4658_v6  ;;  %vm12790_vm11 = vmmov %vm12769_vm3 }
 0x2c9   : > { %7126 = vrot.lane.b32.xlu0 %v7125_v42, %s7224_s23  ;;  %7116 = vrot.lane.b32.xlu1 %v12764_v4, %s7225_s25  ;;  %v11243_v56 = vpop.permute.xlu0 %6846  ;;  %v4242_v46 = vsel %vm12776_vm2, %v4178_v40, %v6803_v22  ;;  %v6738_v4 = vunpack.i.l.bf16 %v11073_v34  ;;  %v4660_v58 = vpop.f32.mrf.mxu1  ;;  %v12782_v34 = vld [vmem:[#allocation37_spill] sm:$0xff]  ;;  %v6824_v22 = vunpack.i.h.bf16 %v11227_v20  ;;  %v3921_v0 = vsel %vm12785_vm15, %v12784_v18, %v6739_v43  ;;  %vm12791_vm3 = vmmov %vm12772_vm7 }
 0x2ca   : > { %v11247_v3 = vpop.permute.xlu1 %6836  ;;  %v4374_v61 = vpack.c.bf16 %v12783_v35, %v12782_v34  ;;  %v3986_v40 = vsel %vm3940_vm14, %v3921_v0, %v6744_v51  ;;  %vm12792_vm4 = vmmov %vm12791_vm3  ;;  %v6829_v43 = vunpack.i.h.bf16 %v11213_v36  ;;  %v12799_v0 = vld [vmem:[#allocation20_spill] sm:$0xff] }
 0x2cb   : > { %v4661_v52 = vpop.f32.mrf.mxu1  ;;  %v3920_v7 = vsel %vm12787_vm12, %v12786_v53, %v6738_v4  ;;  %v6828_v4 = vunpack.i.l.bf16 %v11213_v36  ;;  %vm12793_vm13 = vmmov %vm12773_vm0  ;;  %v12800_v53 = vld [vmem:[#allocation25_spill] sm:$0xff] }
 0x2cc   : > { %v3985_v63 = vsel %vm3940_vm14, %v3920_v7, %v6743_v2  ;;  %vm12794_vm7 = vmmov %vm12773_vm0  ;;  %v4376_v7 = vpack.c.bf16 %v12800_v53, %v12799_v0 }
 0x2cd   : > { %7121 = vrot.lane.b32.xlu1 %v12768_v14, %s7223_s11  ;;  %v11265_v10 = vpop.permute.xlu0 %6856  ;;  %v6823_v14 = vunpack.i.l.bf16 %v11227_v20  ;;  %vm12795_vm0 = vmmov %vm12776_vm2 }
 0x2ce   : > { %v6842_v42 = vpop.permute.xlu1 %6841  ;;  %vm12796_vm1 = vmmov %vm12795_vm0 }
 0x2cf   : > { %v6844_v39 = vunpack.i.h.bf16 %v6842_v42  ;;  %v6843_v16 = vunpack.i.l.bf16 %v6842_v42  ;;  %v4662_v42 = vadd.f32 %v10675_v26, %v4661_v52  ;;  %vm12797_vm10 = vmmov %vm12781_vm5  ;;  %v11326_v52 = vld [vmem:[%s11715_s4] ss:$0 sm:$0xff] }
 0x2d0   : > { %vm12798_vm2 = vmmov %vm12781_vm5 }
 0x2d1   : > { %7131 = vrot.lane.b32.xlu1 %v12779_v50, %s7225_s25  ;;  %v6862_v15 = vpop.permute.xlu0 %6861  ;;  %v4307_v44 = vsel %vm12780_vm8, %v4242_v46, %v6843_v16  ;;  %v4308_v17 = vsel %vm12781_vm5, %v4243_v55, %v6844_v39  ;;  %v4663_v39 = vpop.f32.mrf.mxu1  ;;  %v4051_v16 = vsel %vm12789_vm6, %v3986_v40, %v6789_v31  ;;  %v4050_v55 = vsel %vm12790_vm11, %v3985_v63, %v6788_v54  ;;  %vm12801_vm8 = vmmov %vm12788_vm9 }
 0x2d2   : > { %v11283_v32 = vpop.permute.xlu1 %6851  ;;  %v4371_v27 = vpack.c.bf16 %v4308_v17, %v4307_v44  ;;  %v4871_v46 = vmax.f32 %v4659_v13, 0.0  ;;  %v4872_v6 = vmax.f32 %v4662_v42, 0.0  ;;  %v4116_v26 = vsel %vm12791_vm3, %v4051_v16, %v6824_v22  ;;  %vm12802_vm5 = vmmov %vm12801_vm8 }
 0x2d3   : > { %v4115_v57 = vsel %vm12792_vm4, %v4050_v55, %v6823_v14  ;;  %v6864_v38 = vunpack.i.h.bf16 %v6862_v15  ;;  %v6863_v50 = vunpack.i.l.bf16 %v6862_v15  ;;  %v4181_v58 = vsel %vm12794_vm7, %v4116_v26, %v6829_v43  ;;  %vm12804_vm15 = vmmov %vm12802_vm5 }
 0x2d4   : > { %4769 = vmatmul.mubr.bf16.gmra.mxu1 %v4371_v27  ;;  %v5624_v44 = vpack.c.bf16 %v4872_v6, %v4871_v46  ;;  %v4180_v2 = vsel %vm12793_vm13, %v4115_v57, %v6828_v4  ;;  %v6764_v55 = vunpack.i.h.bf16 %v11107_v30  ;;  %v6763_v46 = vunpack.i.l.bf16 %v11107_v30  ;;  %vm12805_vm12 = vmmov %vm12789_vm6 }
 0x2d5   : > { %v11297_v1 = vpop.permute.xlu0 %6871  ;;  %5445 = vmatprep.mubr.msk.bf16.mxu1 %vm12788_vm9, %v4374_v61  ;;  %v4245_v54 = vsel %vm12795_vm0, %v4181_v58, %v6864_v38  ;;  %v4244_v13 = vsel %vm12796_vm1, %v4180_v2, %v6863_v50  ;;  %v4666_v15 = vpop.f32.mrf.mxu1  ;;  %v6769_v57 = vunpack.i.h.bf16 %v11129_v29  ;;  %v6768_v38 = vunpack.i.l.bf16 %v11129_v29  ;;  %vm12806_vm9 = vmmov %vm12789_vm6 }
 0x2d6   : > { %v11302_v20 = vpop.permute.xlu1 %6866  ;;  %5752 = vst [vmem:[%s10777_s14 + $0x38] sm:$0xff] %v5624_v44   ;;  %v4667_v18 = vadd.f32 %v11326_v52, %v4666_v15  ;;  %v6799_v50 = vunpack.i.h.bf16 %v11184_v24  ;;  %v6798_v43 = vunpack.i.l.bf16 %v11184_v24  ;;  %v6848_v2 = vunpack.i.l.bf16 %v11243_v56  ;;  %vm12807_vm6 = vmmov %vm12791_vm3 }
 0x2d7   : > { %v4668_v61 = vpop.f32.mrf.mxu1  ;;  %v3923_v30 = vsel %vm12802_vm5, 0.0, %v6764_v55  ;;  %v6854_v29 = vunpack.i.h.bf16 %v11283_v32  ;;  %v6874_v15 = vunpack.i.h.bf16 %v11297_v1  ;;  %vm12808_vm11 = vmmov %vm12791_vm3  ;;  %v6809_v55 = vunpack.i.h.bf16 %v11196_v45 }
 0x2d8   : > { %v4873_v6 = vmax.f32 %v4667_v18, 0.0  ;;  %vm12809_vm3 = vmmov %vm12794_vm7 }
 0x2d9   : > { %v11310_v17 = vpop.permute.xlu0 %6876  ;;  %v4669_v42 = vpop.f32.mrf.mxu1  ;;  %vm12810_vm4 = vmmov %vm12809_vm3 }
 0x2da   : > { %v6887_v51 = vpop.permute.xlu1 %6886  ;;  %v4670_v63 = vadd.f32 %v11326_v52, %v4669_v42  ;;  %vm12811_vm13 = vmmov %vm12795_vm0 }
 0x2db   : > { %v6889_v27 = vunpack.i.h.bf16 %v6887_v51  ;;  %v6888_v31 = vunpack.i.l.bf16 %v6887_v51  ;;  %v4671_v39 = vpop.f32.mrf.mxu1  ;;  %v6849_v51 = vunpack.i.h.bf16 %v11243_v56  ;;  %v6873_v56 = vunpack.i.l.bf16 %v11297_v1  ;;  %vm12812_vm7 = vmmov %vm12795_vm0 }
 0x2dc   : > { %v4874_v26 = vmax.f32 %v4670_v63, 0.0  ;;  %vm12813_vm0 = vmmov %vm12798_vm2 }
 0x2dd   : > { %v11317_v34 = vpop.permute.xlu0 %6881  ;;  %v4309_v36 = vsel %vm12797_vm10, %v4244_v13, %v6888_v31  ;;  %v4310_v35 = vsel %vm12798_vm2, %v4245_v54, %v6889_v27  ;;  %v12803_v27 = vld [vmem:[#allocation5_spill] sm:$0xff]  ;;  %v6853_v54 = vunpack.i.l.bf16 %v11283_v32  ;;  %v3988_v13 = vsel %vm3940_vm14, %v3923_v30, %v6769_v57  ;;  %vm12814_vm1 = vmmov %vm12813_vm0 }
 0x2de   : > { %v11321_v22 = vpop.permute.xlu1 %6896  ;;  %v4373_v14 = vpack.c.bf16 %v4310_v35, %v4309_v36  ;;  %v5629_v4 = vpack.c.bf16 %v4874_v26, %v4873_v6  ;;  %v3922_v31 = vsel %vm12804_vm15, %v12803_v27, %v6763_v46  ;;  %v4053_v36 = vsel %vm12805_vm12, %v3988_v13, %v6799_v50  ;;  %vm12818_vm10 = vmmov %vm12802_vm5 }
 0x2df   : > { %v3987_v24 = vsel %vm3940_vm14, %v3922_v31, %v6768_v38  ;;  %v6808_v46 = vunpack.i.l.bf16 %v11196_v45  ;;  %v6814_v38 = vunpack.i.h.bf16 %v11209_v21  ;;  %v6813_v50 = vunpack.i.l.bf16 %v11209_v21  ;;  %v12815_v45 = vld [vmem:[#allocation54_spill] sm:$0xff]  ;;  %v12816_v31 = vld [vmem:[#allocation61_spill] sm:$0xff]  ;;  %v12817_v21 = vld [vmem:[#allocation23_spill] sm:$0xff] }
 0x2e0   : > { %4777 = vmatmul.mubr.bf16.gmra.mxu1 %v4373_v14  ;;  %5753 = vst [vmem:[%s10777_s14 + $0x40] sm:$0xff] %v5629_v4   ;;  %v4052_v35 = vsel %vm12806_vm9, %v3987_v24, %v6798_v43  ;;  %v4118_v14 = vsel %vm12807_vm6, %v4053_v36, %v6849_v51  ;;  %v6858_v30 = vunpack.i.l.bf16 %v11265_v10  ;;  %vm12820_vm2 = vmmov %vm12802_vm5 }
 0x2e1   : > { %v11332_v40 = vpop.permute.xlu0 %6891  ;;  %5446 = vmatprep.mubr.msk.bf16.mxu1 %vm12801_vm8, %v4376_v7  ;;  %v4117_v18 = vsel %vm12808_vm11, %v4052_v35, %v6848_v2  ;;  %v4183_v0 = vsel %vm12809_vm3, %v4118_v14, %v6854_v29  ;;  %v6859_v2 = vunpack.i.h.bf16 %v11265_v10  ;;  %v4378_v29 = vpack.c.bf16 %v12816_v31, %v12815_v45  ;;  %vm12821_vm8 = vmmov %vm12820_vm2 }
 0x2e2   : > { %v11335_v16 = vpop.permute.xlu1 %6901  ;;  %v4182_v53 = vsel %vm12810_vm4, %v4117_v18, %v6853_v54  ;;  %v4247_v63 = vsel %vm12811_vm13, %v4183_v0, %v6874_v15  ;;  %v6894_v54 = vunpack.i.h.bf16 %v11332_v40  ;;  %v6893_v24 = vunpack.i.l.bf16 %v11332_v40  ;;  %vm12822_vm5 = vmmov %vm12806_vm9 }
 0x2e3   : > { %v4246_v1 = vsel %vm12812_vm7, %v4182_v53, %v6873_v56  ;;  %v3925_v15 = vsel %vm12818_vm10, %v12817_v21, %v6809_v55  ;;  %v12819_v56 = vld [vmem:[#allocation10_spill] sm:$0xff]  ;;  %vm12823_vm15 = vmmov %vm12822_vm5 }
 0x2e4   : > { %v3924_v36 = vsel %vm12820_vm2, %v12819_v56, %v6808_v46  ;;  %v3990_v18 = vsel %vm3940_vm14, %v3925_v15, %v6814_v38  ;;  %vm12824_vm12 = vmmov %vm12807_vm6  ;;  %v6899_v46 = vunpack.i.h.bf16 %v11321_v22  ;;  %v4380_v15 = vpack.c.bf16 %v10975_v11, %v10969_v23 }
 0x2e5   : > { %v11343_v44 = vpop.permute.xlu0 %6916  ;;  %v3989_v14 = vsel %vm3940_vm14, %v3924_v36, %v6813_v50  ;;  %v4055_v0 = vsel %vm12822_vm5, %v3990_v18, %v6859_v2  ;;  %vm12825_vm9 = vmmov %vm12807_vm6  ;;  %v6839_v23 = vunpack.i.h.bf16 %v11247_v3  ;;  %v6838_v11 = vunpack.i.l.bf16 %v11247_v3 }
 0x2e6   : > { %v11347_v58 = vpop.permute.xlu1 %6906  ;;  %v4054_v53 = vsel %vm12823_vm15, %v3989_v14, %v6858_v30  ;;  %vm12826_vm6 = vmmov %vm12809_vm3 }
 0x2e7   : > { %v4674_v39 = vpop.f32.mrf.mxu1  ;;  %vm12827_vm11 = vmmov %vm12809_vm3 }
 0x2e8   : > { %v4675_v27 = vadd.f32 %v11326_v52, %v4674_v39  ;;  %vm12828_vm3 = vmmov %vm12812_vm7 }
 0x2e9   : > { %v4676_v43 = vpop.f32.mrf.mxu1  ;;  %vm12829_vm4 = vmmov %vm12828_vm3 }
 0x2ea   : > { %v6912_v32 = vpop.permute.xlu1 %6911  ;;  %vm12830_vm13 = vmmov %vm12813_vm0 }
 0x2eb   : > { %v11361_v61 = vpop.permute.xlu0 %6926  ;;  %v6914_v7 = vunpack.i.h.bf16 %v6912_v32  ;;  %v6913_v42 = vunpack.i.l.bf16 %v6912_v32  ;;  %v4677_v13 = vpop.f32.mrf.mxu1  ;;  %vm12831_vm7 = vmmov %vm12813_vm0 }
 0x2ec   : > { %v4678_v35 = vadd.f32 %v11326_v52, %v4677_v13 }
 0x2ed   : > { %v4311_v26 = vsel %vm12813_vm0, %v4246_v1, %v6913_v42  ;;  %v4312_v57 = vsel %vm12814_vm1, %v4247_v63, %v6914_v7  ;;  %v4679_v32 = vpop.f32.mrf.mxu1  ;;  %v4875_v7 = vmax.f32 %v4675_v27, 0.0  ;;  %v4120_v63 = vsel %vm12824_vm12, %v4055_v0, %v6894_v54  ;;  %vm12832_vm0 = vmmov %vm12820_vm2 }
 0x2ee   : > { %v11375_v4 = vpop.permute.xlu1 %6921  ;;  %v4375_v51 = vpack.c.bf16 %v4312_v57, %v4311_v26  ;;  %v4876_v42 = vmax.f32 %v4678_v35, 0.0  ;;  %v4119_v1 = vsel %vm12825_vm9, %v4054_v53, %v6893_v24  ;;  %v6898_v26 = vunpack.i.l.bf16 %v11321_v22  ;;  %vm12833_vm1 = vmmov %vm12832_vm0 }
 0x2ef   : > { %v6932_v6 = vpop.permute.xlu0 %6931  ;;  %v6834_v32 = vunpack.i.h.bf16 %v11230_v12  ;;  %v6833_v0 = vunpack.i.l.bf16 %v11230_v12  ;;  %vm12835_vm10 = vmmov %vm12832_vm0  ;;  %v6924_v3 = vunpack.i.h.bf16 %v11375_v4 }
 0x2f0   : > { %4785 = vmatmul.mubr.bf16.gmra.mxu1 %v4375_v51  ;;  %v6934_v39 = vunpack.i.h.bf16 %v6932_v6  ;;  %v6933_v55 = vunpack.i.l.bf16 %v6932_v6  ;;  %v5634_v57 = vpack.c.bf16 %v4876_v42, %v4875_v7  ;;  %v4184_v43 = vsel %vm12826_vm6, %v4119_v1, %v6898_v26  ;;  %vm12836_vm2 = vmmov %vm12822_vm5 }
 0x2f1   : > { %5447 = vmatprep.mubr.msk.bf16.mxu1 %vm12821_vm8, %v4378_v29  ;;  %v4185_v51 = vsel %vm12827_vm11, %v4120_v63, %v6899_v46  ;;  %v6869_v42 = vunpack.i.h.bf16 %v11302_v20  ;;  %v6868_v63 = vunpack.i.l.bf16 %v11302_v20  ;;  %v6918_v46 = vunpack.i.l.bf16 %v11343_v44  ;;  %vm12837_vm8 = vmmov %vm12836_vm2 }
 0x2f2   : > { %v11394_v40 = vpop.permute.xlu1 %6936  ;;  %5754 = vst [vmem:[%s10777_s14 + $0x48] sm:$0xff] %v5634_v57   ;;  %v4249_v27 = vsel %vm12828_vm3, %v4185_v51, %v6934_v39  ;;  %v4248_v45 = vsel %vm12829_vm4, %v4184_v43, %v6933_v55  ;;  %v6919_v55 = vunpack.i.h.bf16 %v11343_v44  ;;  %v3927_v12 = vsel %vm12833_vm1, 0.0, %v6834_v32  ;;  %v12834_v57 = vld [vmem:[#allocation22_spill] sm:$0xff]  ;;  %vm12838_vm5 = vmmov %vm12825_vm9 }
 0x2f3   : > { %v11389_v10 = vpop.permute.xlu0 %6941  ;;  %v6923_v43 = vunpack.i.l.bf16 %v11375_v4  ;;  %v3992_v51 = vsel %vm3940_vm14, %v3927_v12, %v6839_v23  ;;  %vm12839_vm15 = vmmov %vm12838_vm5  ;;  %v6883_v23 = vunpack.i.l.bf16 %v11317_v34 }
 0x2f4   : > { %v4682_v6 = vpop.f32.mrf.mxu1  ;;  %v6943_v44 = vunpack.i.l.bf16 %v11389_v10  ;;  %vm12840_vm12 = vmmov %vm12826_vm6 }
 0x2f5   : > { %v4683_v21 = vadd.f32 %v11326_v52, %v4682_v6  ;;  %vm12841_vm9 = vmmov %vm12826_vm6 }
 0x2f6   : > { %v6957_v50 = vpop.permute.xlu1 %6956  ;;  %v4684_v54 = vpop.f32.mrf.mxu1  ;;  %vm12842_vm6 = vmmov %vm12828_vm3 }
 0x2f7   : > { %v11402_v38 = vpop.permute.xlu0 %6946  ;;  %v6959_v2 = vunpack.i.h.bf16 %v6957_v50  ;;  %v6958_v30 = vunpack.i.l.bf16 %v6957_v50  ;;  %v4877_v53 = vmax.f32 %v4683_v21, 0.0  ;;  %v3926_v50 = vsel %vm12835_vm10, %v12834_v57, %v6833_v0  ;;  %vm12843_vm11 = vmmov %vm12828_vm3 }
 0x2f8   : > { %v4685_v56 = vpop.f32.mrf.mxu1  ;;  %v3991_v20 = vsel %vm3940_vm14, %v3926_v50, %v6838_v11  ;;  %vm12844_vm3 = vmmov %vm12831_vm7  ;;  %v12846_v50 = vld [vmem:[#allocation14_spill] sm:$0xff] }
 0x2f9   : > { %v4313_v22 = vsel %vm12830_vm13, %v4248_v45, %v6958_v30  ;;  %v4314_v29 = vsel %vm12831_vm7, %v4249_v27, %v6959_v2  ;;  %v4686_v36 = vadd.f32 %v11326_v52, %v4685_v56  ;;  %v6944_v2 = vunpack.i.h.bf16 %v11389_v10  ;;  %vm12845_vm4 = vmmov %vm12844_vm3 }
 0x2fa   : > { %v11413_v24 = vpop.permute.xlu1 %6966  ;;  %v4377_v13 = vpack.c.bf16 %v4314_v29, %v4313_v22  ;;  %v4687_v14 = vpop.f32.mrf.mxu1  ;;  %v4057_v30 = vsel %vm12836_vm2, %v3992_v51, %v6869_v42  ;;  %v4056_v27 = vsel %vm12837_vm8, %v3991_v20, %v6868_v63  ;;  %vm12847_vm13 = vmmov %vm12832_vm0 }
 0x2fb   : > { %v11409_v31 = vpop.permute.xlu0 %6951  ;;  %v4878_v7 = vmax.f32 %v4686_v36, 0.0  ;;  %v4122_v6 = vsel %vm12838_vm5, %v4057_v30, %v6919_v55  ;;  %v4121_v22 = vsel %vm12839_vm15, %v4056_v27, %v6918_v46  ;;  %v6879_v36 = vunpack.i.h.bf16 %v11310_v17  ;;  %vm12849_vm7 = vmmov %vm12832_vm0 }
 0x2fc   : > { %4793 = vmatmul.mubr.bf16.gmra.mxu1 %v4377_v13  ;;  %v4187_v29 = vsel %vm12840_vm12, %v4122_v6, %v6924_v3  ;;  %v4186_v54 = vsel %vm12841_vm9, %v4121_v22, %v6923_v43  ;;  %v6878_v14 = vunpack.i.l.bf16 %v11310_v17  ;;  %v6928_v55 = vunpack.i.l.bf16 %v11361_v61  ;;  %vm12851_vm1 = vmmov %vm12836_vm2 }
 0x2fd   : > { %5448 = vmatprep.mubr.msk.bf16.mxu1 %vm12832_vm0, %v4380_v15  ;;  %v5639_v1 = vpack.c.bf16 %v4878_v7, %v4877_v53  ;;  %v4251_v15 = vsel %vm12842_vm6, %v4187_v29, %v6944_v2  ;;  %v4250_v10 = vsel %vm12843_vm11, %v4186_v54, %v6943_v44  ;;  %v6884_v7 = vunpack.i.h.bf16 %v11317_v34  ;;  %v12848_v34 = vld [vmem:[#allocation15_spill] sm:$0xff]  ;;  %vm12852_vm10 = vmmov %vm12851_vm1 }
 0x2fe   : > { %v11422_v18 = vpop.permute.xlu1 %6971  ;;  %v3929_v3 = vsel %vm12847_vm13, %v12846_v50, %v6879_v36  ;;  %v3928_v43 = vsel %vm12849_vm7, %v12848_v34, %v6878_v14  ;;  %vm12853_vm2 = vmmov %vm12838_vm5  ;;  %v6903_v50 = vunpack.i.l.bf16 %v11335_v16 }
 0x2ff   : > { %v11419_v35 = vpop.permute.xlu0 %6961  ;;  %5755 = vst [vmem:[%s10777_s14 + $0x50] sm:$0xff] %v5639_v1   ;;  %v6929_v1 = vunpack.i.h.bf16 %v11361_v61  ;;  %v12850_v61 = vpack.c.bf16 %v10791_v8, %v10761_v41  ;;  %v3993_v2 = vsel %vm3940_vm14, %v3928_v43, %v6883_v23  ;;  %vm12854_vm8 = vmmov %vm12853_vm2  ;;  %v12861_v43 = vpack.c.bf16 %v10850_v33, %v10836_v48  ;;  %v12864_v48 = vld [vmem:[#allocation47_spill] sm:$0xff] }
 0x300   : > { %v6964_v17 = vunpack.i.h.bf16 %v11419_v35  ;;  %v6963_v12 = vunpack.i.l.bf16 %v11419_v35  ;;  %v3994_v35 = vsel %vm3940_vm14, %v3929_v3, %v6884_v7  ;;  %v4058_v6 = vsel %vm12852_vm10, %v3993_v2, %v6928_v55  ;;  %vm12855_vm5 = vmmov %vm12841_vm9 }
 0x301   : > { %v4059_v27 = vsel %vm12851_vm1, %v3994_v35, %v6929_v1  ;;  %vm12856_vm15 = vmmov %vm12855_vm5  ;;  %v6939_v2 = vunpack.i.h.bf16 %v11394_v40 }
 0x302   : > { %v4124_v29 = vsel %vm12853_vm2, %v4059_v27, %v6964_v17  ;;  %v4123_v41 = vsel %vm12854_vm8, %v4058_v6, %v6963_v12  ;;  %vm12857_vm12 = vmmov %vm12842_vm6  ;;  %v6904_v12 = vunpack.i.h.bf16 %v11335_v16  ;;  %v6938_v16 = vunpack.i.l.bf16 %v11394_v40 }
 0x303   : > { %v11430_v39 = vpop.permute.xlu0 %6986  ;;  %v11434_v26 = vpop.permute.xlu1 %6976  ;;  %vm12858_vm9 = vmmov %vm12842_vm6  ;;  %v6948_v27 = vunpack.i.l.bf16 %v11402_v38 }
 0x304   : > { %v4690_v56 = vpop.f32.mrf.mxu1  ;;  %vm12859_vm6 = vmmov %vm12844_vm3 }
 0x305   : > { %v4691_v46 = vadd.f32 %v11326_v52, %v4690_v56  ;;  %vm12860_vm11 = vmmov %vm12844_vm3 }
 0x306   : > { %v4692_v11 = vpop.f32.mrf.mxu1  ;;  %vm12865_vm13 = vmmov %vm12832_vm0 }
 0x307   : > { %v11448_v45 = vpop.permute.xlu0 %6996  ;;  %v6982_v4 = vpop.permute.xlu1 %6981  ;;  %v4879_v22 = vmax.f32 %v4691_v46, 0.0  ;;  %vm12866_vm7 = vmmov %vm12851_vm1 }
 0x308   : > { %v6984_v13 = vunpack.i.h.bf16 %v6982_v4  ;;  %v6983_v21 = vunpack.i.l.bf16 %v6982_v4  ;;  %v4693_v57 = vpop.f32.mrf.mxu1  ;;  %vm12870_vm10 = vmmov %vm12853_vm2 }
 0x309   : > { %v4694_v20 = vadd.f32 %v11326_v52, %v4693_v57  ;;  %vm12871_vm8 = vmmov %vm12855_vm5 }
 0x30a   : > { %v4315_v0 = vsel %vm12844_vm3, %v4250_v10, %v6983_v21  ;;  %v4316_v53 = vsel %vm12845_vm4, %v4251_v15, %v6984_v13  ;;  %v4695_v44 = vpop.f32.mrf.mxu1  ;;  %v6969_v13 = vunpack.i.h.bf16 %v11413_v24  ;;  %v6968_v21 = vunpack.i.l.bf16 %v11413_v24  ;;  %vm12862_vm3 = vmmov %vm12832_vm0 }
 0x30b   : > { %v7002_v32 = vpop.permute.xlu0 %7001  ;;  %v11462_v42 = vpop.permute.xlu1 %6991  ;;  %v4379_v63 = vpack.c.bf16 %v4316_v53, %v4315_v0  ;;  %v4880_v4 = vmax.f32 %v4694_v20, 0.0  ;;  %v6909_v20 = vunpack.i.h.bf16 %v11347_v58  ;;  %vm12863_vm4 = vmmov %vm12832_vm0 }
 0x30c   : > { %v7004_v8 = vunpack.i.h.bf16 %v7002_v32  ;;  %v7003_v54 = vunpack.i.l.bf16 %v7002_v32  ;;  %v4188_v36 = vsel %vm12855_vm5, %v4123_v41, %v6968_v21  ;;  %v4189_v14 = vsel %vm12856_vm15, %v4124_v29, %v6969_v13 }
 0x30d   : > { %4801 = vmatmul.mubr.bf16.gmra.mxu1 %v4379_v63  ;;  %v5644_v15 = vpack.c.bf16 %v4880_v4, %v4879_v22  ;;  %v3931_v33 = vsel %vm12863_vm4, 0.0, %v6904_v12  ;;  %v3930_v4 = vsel %vm12865_vm13, %v12864_v48, %v6903_v50  ;;  %v6989_v29 = vunpack.i.h.bf16 %v11430_v39 }
 0x30e   : > { %5449 = vmatprep.mubr.msk.bf16.mxu1 %vm12832_vm0, %v12850_v61  ;;  %v4253_v7 = vsel %vm12857_vm12, %v4189_v14, %v7004_v8  ;;  %v4252_v23 = vsel %vm12858_vm9, %v4188_v36, %v7003_v54  ;;  %v6908_v61 = vunpack.i.l.bf16 %v11347_v58  ;;  %v6988_v58 = vunpack.i.l.bf16 %v11430_v39  ;;  %vm12867_vm0 = vmmov %vm12851_vm1  ;;  %v12868_v39 = vld [vmem:[#allocation33_spill] sm:$0xff] }
 0x30f   : > { %v11474_v51 = vpop.permute.xlu0 %7011  ;;  %v11482_v30 = vpop.permute.xlu1 %7006  ;;  %5756 = vst [vmem:[%s10777_s14 + $0x58] sm:$0xff] %v5644_v15   ;;  %v3996_v40 = vsel %vm3940_vm14, %v3931_v33, %v6909_v20  ;;  %v6994_v13 = vunpack.i.h.bf16 %v11462_v42  ;;  %v6993_v21 = vunpack.i.l.bf16 %v11462_v42  ;;  %v6949_v14 = vunpack.i.h.bf16 %v11402_v38  ;;  %vm12869_vm1 = vmmov %vm12862_vm3 }
 0x310   : > { %v3995_v54 = vsel %vm3940_vm14, %v3930_v4, %v6908_v61  ;;  %v7013_v42 = vunpack.i.l.bf16 %v11474_v51  ;;  %vm12873_vm15 = vmmov %vm12869_vm1 }
 0x311   : > { %v4060_v36 = vsel %vm12867_vm0, %v3995_v54, %v6938_v16  ;;  %vm12874_vm12 = vmmov %vm12858_vm9 }
 0x312   : > { %v4698_v32 = vpop.f32.mrf.mxu1  ;;  %v4125_v38 = vsel %vm12853_vm2, %v4060_v36, %v6988_v58  ;;  %vm12877_vm4 = vmmov %vm12867_vm0 }
 0x313   : > { %v11490_v10 = vpop.permute.xlu0 %7016  ;;  %v7027_v56 = vpop.permute.xlu1 %7026  ;;  %v4699_v17 = vadd.f32 %v11326_v52, %v4698_v32  ;;  %v6974_v32 = vunpack.i.h.bf16 %v11422_v18  ;;  %vm12878_vm13 = vmmov %vm12867_vm0 }
 0x314   : > { %v7029_v0 = vunpack.i.h.bf16 %v7027_v56  ;;  %v7028_v53 = vunpack.i.l.bf16 %v7027_v56  ;;  %v4700_v1 = vpop.f32.mrf.mxu1  ;;  %v4061_v56 = vsel %vm12866_vm7, %v3996_v40, %v6939_v2  ;;  %vm12879_vm7 = vmmov %vm12869_vm1 }
 0x315   : > { %v4881_v6 = vmax.f32 %v4699_v17, 0.0  ;;  %v6998_v17 = vunpack.i.l.bf16 %v11448_v45  ;;  %vm12880_vm0 = vmmov %vm12853_vm2 }
 0x316   : > { %v4317_v24 = vsel %vm12859_vm6, %v4252_v23, %v7028_v53  ;;  %v4318_v63 = vsel %vm12860_vm11, %v4253_v7, %v7029_v0  ;;  %v4701_v57 = vpop.f32.mrf.mxu1  ;;  %v3932_v0 = vsel %vm12869_vm1, %v12868_v39, %v6948_v27  ;;  %v6954_v53 = vunpack.i.h.bf16 %v11409_v31  ;;  %vm12875_vm11 = vmmov %vm12859_vm6 }
 0x317   : > { %v11497_v11 = vpop.permute.xlu0 %7021  ;;  %v11501_v55 = vpop.permute.xlu1 %7036  ;;  %v4381_v46 = vpack.c.bf16 %v4318_v63, %v4317_v24  ;;  %v4702_v3 = vadd.f32 %v11326_v52, %v4701_v57  ;;  %v6953_v7 = vunpack.i.l.bf16 %v11409_v31  ;;  %v7014_v23 = vunpack.i.h.bf16 %v11474_v51  ;;  %vm12884_vm2 = vmmov %vm12855_vm5 }
 0x318   : > { %v4703_v35 = vpop.f32.mrf.mxu1  ;;  %v6973_v24 = vunpack.i.l.bf16 %v11422_v18  ;;  %v4126_v63 = vsel %vm12870_vm10, %v4061_v56, %v6989_v29  ;;  %v4190_v31 = vsel %vm12855_vm5, %v4125_v38, %v6993_v21  ;;  %v6979_v27 = vunpack.i.h.bf16 %v11434_v26  ;;  %vm12886_vm5 = vmmov %vm12858_vm9 }
 0x319   : > { %4809 = vmatmul.mubr.bf16.gmra.mxu1 %v4381_v46  ;;  %v4882_v22 = vmax.f32 %v4702_v3, 0.0  ;;  %v6999_v46 = vunpack.i.h.bf16 %v11448_v45  ;;  %v4191_v12 = vsel %vm12871_vm8, %v4126_v63, %v6994_v13  ;;  %v3997_v61 = vsel %vm3940_vm14, %v3932_v0, %v6953_v7  ;;  %vm12885_vm8 = vmmov %vm12884_vm2 }
 0x31a   : > { %5450 = vmatprep.mubr.msk.bf16.mxu1 %vm12862_vm3, %v12861_v43  ;;  %v12872_v43 = vld [vmem:[#allocation38_spill] sm:$0xff]  ;;  %v4255_v2 = vsel %vm12874_vm12, %v4191_v12, %v7014_v23  ;;  %v4254_v45 = vsel %vm12858_vm9, %v4190_v31, %v7013_v42  ;;  %vm12876_vm3 = vmmov %vm12869_vm1  ;;  %v4062_v4 = vsel %vm12878_vm13, %v3997_v61, %v6998_v17  ;;  %v3934_v54 = vsel %vm12879_vm7, %v10022_v60, %v6973_v24 }
 0x31b   : > { %v11507_v34 = vpop.permute.xlu0 %7031  ;;  %v11516_v44 = vpop.permute.xlu1 %7041  ;;  %v5649_v41 = vpack.c.bf16 %v4882_v22, %v4881_v6  ;;  %v3933_v20 = vsel %vm12873_vm15, %v12872_v43, %v6949_v14  ;;  %v3935_v33 = vsel %vm12876_vm3, 0.0, %v6974_v32  ;;  %vm12881_vm1 = vmmov %vm12880_vm0  ;;  %v7039_v56 = vunpack.i.h.bf16 %v11501_v55 }
 0x31c   : > { %v7034_v51 = vunpack.i.h.bf16 %v11507_v34  ;;  %v7033_v50 = vunpack.i.l.bf16 %v11507_v34  ;;  %v3998_v16 = vsel %vm3940_vm14, %v3933_v20, %v6954_v53  ;;  %v7038_v36 = vunpack.i.l.bf16 %v11501_v55  ;;  %vm12883_vm10 = vmmov %vm12876_vm3 }
 0x31d   : > { %5757 = vst [vmem:[%s10777_s14 + $0x60] sm:$0xff] %v5649_v41   ;;  %v4063_v48 = vsel %vm12877_vm4, %v3998_v16, %v6999_v46  ;;  %v6978_v53 = vunpack.i.l.bf16 %v11434_v26  ;;  %v4000_v7 = vsel %vm3940_vm14, %v3935_v33, %v6979_v27  ;;  %v7009_v60 = vunpack.i.h.bf16 %v11482_v30  ;;  %vm12887_vm15 = vmmov %vm12886_vm5 }
 0x31e   : > { %v4128_v40 = vsel %vm12880_vm0, %v4063_v48, %v7034_v51  ;;  %v4127_v13 = vsel %vm12881_vm1, %v4062_v4, %v7033_v50  ;;  %v12882_v32 = vpack.c.bf16 %v10748_v5, %v10743_v28  ;;  %v7008_v55 = vunpack.i.l.bf16 %v11482_v30  ;;  %vm12888_vm12 = vmmov %vm12859_vm6 }
 0x31f   : > { %v11525_v8 = vpop.permute.xlu0 %7056  ;;  %v11531_v15 = vpop.permute.xlu1 %7046  ;;  %v7019_v24 = vunpack.i.h.bf16 %v11490_v10  ;;  %v4192_v63 = vsel %vm12884_vm2, %v4127_v13, %v7038_v36  ;;  %v4193_v26 = vsel %vm12885_vm8, %v4128_v40, %v7039_v56  ;;  %v7018_v30 = vunpack.i.l.bf16 %v11490_v10  ;;  %vm12889_vm9 = vmmov %vm12859_vm6 }
 0x320   : > { %v3999_v20 = vsel %vm3940_vm14, %v3934_v54, %v6978_v53  ;;  %v7023_v16 = vunpack.i.l.bf16 %v11497_v11  ;;  %vm12893_vm13 = vmmov %vm12880_vm0  ;;  %v7024_v4 = vunpack.i.h.bf16 %v11497_v11  ;;  %v12897_v54 = vpack.c.bf16 %v10827_v47, %v10815_v19 }
 0x321   : > { %v3937_v10 = vsel %vm12876_vm3, %v10390_v9, %v7019_v24  ;;  %vm12894_vm7 = vmmov %vm12876_vm3  ;;  %v7059_v9 = vunpack.i.h.bf16 %v11525_v8  ;;  %v7058_v40 = vunpack.i.l.bf16 %v11525_v8 }
 0x322   : > { %v3936_v48 = vsel %vm12894_vm7, %v10305_v62, %v7018_v30  ;;  %v4002_v8 = vsel %vm3940_vm14, %v3937_v10, %v7024_v4 }
 0x323   : > { %v7062_v1 = vpop.permute.xlu0 %7061  ;;  %v7052_v57 = vpop.permute.xlu1 %7051  ;;  %v4001_v62 = vsel %vm3940_vm14, %v3936_v48, %v7023_v16 }
 0x324   : > { %v7054_v3 = vunpack.i.h.bf16 %v7052_v57  ;;  %v7053_v18 = vunpack.i.l.bf16 %v7052_v57  ;;  %v4706_v35 = vpop.f32.mrf.mxu1  ;;  %v7064_v14 = vunpack.i.h.bf16 %v7062_v1  ;;  %v7063_v39 = vunpack.i.l.bf16 %v7062_v1 }
 0x325   : > { %v4707_v21 = vadd.f32 %v11326_v52, %v4706_v35 }
 0x326   : > { %v4319_v22 = vsel %vm12859_vm6, %v4254_v45, %v7053_v18  ;;  %v4320_v34 = vsel %vm12875_vm11, %v4255_v2, %v7054_v3  ;;  %v4708_v29 = vpop.f32.mrf.mxu1  ;;  %v4257_v57 = vsel %vm12886_vm5, %v4193_v26, %v7064_v14  ;;  %v4256_v28 = vsel %vm12887_vm15, %v4192_v63, %v7063_v39  ;;  %vm12890_vm6 = vmmov %vm12877_vm4 }
 0x327   : > { %v7067_v6 = vpop.permute.xlu0 %7066  ;;  %v11565_v58 = vpop.permute.xlu1 %7071  ;;  %v4383_v41 = vpack.c.bf16 %v4320_v34, %v4319_v22  ;;  %v4883_v46 = vmax.f32 %v4707_v21, 0.0  ;;  %v4065_v61 = vsel %vm12890_vm6, %v4000_v7, %v7009_v60  ;;  %vm12891_vm11 = vmmov %vm12877_vm4 }
 0x328   : > { %v4709_v0 = vpop.f32.mrf.mxu1  ;;  %v7069_v5 = vunpack.i.h.bf16 %v7067_v6  ;;  %v7068_v51 = vunpack.i.l.bf16 %v7067_v6  ;;  %v4064_v35 = vsel %vm12891_vm11, %v3999_v20, %v7008_v55  ;;  %vm12892_vm4 = vmmov %vm12880_vm0  ;;  %v7048_v20 = vunpack.i.l.bf16 %v11531_v15 }
 0x329   : > { %4817 = vmatmul.mubr.bf16.gmra.mxu1 %v4383_v41  ;;  %v4710_v23 = vadd.f32 %v11326_v52, %v4709_v0  ;;  %vm12895_vm0 = vmmov %vm12884_vm2 }
 0x32a   : > { %5451 = vmatprep.mubr.msk.bf16.mxu1 %vm12883_vm10, %v12882_v32  ;;  %v4711_v38 = vpop.f32.mrf.mxu1  ;;  %v4130_v22 = vsel %vm12892_vm4, %v4065_v61, %v7069_v5  ;;  %v4129_v34 = vsel %vm12893_vm13, %v4064_v35, %v7068_v51  ;;  %vm12896_vm1 = vmmov %vm12895_vm0  ;;  %v7043_v5 = vunpack.i.l.bf16 %v11516_v44  ;;  %v7073_v35 = vunpack.i.l.bf16 %v11565_v58 }
 0x32b   : > { %v7087_v42 = vpop.permute.xlu0 %7086  ;;  %v7077_v1 = vpop.permute.xlu1 %7076  ;;  %v4884_v17 = vmax.f32 %v4710_v23, 0.0  ;;  %vm12898_vm10 = vmmov %vm12876_vm3 }
 0x32c   : > { %v7079_v12 = vunpack.i.h.bf16 %v7077_v1  ;;  %v7078_v31 = vunpack.i.l.bf16 %v7077_v1  ;;  %v7089_v13 = vunpack.i.h.bf16 %v7087_v42  ;;  %v7088_v21 = vunpack.i.l.bf16 %v7087_v42  ;;  %vm12899_vm2 = vmmov %vm12886_vm5 }
 0x32d   : > { %v5654_v50 = vpack.c.bf16 %v4884_v17, %v4883_v46  ;;  %vm12900_vm8 = vmmov %vm12899_vm2 }
 0x32e   : > { %v4322_v3 = vsel %vm12888_vm12, %v4257_v57, %v7079_v12  ;;  %v4321_v18 = vsel %vm12889_vm9, %v4256_v28, %v7078_v31  ;;  %vm12901_vm5 = vmmov %vm12889_vm9  ;;  %v7044_v31 = vunpack.i.h.bf16 %v11516_v44  ;;  %v7074_v44 = vunpack.i.h.bf16 %v11565_v58 }
 0x32f   : > { %v7092_v43 = vpop.permute.xlu0 %7091  ;;  %v4385_v2 = vpack.c.bf16 %v4322_v3, %v4321_v18  ;;  %v7082_v45 = vpop.permute.xlu1 %7081  ;;  %5758 = vst [vmem:[%s10777_s14 + $0x68] sm:$0xff] %v5654_v50   ;;  %vm12902_vm15 = vmmov %vm12901_vm5  ;;  %v12909_v18 = vpack.c.bf16 %v10913_v25, %v10906_v37 }
 0x330   : > { %v7084_v27 = vunpack.i.h.bf16 %v7082_v45  ;;  %v7083_v6 = vunpack.i.l.bf16 %v7082_v45  ;;  %v7094_v53 = vunpack.i.h.bf16 %v7092_v43  ;;  %v7093_v7 = vunpack.i.l.bf16 %v7092_v43  ;;  %vm12903_vm12 = vmmov %vm12890_vm6 }
 0x331   : > { %v4714_v33 = vpop.f32.mrf.mxu1  ;;  %4825 = vmatmul.mubr.bf16.gmra.mxu1 %v4385_v2  ;;  %v4067_v55 = vsel %vm12903_vm12, %v4002_v8, %v7059_v9  ;;  %vm12904_vm9 = vmmov %vm12890_vm6  ;;  %v7049_v43 = vunpack.i.h.bf16 %v11531_v15 }
 0x332   : > { %v4195_v29 = vsel %vm12895_vm0, %v4130_v22, %v7084_v27  ;;  %v4194_v41 = vsel %vm12896_vm1, %v4129_v34, %v7083_v6  ;;  %5452 = vmatprep.mubr.msk.bf16.mxu1 %vm12898_vm10, %v12897_v54  ;;  %v4715_v11 = vadd.f32 %v11326_v52, %v4714_v33  ;;  %v4066_v24 = vsel %vm12904_vm9, %v4001_v62, %v7058_v40  ;;  %vm12905_vm6 = vmmov %vm12892_vm4 }
 0x333   : > { %v4716_v56 = vpop.f32.mrf.mxu1  ;;  %v7097_v36 = vpop.permute.xlu1 %7096  ;;  %v4258_v19 = vsel %vm12899_vm2, %v4194_v41, %v7088_v21  ;;  %v4259_v47 = vsel %vm12900_vm8, %v4195_v29, %v7089_v13  ;;  %v4132_v57 = vsel %vm12905_vm6, %v4067_v55, %v7094_v53  ;;  %vm12906_vm11 = vmmov %vm12892_vm4 }
 0x334   : > { %v7107_v14 = vpop.permute.xlu0 %7106  ;;  %v7099_v39 = vunpack.i.h.bf16 %v7097_v36  ;;  %v7098_v0 = vunpack.i.l.bf16 %v7097_v36  ;;  %v4885_v1 = vmax.f32 %v4715_v11, 0.0  ;;  %v4131_v28 = vsel %vm12906_vm11, %v4066_v24, %v7093_v7  ;;  %vm12907_vm3 = vmmov %vm12895_vm0  ;;  %v12923_v11 = vld [vmem:[#allocation31_spill] sm:$0xff] }
 0x335   : > { %v4717_v60 = vpop.f32.mrf.mxu1  ;;  %vm12908_vm4 = vmmov %vm12895_vm0  ;;  %v7109_v61 = vunpack.i.h.bf16 %v7107_v14  ;;  %v7108_v2 = vunpack.i.l.bf16 %v7107_v14  ;;  %v12924_v14 = vpack.c.bf16 %v10929_v59, %v12923_v11 }
 0x336   : > { %v4324_v23 = vsel %vm12901_vm5, %v4259_v47, %v7099_v39  ;;  %v4323_v42 = vsel %vm12902_vm15, %v4258_v19, %v7098_v0  ;;  %v4718_v32 = vadd.f32 %v11326_v52, %v4717_v60  ;;  %vm12910_vm13 = vmmov %vm12894_vm7 }
 0x337   : > { %v4387_v63 = vpack.c.bf16 %v4324_v23, %v4323_v42  ;;  %v4719_v26 = vpop.f32.mrf.mxu1  ;;  %v7102_v38 = vpop.permute.xlu1 %7101  ;;  %vm12911_vm7 = vmmov %vm12899_vm2 }
 0x338   : > { %v4886_v46 = vmax.f32 %v4718_v32, 0.0  ;;  %v7104_v17 = vunpack.i.h.bf16 %v7102_v38  ;;  %v7103_v12 = vunpack.i.l.bf16 %v7102_v38  ;;  %v7112_v30 = vpop.permute.xlu0 %7111  ;;  %vm12912_vm0 = vmmov %vm12899_vm2 }
 0x339   : > { %4833 = vmatmul.mubr.bf16.gmra.mxu1 %v4387_v63  ;;  %v7114_v6 = vunpack.i.h.bf16 %v7112_v30  ;;  %v7113_v10 = vunpack.i.l.bf16 %v7112_v30  ;;  %vm12913_vm1 = vmmov %vm12898_vm10 }
 0x33a   : > { %v5659_v51 = vpack.c.bf16 %v4886_v46, %v4885_v1  ;;  %v4197_v50 = vsel %vm12907_vm3, %v4132_v57, %v7104_v17  ;;  %v4196_v3 = vsel %vm12908_vm4, %v4131_v28, %v7103_v12  ;;  %5453 = vmatprep.mubr.msk.bf16.mxu1 %vm12910_vm13, %v12909_v18  ;;  %v3939_v22 = vsel %vm12913_vm1, 0.0, %v7044_v31  ;;  %vm12914_vm10 = vmmov %vm12913_vm1 }
 0x33b   : > { %v7117_v45 = vpop.permute.xlu1 %7116  ;;  %v4260_v37 = vsel %vm12911_vm7, %v4196_v3, %v7108_v2  ;;  %v4261_v25 = vsel %vm12912_vm0, %v4197_v50, %v7109_v61  ;;  %v3938_v15 = vsel %vm12914_vm10, %v10413_v49, %v7043_v5  ;;  %vm12915_vm2 = vmmov %vm12901_vm5  ;;  %v4004_v48 = vsel %vm3940_vm14, %v3939_v22, %v7049_v43 }
 0x33c   : > { %5759 = vst [vmem:[%s10777_s14 + $0x70] sm:$0xff] %v5659_v51   ;;  %v7119_v16 = vunpack.i.h.bf16 %v7117_v45  ;;  %v7118_v27 = vunpack.i.l.bf16 %v7117_v45  ;;  %vm12916_vm8 = vmmov %vm12915_vm2  ;;  %v4003_v58 = vsel %vm3940_vm14, %v3938_v15, %v7048_v20  ;;  %v7127_v9 = vpop.permute.xlu0 %7126 }
 0x33d   : > { %vm12917_vm5 = vmmov %vm12904_vm9  ;;  %v7129_v39 = vunpack.i.h.bf16 %v7127_v9  ;;  %v7128_v0 = vunpack.i.l.bf16 %v7127_v9 }
 0x33e   : > { %v4326_v34 = vsel %vm12915_vm2, %v4261_v25, %v7119_v16  ;;  %v4325_v33 = vsel %vm12916_vm8, %v4260_v37, %v7118_v27  ;;  %v4069_v41 = vsel %vm12917_vm5, %v4004_v48, %v7074_v44  ;;  %vm12918_vm15 = vmmov %vm12917_vm5 }
 0x33f   : > { %v4389_v4 = vpack.c.bf16 %v4326_v34, %v4325_v33  ;;  %v7122_v29 = vpop.permute.xlu1 %7121  ;;  %v4068_v54 = vsel %vm12918_vm15, %v4003_v58, %v7073_v35  ;;  %vm12919_vm12 = vmmov %vm12905_vm6 }
 0x340   : > { %v7124_v40 = vunpack.i.h.bf16 %v7122_v29  ;;  %v7123_v13 = vunpack.i.l.bf16 %v7122_v29  ;;  %v4134_v21 = vsel %vm12919_vm12, %v4069_v41, %v7114_v6  ;;  %vm12920_vm9 = vmmov %vm12905_vm6 }
 0x341   : > { %v4133_v49 = vsel %vm12920_vm9, %v4068_v54, %v7113_v10  ;;  %4841 = vmatmul.mubr.bf16.gmra.mxu1 %v4389_v4  ;;  %vm12921_vm6 = vmmov %vm12907_vm3 }
 0x342   : > { %v4199_v36 = vsel %vm12921_vm6, %v4134_v21, %v7124_v40  ;;  %vm12922_vm11 = vmmov %vm12907_vm3 }
 0x343   : > { %v4722_v56 = vpop.f32.mrf.mxu1  ;;  %v4198_v62 = vsel %vm12922_vm11, %v4133_v49, %v7123_v13  ;;  %vm12925_vm14 = vmmov %vm12913_vm1  ;;  %v7132_v7 = vpop.permute.xlu1 %7131 }
 0x344   : > { %5454 = vmatprep.mubr.msk.bf16.mxu1 %vm12925_vm14, %v12924_v14  ;;  %v4723_v19 = vadd.f32 %v11326_v52, %v4722_v56  ;;  %v7134_v47 = vunpack.i.h.bf16 %v7132_v7  ;;  %v7133_v60 = vunpack.i.l.bf16 %v7132_v7  ;;  %vm12926_vm3 = vmmov %vm12912_vm0 }
 0x345   : > { %v4724_v53 = vpop.f32.mrf.mxu1  ;;  %v4262_v8 = vsel %vm12926_vm3, %v4198_v62, %v7128_v0  ;;  %vm12927_vm4 = vmmov %vm12912_vm0 }
 0x346   : > { %v4263_v23 = vsel %vm12927_vm4, %v4199_v36, %v7129_v39  ;;  %vm12928_vm13 = vmmov %vm12915_vm2  ;;  %v4887_v26 = vmax.f32 %v4723_v19, 0.0 }
 0x347   : > { %v4725_v42 = vpop.f32.mrf.mxu1  ;;  %v4328_v32 = vsel %vm12928_vm13, %v4263_v23, %v7134_v47  ;;  %vm12929_vm7 = vmmov %vm12915_vm2 }
 0x348   : > { %v4327_v59 = vsel %vm12929_vm7, %v4262_v8, %v7133_v60  ;;  %v4726_v55 = vadd.f32 %v11326_v52, %v4725_v42 }
 0x349   : > { %v4391_v24 = vpack.c.bf16 %v4328_v32, %v4327_v59  ;;  %v4727_v63 = vpop.f32.mrf.mxu1 }
 0x34a   : > { %v4888_v38 = vmax.f32 %v4726_v55, 0.0 }
 0x34b   : > { %4849 = vmatmul.mubr.bf16.gmra.mxu1 %v4391_v24 }
 0x34c   : > { %v5664_v1 = vpack.c.bf16 %v4888_v38, %v4887_v26 }
 0x34e   : > { %5760 = vst [vmem:[%s10777_s14 + $0x78] sm:$0xff] %v5664_v1  }
 0x34f   : > { %v4730_v46 = vpop.f32.mrf.mxu1 }
 0x350   : > { %v4731_v12 = vadd.f32 %v11326_v52, %v4730_v46 }
 0x351   : > { %v4732_v17 = vpop.f32.mrf.mxu1 }
 0x352   : > { %v4889_v5 = vmax.f32 %v4731_v12, 0.0 }
 0x353   : > { %v4733_v31 = vpop.f32.mrf.mxu1 }
 0x354   : > { %v4734_v57 = vadd.f32 %v11326_v52, %v4733_v31 }
 0x355   : > { %v4735_v28 = vpop.f32.mrf.mxu1 }
 0x356   : > { %v4890_v51 = vmax.f32 %v4734_v57, 0.0 }
 0x358   : > { %v5669_v30 = vpack.c.bf16 %v4890_v51, %v4889_v5 }
 0x35a   : > { %5761 = vst [vmem:[%s10777_s14 + $0x80] sm:$0xff] %v5669_v30  }
 0x35c   : > { %v4738_v50 = vpop.f32.mrf.mxu1 }
 0x35d   : > { %v4739_v18 = vadd.f32 %v11326_v52, %v4738_v50 }
 0x35e   : > { %v4740_v3 = vpop.f32.mrf.mxu1 }
 0x35f   : > { %v4891_v2 = vmax.f32 %v4739_v18, 0.0 }
 0x360   : > { %v4741_v43 = vpop.f32.mrf.mxu1 }
 0x361   : > { %v4742_v20 = vadd.f32 %v11326_v52, %v4741_v43 }
 0x362   : > { %v4743_v61 = vpop.f32.mrf.mxu1 }
 0x363   : > { %v4892_v45 = vmax.f32 %v4742_v20, 0.0 }
 0x365   : > { %v5674_v44 = vpack.c.bf16 %v4892_v45, %v4891_v2 }
 0x367   : > { %5762 = vst [vmem:[%s10777_s14 + $0x88] sm:$0xff] %v5674_v44  }
 0x368   : > { %v4746_v35 = vpop.f32.mrf.mxu1 }
 0x369   : > { %v4747_v27 = vadd.f32 %v11326_v52, %v4746_v35 }
 0x36a   : > { %v4748_v16 = vpop.f32.mrf.mxu1 }
 0x36b   : > { %v4893_v25 = vmax.f32 %v4747_v27, 0.0 }
 0x36c   : > { %v4749_v6 = vpop.f32.mrf.mxu1 }
 0x36d   : > { %v4750_v10 = vadd.f32 %v11326_v52, %v4749_v6 }
 0x36e   : > { %v4751_v37 = vpop.f32.mrf.mxu1 }
 0x36f   : > { %v4894_v22 = vmax.f32 %v4750_v10, 0.0 }
 0x371   : > { %v5679_v15 = vpack.c.bf16 %v4894_v22, %v4893_v25 }
 0x373   : > { %5763 = vst [vmem:[%s10777_s14 + $0x90] sm:$0xff] %v5679_v15  }
 0x378   : > { %v4754_v34 = vpop.f32.mrf.mxu1 }
 0x379   : > { %v4755_v58 = vadd.f32 %v11326_v52, %v4754_v34 }
 0x37a   : > { %v4756_v33 = vpop.f32.mrf.mxu1 }
 0x37b   : > { %v4895_v41 = vmax.f32 %v4755_v58, 0.0 }
 0x37c   : > { %v4757_v48 = vpop.f32.mrf.mxu1 }
 0x37d   : > { %v4758_v4 = vadd.f32 %v11326_v52, %v4757_v48 }
 0x37e   : > { %v4759_v29 = vpop.f32.mrf.mxu1 }
 0x37f   : > { %v4896_v54 = vmax.f32 %v4758_v4, 0.0  ;;  %v7191_v4 = vld [vmem:[%s11715_s4] ss:$0 sm:$0xff] }
 0x381   : > { %v5684_v9 = vpack.c.bf16 %v4896_v54, %v4895_v41 }
 0x383   : > { %5764 = vst [vmem:[%s10777_s14 + $0x98] sm:$0xff] %v5684_v9  }
 0x384   : > { %v4762_v40 = vpop.f32.mrf.mxu1 }
 0x385   : > { %v4763_v21 = vadd.f32 %v11326_v52, %v4762_v40 }
 0x386   : > { %v4764_v13 = vpop.f32.mrf.mxu1 }
 0x387   : > { %v4897_v62 = vmax.f32 %v4763_v21, 0.0 }
 0x388   : > { %v4765_v49 = vpop.f32.mrf.mxu1 }
 0x389   : > { %v4766_v56 = vadd.f32 %v11326_v52, %v4765_v49 }
 0x38a   : > { %v4767_v36 = vpop.f32.mrf.mxu1 }
 0x38b   : > { %v4898_v11 = vmax.f32 %v4766_v56, 0.0 }
 0x38d   : > { %v5689_v14 = vpack.c.bf16 %v4898_v11, %v4897_v62 }
 0x38f   : > { %5765 = vst [vmem:[%s10777_s14 + $0xa0] sm:$0xff] %v5689_v14  }
 0x394   : > { %v4770_v39 = vpop.f32.mrf.mxu1 }
 0x395   : > { %v4771_v53 = vadd.f32 %v11326_v52, %v4770_v39 }
 0x396   : > { %v4772_v0 = vpop.f32.mrf.mxu1 }
 0x397   : > { %v4899_v60 = vmax.f32 %v4771_v53, 0.0 }
 0x398   : > { %v4773_v7 = vpop.f32.mrf.mxu1 }
 0x399   : > { %v4774_v19 = vadd.f32 %v11326_v52, %v4773_v7 }
 0x39a   : > { %v4775_v47 = vpop.f32.mrf.mxu1 }
 0x39b   : > { %v4900_v8 = vmax.f32 %v4774_v19, 0.0 }
 0x39d   : > { %v5694_v23 = vpack.c.bf16 %v4900_v8, %v4899_v60 }
 0x39f   : > { %5766 = vst [vmem:[%s10777_s14 + $0xa8] sm:$0xff] %v5694_v23  }
 0x3a0   : > { %v4778_v42 = vpop.f32.mrf.mxu1 }
 0x3a1   : > { %v4779_v59 = vadd.f32 %v11326_v52, %v4778_v42 }
 0x3a2   : > { %v4780_v32 = vpop.f32.mrf.mxu1 }
 0x3a3   : > { %v4901_v26 = vmax.f32 %v4779_v59, 0.0 }
 0x3a4   : > { %v4781_v55 = vpop.f32.mrf.mxu1 }
 0x3a5   : > { %v4782_v24 = vadd.f32 %v11326_v52, %v4781_v55 }
 0x3a6   : > { %v4783_v63 = vpop.f32.mrf.mxu1 }
 0x3a7   : > { %v4902_v38 = vmax.f32 %v4782_v24, 0.0 }
 0x3a9   : > { %v5699_v1 = vpack.c.bf16 %v4902_v38, %v4901_v26 }
 0x3ab   : > { %5767 = vst [vmem:[%s10777_s14 + $0xb0] sm:$0xff] %v5699_v1  }
 0x3b0   : > { %v4786_v46 = vpop.f32.mrf.mxu1 }
 0x3b1   : > { %v4787_v12 = vadd.f32 %v11326_v52, %v4786_v46 }
 0x3b2   : > { %v4788_v17 = vpop.f32.mrf.mxu1 }
 0x3b3   : > { %v4903_v5 = vmax.f32 %v4787_v12, 0.0 }
 0x3b4   : > { %v4789_v31 = vpop.f32.mrf.mxu1 }
 0x3b5   : > { %v4790_v57 = vadd.f32 %v11326_v52, %v4789_v31 }
 0x3b6   : > { %v4791_v28 = vpop.f32.mrf.mxu1 }
 0x3b7   : > { %v4904_v51 = vmax.f32 %v4790_v57, 0.0 }
 0x3b9   : > { %v5704_v30 = vpack.c.bf16 %v4904_v51, %v4903_v5 }
 0x3bb   : > { %5768 = vst [vmem:[%s10777_s14 + $0xb8] sm:$0xff] %v5704_v30  }
 0x3bc   : > { %v4794_v50 = vpop.f32.mrf.mxu1 }
 0x3bd   : > { %v4795_v18 = vadd.f32 %v11326_v52, %v4794_v50 }
 0x3be   : > { %v4796_v3 = vpop.f32.mrf.mxu1 }
 0x3bf   : > { %v4905_v2 = vmax.f32 %v4795_v18, 0.0 }
 0x3c0   : > { %v4797_v43 = vpop.f32.mrf.mxu1 }
 0x3c1   : > { %v4798_v20 = vadd.f32 %v11326_v52, %v4797_v43 }
 0x3c2   : > { %v4799_v61 = vpop.f32.mrf.mxu1 }
 0x3c3   : > { %v4906_v45 = vmax.f32 %v4798_v20, 0.0 }
 0x3c5   : > { %v5709_v44 = vpack.c.bf16 %v4906_v45, %v4905_v2 }
 0x3c7   : > { %5769 = vst [vmem:[%s10777_s14 + $0xc0] sm:$0xff] %v5709_v44  }
 0x3cd   : > { %v4802_v35 = vpop.f32.mrf.mxu1 }
 0x3ce   : > { %v4803_v27 = vadd.f32 %v11326_v52, %v4802_v35 }
 0x3cf   : > { %v4804_v16 = vpop.f32.mrf.mxu1 }
 0x3d0   : > { %v4907_v25 = vmax.f32 %v4803_v27, 0.0 }
 0x3d1   : > { %v4805_v6 = vpop.f32.mrf.mxu1 }
 0x3d2   : > { %v4806_v10 = vadd.f32 %v11326_v52, %v4805_v6 }
 0x3d3   : > { %v4807_v37 = vpop.f32.mrf.mxu1 }
 0x3d4   : > { %v4908_v22 = vmax.f32 %v4806_v10, 0.0 }
 0x3d6   : > { %v5714_v15 = vpack.c.bf16 %v4908_v22, %v4907_v25 }
 0x3d8   : > { %5770 = vst [vmem:[%s10777_s14 + $0xc8] sm:$0xff] %v5714_v15  }
 0x3d9   : > { %v4810_v34 = vpop.f32.mrf.mxu1 }
 0x3da   : > { %v4811_v58 = vadd.f32 %v11326_v52, %v4810_v34 }
 0x3db   : > { %v4812_v33 = vpop.f32.mrf.mxu1 }
 0x3dc   : > { %v4909_v54 = vmax.f32 %v4811_v58, 0.0 }
 0x3dd   : > { %v4813_v48 = vpop.f32.mrf.mxu1 }
 0x3de   : > { %v4814_v29 = vadd.f32 %v7191_v4, %v4813_v48 }
 0x3df   : > { %v4815_v41 = vpop.f32.mrf.mxu1 }
 0x3e0   : > { %v4910_v9 = vmax.f32 %v4814_v29, 0.0 }
 0x3e2   : > { %v5719_v40 = vpack.c.bf16 %v4910_v9, %v4909_v54 }
 0x3e4   : > { %5771 = vst [vmem:[%s10777_s14 + $0xd0] sm:$0xff] %v5719_v40  }
 0x3e9   : > { %v4818_v13 = vpop.f32.mrf.mxu1 }
 0x3ea   : > { %v4819_v49 = vadd.f32 %v7191_v4, %v4818_v13 }
 0x3eb   : > { %v4820_v21 = vpop.f32.mrf.mxu1 }
 0x3ec   : > { %v4911_v52 = vmax.f32 %v4819_v49, 0.0 }
 0x3ed   : > { %v4821_v56 = vpop.f32.mrf.mxu1 }
 0x3ee   : > { %v4822_v36 = vadd.f32 %v7191_v4, %v4821_v56 }
 0x3ef   : > { %v4823_v62 = vpop.f32.mrf.mxu1 }
 0x3f0   : > { %v4912_v11 = vmax.f32 %v4822_v36, 0.0 }
 0x3f1   : > { %v4826_v14 = vpop.f32.mrf.mxu1 }
 0x3f2   : > { %v5724_v39 = vpack.c.bf16 %v4912_v11, %v4911_v52  ;;  %v4827_v53 = vadd.f32 %v7191_v4, %v4826_v14 }
 0x3f3   : > { %v4828_v0 = vpop.f32.mrf.mxu1 }
 0x3f4   : > { %5772 = vst [vmem:[%s10777_s14 + $0xd8] sm:$0xff] %v5724_v39   ;;  %v4913_v60 = vmax.f32 %v4827_v53, 0.0 }
 0x3f5   : > { %v4829_v7 = vpop.f32.mrf.mxu1 }
 0x3f6   : > { %v4830_v19 = vadd.f32 %v7191_v4, %v4829_v7 }
 0x3f7   : > { %v4831_v47 = vpop.f32.mrf.mxu1 }
 0x3f8   : > { %v4914_v8 = vmax.f32 %v4830_v19, 0.0 }
 0x3f9   : > { %v4834_v23 = vpop.f32.mrf.mxu1 }
 0x3fa   : > { %v5729_v42 = vpack.c.bf16 %v4914_v8, %v4913_v60  ;;  %v4835_v59 = vadd.f32 %v7191_v4, %v4834_v23 }
 0x3fb   : > { %v4836_v32 = vpop.f32.mrf.mxu1 }
 0x3fc   : > { %5773 = vst [vmem:[%s10777_s14 + $0xe0] sm:$0xff] %v5729_v42   ;;  %v4915_v26 = vmax.f32 %v4835_v59, 0.0 }
 0x3fd   : > { %v4837_v55 = vpop.f32.mrf.mxu1 }
 0x3fe   : > { %v4838_v24 = vadd.f32 %v7191_v4, %v4837_v55 }
 0x3ff   : > { %v4839_v63 = vpop.f32.mrf.mxu1 }
 0x400   : > { %v4916_v38 = vmax.f32 %v4838_v24, 0.0 }
 0x401   : > { %v4842_v1 = vpop.f32.mrf.mxu1 }
 0x402   : > { %v5734_v46 = vpack.c.bf16 %v4916_v38, %v4915_v26  ;;  %v4843_v12 = vadd.f32 %v7191_v4, %v4842_v1 }
 0x403   : > { %v4844_v17 = vpop.f32.mrf.mxu1 }
 0x404   : > { %5774 = vst [vmem:[%s10777_s14 + $0xe8] sm:$0xff] %v5734_v46   ;;  %v4917_v5 = vmax.f32 %v4843_v12, 0.0 }
 0x405   : > { %v4845_v31 = vpop.f32.mrf.mxu1 }
 0x406   : > { %v4846_v57 = vadd.f32 %v7191_v4, %v4845_v31 }
 0x407   : > { %v4847_v28 = vpop.f32.mrf.mxu1 }
 0x408   : > { %v4918_v51 = vmax.f32 %v4846_v57, 0.0 }
 0x40a   : > { %v5739_v50 = vpack.c.bf16 %v4918_v51, %v4917_v5 }
 0x40b   : > { %v4850_v30 = vpop.f32.mrf.mxu1 }
 0x40c   : > { %5775 = vst [vmem:[%s10777_s14 + $0xf0] sm:$0xff] %v5739_v50   ;;  %v4851_v18 = vadd.f32 %v7191_v4, %v4850_v30 }
 0x40d   : > { %v4852_v3 = vpop.f32.mrf.mxu1 }
 0x40e   : > { %v4919_v2 = vmax.f32 %v4851_v18, 0.0 }
 0x40f   : > { %v4853_v43 = vpop.f32.mrf.mxu1 }
 0x410   : > { %v4854_v20 = vadd.f32 %v7191_v4, %v4853_v43 }
 0x411   : > { %v4855_v61 = vpop.f32.mrf.mxu1 }
 0x412   : > { %v4920_v45 = vmax.f32 %v4854_v20, 0.0 }
 0x414   : > { %v5744_v44 = vpack.c.bf16 %v4920_v45, %v4919_v2 }
 0x416   : > { %5776 = vst [vmem:[%s10777_s14 + $0xf8] sm:$0xff] %v5744_v44  }
 0x417 PF: > { %s15_s20 = sadd.s32 1, %s7214_s20   ;;  %s12930_s18 = smov %s7210_s19 }
 0x418   : > { %p12_p5 = scmp.ge.s32.totalorder %s15_s20, 4   ;;  %s12931_s19 = smov %s12933_s21 }
 0x41a   :  { %14 = sbr.rel (!%p12_p5) target bundleno = 2 (0x2), region = 71 }

</bundles_post_ra>
